<compile_context>
chip_gen: v6e
topology: v6e:2x2x1
jax: 0.10.0
libtpu: 0.0.40
codegen_flags: <defaults>
</compile_context>

<pallas_src>
import jax
import jax.numpy as jnp
from jax import lax
from jax.experimental import pallas as pl
from jax.experimental.pallas import tpu as pltpu

_SELU_ALPHA = 1.6732632423543772
_SELU_SCALE = 1.0507009873554805


# ------------------------------ fused forward kernel ------------------------------
def _make_fused_kernel(stream_ts, hidden_sizes, n_fc):
    """stream_ts: per-stream padded sequence length T_i; hidden_sizes: per-stream H_i."""
    n_streams = len(stream_ts)

    def kernel(*refs):
        # ---------------- unpack refs (inputs, output, scratch) ----------------
        pos = 0
        x_refs, len_refs = [], []
        for _ in range(n_streams):
            x_refs.append(refs[pos]); len_refs.append(refs[pos + 1]); pos += 2
        wih_refs, whh_refs, b_refs = [], [], []
        for _ in range(n_streams):
            wih_refs.append(refs[pos]); whh_refs.append(refs[pos + 1])
            b_refs.append(refs[pos + 2]); pos += 3
        fw_refs, fb_refs, fg_refs, fbt_refs = [], [], [], []
        for _ in range(n_fc):
            fw_refs.append(refs[pos]); fb_refs.append(refs[pos + 1])
            fg_refs.append(refs[pos + 2]); fbt_refs.append(refs[pos + 3]); pos += 4
        o_ref = refs[pos]; pos += 1
        xp_refs = refs[pos:pos + n_streams]; pos += n_streams
        cat_ref = refs[pos]

        # ------------------------- per-stream LSTM -------------------------
        feat_off = 0
        for s in range(n_streams):
            T = stream_ts[s]
            H = hidden_sizes[s]
            x_ref = x_refs[s]                    # (T, D, B)
            xp_ref = xp_refs[s]                  # (T, 4H, B) scratch
            B = x_ref.shape[-1]

            wih = wih_refs[s][...]               # (4H, D)  loaded once
            whh = whh_refs[s][...]               # (4H, H)  loaded once
            bias = b_refs[s][...]                # (4H, 1)
            lens = len_refs[s][...]              # (1, B) int32, hoisted out of the loop

            # Hoisted input projection: all timesteps computed up front, off the
            # serial recurrence path, staged into VMEM scratch.
            for t in range(T):
                xp_ref[t] = (
                    jnp.dot(wih, x_ref[t], preferred_element_type=jnp.float32) + bias
                )

            def step(t, carry, whh=whh, lens=lens, xp_ref=xp_ref, H=H):
                h, c, h_out = carry
                # (4H, B): gate blocks live on the sublane axis at multiples of H
                # (H % 8 == 0), so these slices are tile-aligned -> no lane shuffles.
                gates = xp_ref[t] + jnp.dot(whh, h, preferred_element_type=jnp.float32)
                i_g = jax.nn.sigmoid(gates[0 * H:1 * H, :])
                f_g = jax.nn.sigmoid(gates[1 * H:2 * H, :])
                g_g = jnp.tanh(gates[2 * H:3 * H, :])
                o_g = jax.nn.sigmoid(gates[3 * H:4 * H, :])
                c_new = f_g * c + i_g * g_g
                h_new = o_g * jnp.tanh(c_new)
                # pack_padded_sequence semantics: h_n[b] = hidden state at t == len[b]-1
                h_out = jnp.where(lens == t + 1, h_new, h_out)
                return h_new, c_new, h_out

            zeros = jnp.zeros((H, B), jnp.float32)
            _, _, h_n = lax.fori_loop(0, T, step, (zeros, zeros, zeros), unroll=True)

            # concat along the feature (sublane) axis, aligned static slice store
            cat_ref[feat_off:feat_off + H, :] = h_n
            feat_off += H

        # ---------- Linear -> BatchNorm1d (train-mode batch stats) -> SELU ----------
        x = cat_ref[...]                          # (F0, B) feature-major
        for l in range(n_fc):
            w = fw_refs[l][...]                   # (Fout, Fin) torch layout
            y = jnp.dot(w, x, preferred_element_type=jnp.float32) + fb_refs[l][...]
            mean = jnp.mean(y, axis=1, keepdims=True)                    # batch stats
            var = jnp.mean(jnp.square(y - mean), axis=1, keepdims=True)  # biased var
            y = (y - mean) * lax.rsqrt(var + 1e-5)
            y = fg_refs[l][...] * y + fbt_refs[l][...]
            # SELU (exp(y)-1 rather than expm1: keeps Mosaic lowering coverage safe;
            # forward-pass error vs expm1 is far below f32 noise at these scales)
            x = _SELU_SCALE * jnp.where(y > 0.0, y, _SELU_ALPHA * (jnp.exp(y) - 1.0))

        o_ref[...] = x                            # written exactly once

    return kernel


# ---------------------------------- model wrapper ----------------------------------
class DataSeqHazardPallas:
    def __init__(self, input_sizes, hidden_sizes, fc_sizes, key):
        assert len(input_sizes) == len(hidden_sizes)
        self.t = len(input_sizes)
        self.hidden_sizes = list(hidden_sizes)

        self.lstm_params = []
        for d, h in zip(input_sizes, hidden_sizes):
            key, k1, k2, k3, k4 = jax.random.split(key, 5)
            s = 1.0 / jnp.sqrt(jnp.float32(h))
            self.lstm_params.append(dict(
                w_ih=jax.random.normal(k1, (4 * h, d), jnp.float32) * s,
                w_hh=jax.random.normal(k2, (4 * h, h), jnp.float32) * s,
                b_ih=jax.random.normal(k3, (4 * h,), jnp.float32) * s,
                b_hh=jax.random.normal(k4, (4 * h,), jnp.float32) * s,
            ))

        fc = [int(sum(hidden_sizes))] + list(fc_sizes)
        self.fc_params = []
        for i in range(len(fc) - 1):
            key, k1, k2 = jax.random.split(key, 3)
            s = 1.0 / jnp.sqrt(jnp.float32(fc[i]))
            self.fc_params.append(dict(
                w=jax.random.normal(k1, (fc[i + 1], fc[i]), jnp.float32) * s,
                b=jax.random.normal(k2, (fc[i + 1],), jnp.float32) * s,
                gamma=jnp.ones((fc[i + 1],), jnp.float32),
                beta=jnp.zeros((fc[i + 1],), jnp.float32),
            ))

    def __call__(self, inputs, lengths):
        # inputs: list of (B, T_i, D_i); lengths: list of (B,) int
        n = self.t
        B = inputs[0].shape[0]
        vmem = pl.BlockSpec(memory_space=pltpu.MemorySpace.VMEM)

        operands, in_specs, stream_ts = [], [], []
        for i in range(n):
            x = inputs[i]
            T = x.shape[1]
            stream_ts.append(T)
            # batch_first (B, T, D) -> (T, D, B): time leading, features on sublanes,
            # batch on lanes, so the recurrence never needs in-kernel transposes.
            operands.append(jnp.transpose(x, (1, 2, 0)).astype(jnp.float32))
            in_specs.append(vmem)
            operands.append(lengths[i].astype(jnp.int32).reshape(1, B))
            in_specs.append(vmem)
        for i in range(n):
            p = self.lstm_params[i]
            h = self.hidden_sizes[i]
            operands.append(p["w_ih"].astype(jnp.float32)); in_specs.append(vmem)
            operands.append(p["w_hh"].astype(jnp.float32)); in_specs.append(vmem)
            operands.append((p["b_ih"] + p["b_hh"]).reshape(4 * h, 1).astype(jnp.float32))
            in_specs.append(vmem)
        for p in self.fc_params:
            fo = p["w"].shape[0]
            operands.append(p["w"].astype(jnp.float32)); in_specs.append(vmem)
            operands.append(p["b"].reshape(fo, 1).astype(jnp.float32)); in_specs.append(vmem)
            operands.append(p["gamma"].reshape(fo, 1).astype(jnp.float32)); in_specs.append(vmem)
            operands.append(p["beta"].reshape(fo, 1).astype(jnp.float32)); in_specs.append(vmem)

        f0 = int(sum(self.hidden_sizes))
        f_last = self.fc_params[-1]["w"].shape[0]
        n_fc = len(self.fc_params)

        scratch = [pltpu.VMEM((stream_ts[i], 4 * self.hidden_sizes[i], B), jnp.float32)
                   for i in range(n)]
        scratch.append(pltpu.VMEM((f0, B), jnp.float32))

        kernel = _make_fused_kernel(stream_ts, self.hidden_sizes, n_fc)
        out = pl.pallas_call(
            kernel,
            out_shape=jax.ShapeDtypeStruct((f_last, B), jnp.float32),
            in_specs=in_specs,
            out_specs=vmem,
            scratch_shapes=scratch,
        )(*operands)

        # final torch squeeze(-1) on the (B, F_last) activations
        if f_last == 1:
            return out.reshape(B)
        return jnp.transpose(out)


# --------------------------------------- main ---------------------------------------
if __name__ == "__main__":
    key = jax.random.PRNGKey(0)

    B = 4                         # batch
    input_sizes = [6, 10]         # args.input_size
    hidden_sizes = [8, 16]        # args.hidden_size_data_seq
    fc_sizes = [16, 1]            # args.fc_data_seq
    T = 8                         # padded sequence length

    key, kx0, kx1, km = jax.random.split(key, 4)
    inputs = [
        jax.random.normal(kx0, (B, T, input_sizes[0]), jnp.float32),
        jax.random.normal(kx1, (B, T, input_sizes[1]), jnp.float32),
    ]
    lengths = [
        jnp.array([8, 5, 3, 1], dtype=jnp.int32),
        jnp.array([2, 8, 6, 4], dtype=jnp.int32),
    ]

    model = DataSeqHazardPallas(input_sizes, hidden_sizes, fc_sizes, km)
    out = model(inputs, lengths)
    out = jax.block_until_ready(out)
    assert out.shape == (B,), out.shape
    print("KERNEL_OK")
</pallas_src>

<mosaic_0001>
module attributes {stable_mosaic.version = 11 : i64} {
  func.func @kernel(%arg0: memref<8x6x4xf32, #tpu.memory_space<vmem>>, %arg1: memref<1x4xi32, #tpu.memory_space<vmem>>, %arg2: memref<8x10x4xf32, #tpu.memory_space<vmem>>, %arg3: memref<1x4xi32, #tpu.memory_space<vmem>>, %arg4: memref<32x6xf32, #tpu.memory_space<vmem>>, %arg5: memref<32x8xf32, #tpu.memory_space<vmem>>, %arg6: memref<32x1xf32, #tpu.memory_space<vmem>>, %arg7: memref<64x10xf32, #tpu.memory_space<vmem>>, %arg8: memref<64x16xf32, #tpu.memory_space<vmem>>, %arg9: memref<64x1xf32, #tpu.memory_space<vmem>>, %arg10: memref<16x24xf32, #tpu.memory_space<vmem>>, %arg11: memref<16x1xf32, #tpu.memory_space<vmem>>, %arg12: memref<16x1xf32, #tpu.memory_space<vmem>>, %arg13: memref<16x1xf32, #tpu.memory_space<vmem>>, %arg14: memref<1x16xf32, #tpu.memory_space<vmem>>, %arg15: memref<1x1xf32, #tpu.memory_space<vmem>>, %arg16: memref<1x1xf32, #tpu.memory_space<vmem>>, %arg17: memref<1x1xf32, #tpu.memory_space<vmem>>, %arg18: memref<1x4xf32, #tpu.memory_space<vmem>>, %arg19: memref<8x32x4xf32, #tpu.memory_space<vmem>>, %arg20: memref<8x64x4xf32, #tpu.memory_space<vmem>>, %arg21: memref<24x4xf32, #tpu.memory_space<vmem>>) attributes {dimension_semantics = [], scalar_prefetch = 0 : i64, scratch_operands = 3 : i64, tpu.core_type = #tpu.core_type<tc>} {
    %c0 = arith.constant 0 : index
    %c0_0 = arith.constant 0 : index
    %0 = vector.load %arg4[%c0, %c0_0] : memref<32x6xf32, #tpu.memory_space<vmem>>, vector<32x6xf32>
    %c0_1 = arith.constant 0 : index
    %c0_2 = arith.constant 0 : index
    %1 = vector.load %arg5[%c0_1, %c0_2] : memref<32x8xf32, #tpu.memory_space<vmem>>, vector<32x8xf32>
    %c0_3 = arith.constant 0 : index
    %c0_4 = arith.constant 0 : index
    %2 = vector.load %arg6[%c0_3, %c0_4] : memref<32x1xf32, #tpu.memory_space<vmem>>, vector<32x1xf32>
    %c0_5 = arith.constant 0 : index
    %c0_6 = arith.constant 0 : index
    %3 = vector.load %arg1[%c0_5, %c0_6] : memref<1x4xi32, #tpu.memory_space<vmem>>, vector<1x4xi32>
    %c0_7 = arith.constant 0 : index
    %c0_8 = arith.constant 0 : index
    %c0_9 = arith.constant 0 : index
    %4 = vector.load %arg0[%c0_7, %c0_8, %c0_9] : memref<8x6x4xf32, #tpu.memory_space<vmem>>, vector<1x6x4xf32>
    %5 = vector.shape_cast %4 : vector<1x6x4xf32> to vector<6x4xf32>
    %cst = arith.constant dense<0.000000e+00> : vector<32x4xf32>
    %6 = tpu.matmul %0, %5, %cst {dimension_numbers = #tpu.dot_dimension_numbers<[1], [0], [0], [1], [0, 0, 1, 1], [], []>} : vector<32x6xf32>, vector<6x4xf32>, vector<32x4xf32> -> vector<32x4xf32>
    %7 = vector.broadcast %2 : vector<32x1xf32> to vector<32x4xf32>
    %8 = arith.addf %6, %7 : vector<32x4xf32>
    %c0_10 = arith.constant 0 : index
    %c0_11 = arith.constant 0 : index
    %c0_12 = arith.constant 0 : index
    %9 = vector.load %arg19[%c0_10, %c0_11, %c0_12] : memref<8x32x4xf32, #tpu.memory_space<vmem>>, vector<1x32x4xf32>
    %10 = vector.shape_cast %9 : vector<1x32x4xf32> to vector<32x4xf32>
    %11 = vector.shape_cast %8 : vector<32x4xf32> to vector<1x32x4xf32>
    tpu.vector_store %arg19[%c0_10, %c0_11, %c0_12], %11 {strides = array<i32>} : memref<8x32x4xf32, #tpu.memory_space<vmem>>, vector<1x32x4xf32>,
    %c1 = arith.constant 1 : index
    %c0_13 = arith.constant 0 : index
    %c0_14 = arith.constant 0 : index
    %12 = vector.load %arg0[%c1, %c0_13, %c0_14] : memref<8x6x4xf32, #tpu.memory_space<vmem>>, vector<1x6x4xf32>
    %13 = vector.shape_cast %12 : vector<1x6x4xf32> to vector<6x4xf32>
    %cst_15 = arith.constant dense<0.000000e+00> : vector<32x4xf32>
    %14 = tpu.matmul %0, %13, %cst_15 {dimension_numbers = #tpu.dot_dimension_numbers<[1], [0], [0], [1], [0, 0, 1, 1], [], []>} : vector<32x6xf32>, vector<6x4xf32>, vector<32x4xf32> -> vector<32x4xf32>
    %15 = vector.broadcast %2 : vector<32x1xf32> to vector<32x4xf32>
    %16 = arith.addf %14, %15 : vector<32x4xf32>
    %c1_16 = arith.constant 1 : index
    %c0_17 = arith.constant 0 : index
    %c0_18 = arith.constant 0 : index
    %17 = vector.load %arg19[%c1_16, %c0_17, %c0_18] : memref<8x32x4xf32, #tpu.memory_space<vmem>>, vector<1x32x4xf32>
    %18 = vector.shape_cast %17 : vector<1x32x4xf32> to vector<32x4xf32>
    %19 = vector.shape_cast %16 : vector<32x4xf32> to vector<1x32x4xf32>
    tpu.vector_store %arg19[%c1_16, %c0_17, %c0_18], %19 {strides = array<i32>} : memref<8x32x4xf32, #tpu.memory_space<vmem>>, vector<1x32x4xf32>,
    %c2 = arith.constant 2 : index
    %c0_19 = arith.constant 0 : index
    %c0_20 = arith.constant 0 : index
    %20 = vector.load %arg0[%c2, %c0_19, %c0_20] : memref<8x6x4xf32, #tpu.memory_space<vmem>>, vector<1x6x4xf32>
    %21 = vector.shape_cast %20 : vector<1x6x4xf32> to vector<6x4xf32>
    %cst_21 = arith.constant dense<0.000000e+00> : vector<32x4xf32>
    %22 = tpu.matmul %0, %21, %cst_21 {dimension_numbers = #tpu.dot_dimension_numbers<[1], [0], [0], [1], [0, 0, 1, 1], [], []>} : vector<32x6xf32>, vector<6x4xf32>, vector<32x4xf32> -> vector<32x4xf32>
    %23 = vector.broadcast %2 : vector<32x1xf32> to vector<32x4xf32>
    %24 = arith.addf %22, %23 : vector<32x4xf32>
    %c2_22 = arith.constant 2 : index
    %c0_23 = arith.constant 0 : index
    %c0_24 = arith.constant 0 : index
    %25 = vector.load %arg19[%c2_22, %c0_23, %c0_24] : memref<8x32x4xf32, #tpu.memory_space<vmem>>, vector<1x32x4xf32>
    %26 = vector.shape_cast %25 : vector<1x32x4xf32> to vector<32x4xf32>
    %27 = vector.shape_cast %24 : vector<32x4xf32> to vector<1x32x4xf32>
    tpu.vector_store %arg19[%c2_22, %c0_23, %c0_24], %27 {strides = array<i32>} : memref<8x32x4xf32, #tpu.memory_space<vmem>>, vector<1x32x4xf32>,
    %c3 = arith.constant 3 : index
    %c0_25 = arith.constant 0 : index
    %c0_26 = arith.constant 0 : index
    %28 = vector.load %arg0[%c3, %c0_25, %c0_26] : memref<8x6x4xf32, #tpu.memory_space<vmem>>, vector<1x6x4xf32>
    %29 = vector.shape_cast %28 : vector<1x6x4xf32> to vector<6x4xf32>
    %cst_27 = arith.constant dense<0.000000e+00> : vector<32x4xf32>
    %30 = tpu.matmul %0, %29, %cst_27 {dimension_numbers = #tpu.dot_dimension_numbers<[1], [0], [0], [1], [0, 0, 1, 1], [], []>} : vector<32x6xf32>, vector<6x4xf32>, vector<32x4xf32> -> vector<32x4xf32>
    %31 = vector.broadcast %2 : vector<32x1xf32> to vector<32x4xf32>
    %32 = arith.addf %30, %31 : vector<32x4xf32>
    %c3_28 = arith.constant 3 : index
    %c0_29 = arith.constant 0 : index
    %c0_30 = arith.constant 0 : index
    %33 = vector.load %arg19[%c3_28, %c0_29, %c0_30] : memref<8x32x4xf32, #tpu.memory_space<vmem>>, vector<1x32x4xf32>
    %34 = vector.shape_cast %33 : vector<1x32x4xf32> to vector<32x4xf32>
    %35 = vector.shape_cast %32 : vector<32x4xf32> to vector<1x32x4xf32>
    tpu.vector_store %arg19[%c3_28, %c0_29, %c0_30], %35 {strides = array<i32>} : memref<8x32x4xf32, #tpu.memory_space<vmem>>, vector<1x32x4xf32>,
    %c4 = arith.constant 4 : index
    %c0_31 = arith.constant 0 : index
    %c0_32 = arith.constant 0 : index
    %36 = vector.load %arg0[%c4, %c0_31, %c0_32] : memref<8x6x4xf32, #tpu.memory_space<vmem>>, vector<1x6x4xf32>
    %37 = vector.shape_cast %36 : vector<1x6x4xf32> to vector<6x4xf32>
    %cst_33 = arith.constant dense<0.000000e+00> : vector<32x4xf32>
    %38 = tpu.matmul %0, %37, %cst_33 {dimension_numbers = #tpu.dot_dimension_numbers<[1], [0], [0], [1], [0, 0, 1, 1], [], []>} : vector<32x6xf32>, vector<6x4xf32>, vector<32x4xf32> -> vector<32x4xf32>
    %39 = vector.broadcast %2 : vector<32x1xf32> to vector<32x4xf32>
    %40 = arith.addf %38, %39 : vector<32x4xf32>
    %c4_34 = arith.constant 4 : index
    %c0_35 = arith.constant 0 : index
    %c0_36 = arith.constant 0 : index
    %41 = vector.load %arg19[%c4_34, %c0_35, %c0_36] : memref<8x32x4xf32, #tpu.memory_space<vmem>>, vector<1x32x4xf32>
    %42 = vector.shape_cast %41 : vector<1x32x4xf32> to vector<32x4xf32>
    %43 = vector.shape_cast %40 : vector<32x4xf32> to vector<1x32x4xf32>
    tpu.vector_store %arg19[%c4_34, %c0_35, %c0_36], %43 {strides = array<i32>} : memref<8x32x4xf32, #tpu.memory_space<vmem>>, vector<1x32x4xf32>,
    %c5 = arith.constant 5 : index
    %c0_37 = arith.constant 0 : index
    %c0_38 = arith.constant 0 : index
    %44 = vector.load %arg0[%c5, %c0_37, %c0_38] : memref<8x6x4xf32, #tpu.memory_space<vmem>>, vector<1x6x4xf32>
    %45 = vector.shape_cast %44 : vector<1x6x4xf32> to vector<6x4xf32>
    %cst_39 = arith.constant dense<0.000000e+00> : vector<32x4xf32>
    %46 = tpu.matmul %0, %45, %cst_39 {dimension_numbers = #tpu.dot_dimension_numbers<[1], [0], [0], [1], [0, 0, 1, 1], [], []>} : vector<32x6xf32>, vector<6x4xf32>, vector<32x4xf32> -> vector<32x4xf32>
    %47 = vector.broadcast %2 : vector<32x1xf32> to vector<32x4xf32>
    %48 = arith.addf %46, %47 : vector<32x4xf32>
    %c5_40 = arith.constant 5 : index
    %c0_41 = arith.constant 0 : index
    %c0_42 = arith.constant 0 : index
    %49 = vector.load %arg19[%c5_40, %c0_41, %c0_42] : memref<8x32x4xf32, #tpu.memory_space<vmem>>, vector<1x32x4xf32>
    %50 = vector.shape_cast %49 : vector<1x32x4xf32> to vector<32x4xf32>
    %51 = vector.shape_cast %48 : vector<32x4xf32> to vector<1x32x4xf32>
    tpu.vector_store %arg19[%c5_40, %c0_41, %c0_42], %51 {strides = array<i32>} : memref<8x32x4xf32, #tpu.memory_space<vmem>>, vector<1x32x4xf32>,
    %c6 = arith.constant 6 : index
    %c0_43 = arith.constant 0 : index
    %c0_44 = arith.constant 0 : index
    %52 = vector.load %arg0[%c6, %c0_43, %c0_44] : memref<8x6x4xf32, #tpu.memory_space<vmem>>, vector<1x6x4xf32>
    %53 = vector.shape_cast %52 : vector<1x6x4xf32> to vector<6x4xf32>
    %cst_45 = arith.constant dense<0.000000e+00> : vector<32x4xf32>
    %54 = tpu.matmul %0, %53, %cst_45 {dimension_numbers = #tpu.dot_dimension_numbers<[1], [0], [0], [1], [0, 0, 1, 1], [], []>} : vector<32x6xf32>, vector<6x4xf32>, vector<32x4xf32> -> vector<32x4xf32>
    %55 = vector.broadcast %2 : vector<32x1xf32> to vector<32x4xf32>
    %56 = arith.addf %54, %55 : vector<32x4xf32>
    %c6_46 = arith.constant 6 : index
    %c0_47 = arith.constant 0 : index
    %c0_48 = arith.constant 0 : index
    %57 = vector.load %arg19[%c6_46, %c0_47, %c0_48] : memref<8x32x4xf32, #tpu.memory_space<vmem>>, vector<1x32x4xf32>
    %58 = vector.shape_cast %57 : vector<1x32x4xf32> to vector<32x4xf32>
    %59 = vector.shape_cast %56 : vector<32x4xf32> to vector<1x32x4xf32>
    tpu.vector_store %arg19[%c6_46, %c0_47, %c0_48], %59 {strides = array<i32>} : memref<8x32x4xf32, #tpu.memory_space<vmem>>, vector<1x32x4xf32>,
    %c7 = arith.constant 7 : index
    %c0_49 = arith.constant 0 : index
    %c0_50 = arith.constant 0 : index
    %60 = vector.load %arg0[%c7, %c0_49, %c0_50] : memref<8x6x4xf32, #tpu.memory_space<vmem>>, vector<1x6x4xf32>
    %61 = vector.shape_cast %60 : vector<1x6x4xf32> to vector<6x4xf32>
    %cst_51 = arith.constant dense<0.000000e+00> : vector<32x4xf32>
    %62 = tpu.matmul %0, %61, %cst_51 {dimension_numbers = #tpu.dot_dimension_numbers<[1], [0], [0], [1], [0, 0, 1, 1], [], []>} : vector<32x6xf32>, vector<6x4xf32>, vector<32x4xf32> -> vector<32x4xf32>
    %63 = vector.broadcast %2 : vector<32x1xf32> to vector<32x4xf32>
    %64 = arith.addf %62, %63 : vector<32x4xf32>
    %c7_52 = arith.constant 7 : index
    %c0_53 = arith.constant 0 : index
    %c0_54 = arith.constant 0 : index
    %65 = vector.load %arg19[%c7_52, %c0_53, %c0_54] : memref<8x32x4xf32, #tpu.memory_space<vmem>>, vector<1x32x4xf32>
    %66 = vector.shape_cast %65 : vector<1x32x4xf32> to vector<32x4xf32>
    %67 = vector.shape_cast %64 : vector<32x4xf32> to vector<1x32x4xf32>
    tpu.vector_store %arg19[%c7_52, %c0_53, %c0_54], %67 {strides = array<i32>} : memref<8x32x4xf32, #tpu.memory_space<vmem>>, vector<1x32x4xf32>,
    %cst_55 = arith.constant 0.000000e+00 : f32
    %68 = vector.broadcast %cst_55 : f32 to vector<8x4xf32>
    %c0_i32 = arith.constant 0 : i32
    %69 = arith.index_cast %c0_i32 : i32 to index
    %c0_56 = arith.constant 0 : index
    %c0_57 = arith.constant 0 : index
    %70 = vector.load %arg19[%69, %c0_56, %c0_57] : memref<8x32x4xf32, #tpu.memory_space<vmem>>, vector<1x32x4xf32>
    %71 = vector.shape_cast %70 : vector<1x32x4xf32> to vector<32x4xf32>
    %cst_58 = arith.constant dense<0.000000e+00> : vector<32x4xf32>
    %72 = tpu.matmul %1, %68, %cst_58 {dimension_numbers = #tpu.dot_dimension_numbers<[1], [0], [0], [1], [0, 0, 1, 1], [], []>} : vector<32x8xf32>, vector<8x4xf32>, vector<32x4xf32> -> vector<32x4xf32>
    %73 = arith.addf %71, %72 : vector<32x4xf32>
    %74 = vector.extract_strided_slice %73 {offsets = [0, 0], sizes = [8, 4], strides = [1, 1]} : vector<32x4xf32> to vector<8x4xf32>
    %75 = arith.negf %74 : vector<8x4xf32>
    %76 = math.exp %75 : vector<8x4xf32>
    %cst_59 = arith.constant 1.000000e+00 : f32
    %77 = vector.broadcast %cst_59 : f32 to vector<8x4xf32>
    %78 = arith.addf %77, %76 : vector<8x4xf32>
    %79 = arith.divf %77, %78 : vector<8x4xf32>
    %80 = vector.extract_strided_slice %73 {offsets = [8, 0], sizes = [8, 4], strides = [1, 1]} : vector<32x4xf32> to vector<8x4xf32>
    %81 = arith.negf %80 : vector<8x4xf32>
    %82 = math.exp %81 : vector<8x4xf32>
    %cst_60 = arith.constant 1.000000e+00 : f32
    %83 = vector.broadcast %cst_60 : f32 to vector<8x4xf32>
    %84 = arith.addf %83, %82 : vector<8x4xf32>
    %85 = arith.divf %83, %84 : vector<8x4xf32>
    %86 = vector.extract_strided_slice %73 {offsets = [16, 0], sizes = [8, 4], strides = [1, 1]} : vector<32x4xf32> to vector<8x4xf32>
    %87 = math.tanh %86 : vector<8x4xf32>
    %88 = vector.extract_strided_slice %73 {offsets = [24, 0], sizes = [8, 4], strides = [1, 1]} : vector<32x4xf32> to vector<8x4xf32>
    %89 = arith.negf %88 : vector<8x4xf32>
    %90 = math.exp %89 : vector<8x4xf32>
    %cst_61 = arith.constant 1.000000e+00 : f32
    %91 = vector.broadcast %cst_61 : f32 to vector<8x4xf32>
    %92 = arith.addf %91, %90 : vector<8x4xf32>
    %93 = arith.divf %91, %92 : vector<8x4xf32>
    %94 = arith.mulf %85, %68 : vector<8x4xf32>
    %95 = arith.mulf %79, %87 : vector<8x4xf32>
    %96 = arith.addf %94, %95 : vector<8x4xf32>
    %97 = math.tanh %96 : vector<8x4xf32>
    %98 = arith.mulf %93, %97 : vector<8x4xf32>
    %c1_i32 = arith.constant 1 : i32
    %99 = arith.addi %c0_i32, %c1_i32 : i32
    %100 = vector.broadcast %99 : i32 to vector<1x4xi32>
    %101 = arith.cmpi eq, %3, %100 : vector<1x4xi32>
    %102 = vector.shape_cast %101 : vector<1x4xi1> to vector<1x4xi1>
    %103 = vector.broadcast %102 : vector<1x4xi1> to vector<8x4xi1>
    %104 = arith.select %103, %98, %68 : vector<8x4xi1>, vector<8x4xf32>
    %c1_i32_62 = arith.constant 1 : i32
    %105 = arith.index_cast %c1_i32_62 : i32 to index
    %c0_63 = arith.constant 0 : index
    %c0_64 = arith.constant 0 : index
    %106 = vector.load %arg19[%105, %c0_63, %c0_64] : memref<8x32x4xf32, #tpu.memory_space<vmem>>, vector<1x32x4xf32>
    %107 = vector.shape_cast %106 : vector<1x32x4xf32> to vector<32x4xf32>
    %cst_65 = arith.constant dense<0.000000e+00> : vector<32x4xf32>
    %108 = tpu.matmul %1, %98, %cst_65 {dimension_numbers = #tpu.dot_dimension_numbers<[1], [0], [0], [1], [0, 0, 1, 1], [], []>} : vector<32x8xf32>, vector<8x4xf32>, vector<32x4xf32> -> vector<32x4xf32>
    %109 = arith.addf %107, %108 : vector<32x4xf32>
    %110 = vector.extract_strided_slice %109 {offsets = [0, 0], sizes = [8, 4], strides = [1, 1]} : vector<32x4xf32> to vector<8x4xf32>
    %111 = arith.negf %110 : vector<8x4xf32>
    %112 = math.exp %111 : vector<8x4xf32>
    %cst_66 = arith.constant 1.000000e+00 : f32
    %113 = vector.broadcast %cst_66 : f32 to vector<8x4xf32>
    %114 = arith.addf %113, %112 : vector<8x4xf32>
    %115 = arith.divf %113, %114 : vector<8x4xf32>
    %116 = vector.extract_strided_slice %109 {offsets = [8, 0], sizes = [8, 4], strides = [1, 1]} : vector<32x4xf32> to vector<8x4xf32>
    %117 = arith.negf %116 : vector<8x4xf32>
    %118 = math.exp %117 : vector<8x4xf32>
    %cst_67 = arith.constant 1.000000e+00 : f32
    %119 = vector.broadcast %cst_67 : f32 to vector<8x4xf32>
    %120 = arith.addf %119, %118 : vector<8x4xf32>
    %121 = arith.divf %119, %120 : vector<8x4xf32>
    %122 = vector.extract_strided_slice %109 {offsets = [16, 0], sizes = [8, 4], strides = [1, 1]} : vector<32x4xf32> to vector<8x4xf32>
    %123 = math.tanh %122 : vector<8x4xf32>
    %124 = vector.extract_strided_slice %109 {offsets = [24, 0], sizes = [8, 4], strides = [1, 1]} : vector<32x4xf32> to vector<8x4xf32>
    %125 = arith.negf %124 : vector<8x4xf32>
    %126 = math.exp %125 : vector<8x4xf32>
    %cst_68 = arith.constant 1.000000e+00 : f32
    %127 = vector.broadcast %cst_68 : f32 to vector<8x4xf32>
    %128 = arith.addf %127, %126 : vector<8x4xf32>
    %129 = arith.divf %127, %128 : vector<8x4xf32>
    %130 = arith.mulf %121, %96 : vector<8x4xf32>
    %131 = arith.mulf %115, %123 : vector<8x4xf32>
    %132 = arith.addf %130, %131 : vector<8x4xf32>
    %133 = math.tanh %132 : vector<8x4xf32>
    %134 = arith.mulf %129, %133 : vector<8x4xf32>
    %c1_i32_69 = arith.constant 1 : i32
    %135 = arith.addi %c1_i32_62, %c1_i32_69 : i32
    %136 = vector.broadcast %135 : i32 to vector<1x4xi32>
    %137 = arith.cmpi eq, %3, %136 : vector<1x4xi32>
    %138 = vector.shape_cast %137 : vector<1x4xi1> to vector<1x4xi1>
    %139 = vector.broadcast %138 : vector<1x4xi1> to vector<8x4xi1>
    %140 = arith.select %139, %134, %104 : vector<8x4xi1>, vector<8x4xf32>
    %c2_i32 = arith.constant 2 : i32
    %141 = arith.index_cast %c2_i32 : i32 to index
    %c0_70 = arith.constant 0 : index
    %c0_71 = arith.constant 0 : index
    %142 = vector.load %arg19[%141, %c0_70, %c0_71] : memref<8x32x4xf32, #tpu.memory_space<vmem>>, vector<1x32x4xf32>
    %143 = vector.shape_cast %142 : vector<1x32x4xf32> to vector<32x4xf32>
    %cst_72 = arith.constant dense<0.000000e+00> : vector<32x4xf32>
    %144 = tpu.matmul %1, %134, %cst_72 {dimension_numbers = #tpu.dot_dimension_numbers<[1], [0], [0], [1], [0, 0, 1, 1], [], []>} : vector<32x8xf32>, vector<8x4xf32>, vector<32x4xf32> -> vector<32x4xf32>
    %145 = arith.addf %143, %144 : vector<32x4xf32>
    %146 = vector.extract_strided_slice %145 {offsets = [0, 0], sizes = [8, 4], strides = [1, 1]} : vector<32x4xf32> to vector<8x4xf32>
    %147 = arith.negf %146 : vector<8x4xf32>
    %148 = math.exp %147 : vector<8x4xf32>
    %cst_73 = arith.constant 1.000000e+00 : f32
    %149 = vector.broadcast %cst_73 : f32 to vector<8x4xf32>
    %150 = arith.addf %149, %148 : vector<8x4xf32>
    %151 = arith.divf %149, %150 : vector<8x4xf32>
    %152 = vector.extract_strided_slice %145 {offsets = [8, 0], sizes = [8, 4], strides = [1, 1]} : vector<32x4xf32> to vector<8x4xf32>
    %153 = arith.negf %152 : vector<8x4xf32>
    %154 = math.exp %153 : vector<8x4xf32>
    %cst_74 = arith.constant 1.000000e+00 : f32
    %155 = vector.broadcast %cst_74 : f32 to vector<8x4xf32>
    %156 = arith.addf %155, %154 : vector<8x4xf32>
    %157 = arith.divf %155, %156 : vector<8x4xf32>
    %158 = vector.extract_strided_slice %145 {offsets = [16, 0], sizes = [8, 4], strides = [1, 1]} : vector<32x4xf32> to vector<8x4xf32>
    %159 = math.tanh %158 : vector<8x4xf32>
    %160 = vector.extract_strided_slice %145 {offsets = [24, 0], sizes = [8, 4], strides = [1, 1]} : vector<32x4xf32> to vector<8x4xf32>
    %161 = arith.negf %160 : vector<8x4xf32>
    %162 = math.exp %161 : vector<8x4xf32>
    %cst_75 = arith.constant 1.000000e+00 : f32
    %163 = vector.broadcast %cst_75 : f32 to vector<8x4xf32>
    %164 = arith.addf %163, %162 : vector<8x4xf32>
    %165 = arith.divf %163, %164 : vector<8x4xf32>
    %166 = arith.mulf %157, %132 : vector<8x4xf32>
    %167 = arith.mulf %151, %159 : vector<8x4xf32>
    %168 = arith.addf %166, %167 : vector<8x4xf32>
    %169 = math.tanh %168 : vector<8x4xf32>
    %170 = arith.mulf %165, %169 : vector<8x4xf32>
    %c1_i32_76 = arith.constant 1 : i32
    %171 = arith.addi %c2_i32, %c1_i32_76 : i32
    %172 = vector.broadcast %171 : i32 to vector<1x4xi32>
    %173 = arith.cmpi eq, %3, %172 : vector<1x4xi32>
    %174 = vector.shape_cast %173 : vector<1x4xi1> to vector<1x4xi1>
    %175 = vector.broadcast %174 : vector<1x4xi1> to vector<8x4xi1>
    %176 = arith.select %175, %170, %140 : vector<8x4xi1>, vector<8x4xf32>
    %c3_i32 = arith.constant 3 : i32
    %177 = arith.index_cast %c3_i32 : i32 to index
    %c0_77 = arith.constant 0 : index
    %c0_78 = arith.constant 0 : index
    %178 = vector.load %arg19[%177, %c0_77, %c0_78] : memref<8x32x4xf32, #tpu.memory_space<vmem>>, vector<1x32x4xf32>
    %179 = vector.shape_cast %178 : vector<1x32x4xf32> to vector<32x4xf32>
    %cst_79 = arith.constant dense<0.000000e+00> : vector<32x4xf32>
    %180 = tpu.matmul %1, %170, %cst_79 {dimension_numbers = #tpu.dot_dimension_numbers<[1], [0], [0], [1], [0, 0, 1, 1], [], []>} : vector<32x8xf32>, vector<8x4xf32>, vector<32x4xf32> -> vector<32x4xf32>
    %181 = arith.addf %179, %180 : vector<32x4xf32>
    %182 = vector.extract_strided_slice %181 {offsets = [0, 0], sizes = [8, 4], strides = [1, 1]} : vector<32x4xf32> to vector<8x4xf32>
    %183 = arith.negf %182 : vector<8x4xf32>
    %184 = math.exp %183 : vector<8x4xf32>
    %cst_80 = arith.constant 1.000000e+00 : f32
    %185 = vector.broadcast %cst_80 : f32 to vector<8x4xf32>
    %186 = arith.addf %185, %184 : vector<8x4xf32>
    %187 = arith.divf %185, %186 : vector<8x4xf32>
    %188 = vector.extract_strided_slice %181 {offsets = [8, 0], sizes = [8, 4], strides = [1, 1]} : vector<32x4xf32> to vector<8x4xf32>
    %189 = arith.negf %188 : vector<8x4xf32>
    %190 = math.exp %189 : vector<8x4xf32>
    %cst_81 = arith.constant 1.000000e+00 : f32
    %191 = vector.broadcast %cst_81 : f32 to vector<8x4xf32>
    %192 = arith.addf %191, %190 : vector<8x4xf32>
    %193 = arith.divf %191, %192 : vector<8x4xf32>
    %194 = vector.extract_strided_slice %181 {offsets = [16, 0], sizes = [8, 4], strides = [1, 1]} : vector<32x4xf32> to vector<8x4xf32>
    %195 = math.tanh %194 : vector<8x4xf32>
    %196 = vector.extract_strided_slice %181 {offsets = [24, 0], sizes = [8, 4], strides = [1, 1]} : vector<32x4xf32> to vector<8x4xf32>
    %197 = arith.negf %196 : vector<8x4xf32>
    %198 = math.exp %197 : vector<8x4xf32>
    %cst_82 = arith.constant 1.000000e+00 : f32
    %199 = vector.broadcast %cst_82 : f32 to vector<8x4xf32>
    %200 = arith.addf %199, %198 : vector<8x4xf32>
    %201 = arith.divf %199, %200 : vector<8x4xf32>
    %202 = arith.mulf %193, %168 : vector<8x4xf32>
    %203 = arith.mulf %187, %195 : vector<8x4xf32>
    %204 = arith.addf %202, %203 : vector<8x4xf32>
    %205 = math.tanh %204 : vector<8x4xf32>
    %206 = arith.mulf %201, %205 : vector<8x4xf32>
    %c1_i32_83 = arith.constant 1 : i32
    %207 = arith.addi %c3_i32, %c1_i32_83 : i32
    %208 = vector.broadcast %207 : i32 to vector<1x4xi32>
    %209 = arith.cmpi eq, %3, %208 : vector<1x4xi32>
    %210 = vector.shape_cast %209 : vector<1x4xi1> to vector<1x4xi1>
    %211 = vector.broadcast %210 : vector<1x4xi1> to vector<8x4xi1>
    %212 = arith.select %211, %206, %176 : vector<8x4xi1>, vector<8x4xf32>
    %c4_i32 = arith.constant 4 : i32
    %213 = arith.index_cast %c4_i32 : i32 to index
    %c0_84 = arith.constant 0 : index
    %c0_85 = arith.constant 0 : index
    %214 = vector.load %arg19[%213, %c0_84, %c0_85] : memref<8x32x4xf32, #tpu.memory_space<vmem>>, vector<1x32x4xf32>
    %215 = vector.shape_cast %214 : vector<1x32x4xf32> to vector<32x4xf32>
    %cst_86 = arith.constant dense<0.000000e+00> : vector<32x4xf32>
    %216 = tpu.matmul %1, %206, %cst_86 {dimension_numbers = #tpu.dot_dimension_numbers<[1], [0], [0], [1], [0, 0, 1, 1], [], []>} : vector<32x8xf32>, vector<8x4xf32>, vector<32x4xf32> -> vector<32x4xf32>
    %217 = arith.addf %215, %216 : vector<32x4xf32>
    %218 = vector.extract_strided_slice %217 {offsets = [0, 0], sizes = [8, 4], strides = [1, 1]} : vector<32x4xf32> to vector<8x4xf32>
    %219 = arith.negf %218 : vector<8x4xf32>
    %220 = math.exp %219 : vector<8x4xf32>
    %cst_87 = arith.constant 1.000000e+00 : f32
    %221 = vector.broadcast %cst_87 : f32 to vector<8x4xf32>
    %222 = arith.addf %221, %220 : vector<8x4xf32>
    %223 = arith.divf %221, %222 : vector<8x4xf32>
    %224 = vector.extract_strided_slice %217 {offsets = [8, 0], sizes = [8, 4], strides = [1, 1]} : vector<32x4xf32> to vector<8x4xf32>
    %225 = arith.negf %224 : vector<8x4xf32>
    %226 = math.exp %225 : vector<8x4xf32>
    %cst_88 = arith.constant 1.000000e+00 : f32
    %227 = vector.broadcast %cst_88 : f32 to vector<8x4xf32>
    %228 = arith.addf %227, %226 : vector<8x4xf32>
    %229 = arith.divf %227, %228 : vector<8x4xf32>
    %230 = vector.extract_strided_slice %217 {offsets = [16, 0], sizes = [8, 4], strides = [1, 1]} : vector<32x4xf32> to vector<8x4xf32>
    %231 = math.tanh %230 : vector<8x4xf32>
    %232 = vector.extract_strided_slice %217 {offsets = [24, 0], sizes = [8, 4], strides = [1, 1]} : vector<32x4xf32> to vector<8x4xf32>
    %233 = arith.negf %232 : vector<8x4xf32>
    %234 = math.exp %233 : vector<8x4xf32>
    %cst_89 = arith.constant 1.000000e+00 : f32
    %235 = vector.broadcast %cst_89 : f32 to vector<8x4xf32>
    %236 = arith.addf %235, %234 : vector<8x4xf32>
    %237 = arith.divf %235, %236 : vector<8x4xf32>
    %238 = arith.mulf %229, %204 : vector<8x4xf32>
    %239 = arith.mulf %223, %231 : vector<8x4xf32>
    %240 = arith.addf %238, %239 : vector<8x4xf32>
    %241 = math.tanh %240 : vector<8x4xf32>
    %242 = arith.mulf %237, %241 : vector<8x4xf32>
    %c1_i32_90 = arith.constant 1 : i32
    %243 = arith.addi %c4_i32, %c1_i32_90 : i32
    %244 = vector.broadcast %243 : i32 to vector<1x4xi32>
    %245 = arith.cmpi eq, %3, %244 : vector<1x4xi32>
    %246 = vector.shape_cast %245 : vector<1x4xi1> to vector<1x4xi1>
    %247 = vector.broadcast %246 : vector<1x4xi1> to vector<8x4xi1>
    %248 = arith.select %247, %242, %212 : vector<8x4xi1>, vector<8x4xf32>
    %c5_i32 = arith.constant 5 : i32
    %249 = arith.index_cast %c5_i32 : i32 to index
    %c0_91 = arith.constant 0 : index
    %c0_92 = arith.constant 0 : index
    %250 = vector.load %arg19[%249, %c0_91, %c0_92] : memref<8x32x4xf32, #tpu.memory_space<vmem>>, vector<1x32x4xf32>
    %251 = vector.shape_cast %250 : vector<1x32x4xf32> to vector<32x4xf32>
    %cst_93 = arith.constant dense<0.000000e+00> : vector<32x4xf32>
    %252 = tpu.matmul %1, %242, %cst_93 {dimension_numbers = #tpu.dot_dimension_numbers<[1], [0], [0], [1], [0, 0, 1, 1], [], []>} : vector<32x8xf32>, vector<8x4xf32>, vector<32x4xf32> -> vector<32x4xf32>
    %253 = arith.addf %251, %252 : vector<32x4xf32>
    %254 = vector.extract_strided_slice %253 {offsets = [0, 0], sizes = [8, 4], strides = [1, 1]} : vector<32x4xf32> to vector<8x4xf32>
    %255 = arith.negf %254 : vector<8x4xf32>
    %256 = math.exp %255 : vector<8x4xf32>
    %cst_94 = arith.constant 1.000000e+00 : f32
    %257 = vector.broadcast %cst_94 : f32 to vector<8x4xf32>
    %258 = arith.addf %257, %256 : vector<8x4xf32>
    %259 = arith.divf %257, %258 : vector<8x4xf32>
    %260 = vector.extract_strided_slice %253 {offsets = [8, 0], sizes = [8, 4], strides = [1, 1]} : vector<32x4xf32> to vector<8x4xf32>
    %261 = arith.negf %260 : vector<8x4xf32>
    %262 = math.exp %261 : vector<8x4xf32>
    %cst_95 = arith.constant 1.000000e+00 : f32
    %263 = vector.broadcast %cst_95 : f32 to vector<8x4xf32>
    %264 = arith.addf %263, %262 : vector<8x4xf32>
    %265 = arith.divf %263, %264 : vector<8x4xf32>
    %266 = vector.extract_strided_slice %253 {offsets = [16, 0], sizes = [8, 4], strides = [1, 1]} : vector<32x4xf32> to vector<8x4xf32>
    %267 = math.tanh %266 : vector<8x4xf32>
    %268 = vector.extract_strided_slice %253 {offsets = [24, 0], sizes = [8, 4], strides = [1, 1]} : vector<32x4xf32> to vector<8x4xf32>
    %269 = arith.negf %268 : vector<8x4xf32>
    %270 = math.exp %269 : vector<8x4xf32>
    %cst_96 = arith.constant 1.000000e+00 : f32
    %271 = vector.broadcast %cst_96 : f32 to vector<8x4xf32>
    %272 = arith.addf %271, %270 : vector<8x4xf32>
    %273 = arith.divf %271, %272 : vector<8x4xf32>
    %274 = arith.mulf %265, %240 : vector<8x4xf32>
    %275 = arith.mulf %259, %267 : vector<8x4xf32>
    %276 = arith.addf %274, %275 : vector<8x4xf32>
    %277 = math.tanh %276 : vector<8x4xf32>
    %278 = arith.mulf %273, %277 : vector<8x4xf32>
    %c1_i32_97 = arith.constant 1 : i32
    %279 = arith.addi %c5_i32, %c1_i32_97 : i32
    %280 = vector.broadcast %279 : i32 to vector<1x4xi32>
    %281 = arith.cmpi eq, %3, %280 : vector<1x4xi32>
    %282 = vector.shape_cast %281 : vector<1x4xi1> to vector<1x4xi1>
    %283 = vector.broadcast %282 : vector<1x4xi1> to vector<8x4xi1>
    %284 = arith.select %283, %278, %248 : vector<8x4xi1>, vector<8x4xf32>
    %c6_i32 = arith.constant 6 : i32
    %285 = arith.index_cast %c6_i32 : i32 to index
    %c0_98 = arith.constant 0 : index
    %c0_99 = arith.constant 0 : index
    %286 = vector.load %arg19[%285, %c0_98, %c0_99] : memref<8x32x4xf32, #tpu.memory_space<vmem>>, vector<1x32x4xf32>
    %287 = vector.shape_cast %286 : vector<1x32x4xf32> to vector<32x4xf32>
    %cst_100 = arith.constant dense<0.000000e+00> : vector<32x4xf32>
    %288 = tpu.matmul %1, %278, %cst_100 {dimension_numbers = #tpu.dot_dimension_numbers<[1], [0], [0], [1], [0, 0, 1, 1], [], []>} : vector<32x8xf32>, vector<8x4xf32>, vector<32x4xf32> -> vector<32x4xf32>
    %289 = arith.addf %287, %288 : vector<32x4xf32>
    %290 = vector.extract_strided_slice %289 {offsets = [0, 0], sizes = [8, 4], strides = [1, 1]} : vector<32x4xf32> to vector<8x4xf32>
    %291 = arith.negf %290 : vector<8x4xf32>
    %292 = math.exp %291 : vector<8x4xf32>
    %cst_101 = arith.constant 1.000000e+00 : f32
    %293 = vector.broadcast %cst_101 : f32 to vector<8x4xf32>
    %294 = arith.addf %293, %292 : vector<8x4xf32>
    %295 = arith.divf %293, %294 : vector<8x4xf32>
    %296 = vector.extract_strided_slice %289 {offsets = [8, 0], sizes = [8, 4], strides = [1, 1]} : vector<32x4xf32> to vector<8x4xf32>
    %297 = arith.negf %296 : vector<8x4xf32>
    %298 = math.exp %297 : vector<8x4xf32>
    %cst_102 = arith.constant 1.000000e+00 : f32
    %299 = vector.broadcast %cst_102 : f32 to vector<8x4xf32>
    %300 = arith.addf %299, %298 : vector<8x4xf32>
    %301 = arith.divf %299, %300 : vector<8x4xf32>
    %302 = vector.extract_strided_slice %289 {offsets = [16, 0], sizes = [8, 4], strides = [1, 1]} : vector<32x4xf32> to vector<8x4xf32>
    %303 = math.tanh %302 : vector<8x4xf32>
    %304 = vector.extract_strided_slice %289 {offsets = [24, 0], sizes = [8, 4], strides = [1, 1]} : vector<32x4xf32> to vector<8x4xf32>
    %305 = arith.negf %304 : vector<8x4xf32>
    %306 = math.exp %305 : vector<8x4xf32>
    %cst_103 = arith.constant 1.000000e+00 : f32
    %307 = vector.broadcast %cst_103 : f32 to vector<8x4xf32>
    %308 = arith.addf %307, %306 : vector<8x4xf32>
    %309 = arith.divf %307, %308 : vector<8x4xf32>
    %310 = arith.mulf %301, %276 : vector<8x4xf32>
    %311 = arith.mulf %295, %303 : vector<8x4xf32>
    %312 = arith.addf %310, %311 : vector<8x4xf32>
    %313 = math.tanh %312 : vector<8x4xf32>
    %314 = arith.mulf %309, %313 : vector<8x4xf32>
    %c1_i32_104 = arith.constant 1 : i32
    %315 = arith.addi %c6_i32, %c1_i32_104 : i32
    %316 = vector.broadcast %315 : i32 to vector<1x4xi32>
    %317 = arith.cmpi eq, %3, %316 : vector<1x4xi32>
    %318 = vector.shape_cast %317 : vector<1x4xi1> to vector<1x4xi1>
    %319 = vector.broadcast %318 : vector<1x4xi1> to vector<8x4xi1>
    %320 = arith.select %319, %314, %284 : vector<8x4xi1>, vector<8x4xf32>
    %c7_i32 = arith.constant 7 : i32
    %321 = arith.index_cast %c7_i32 : i32 to index
    %c0_105 = arith.constant 0 : index
    %c0_106 = arith.constant 0 : index
    %322 = vector.load %arg19[%321, %c0_105, %c0_106] : memref<8x32x4xf32, #tpu.memory_space<vmem>>, vector<1x32x4xf32>
    %323 = vector.shape_cast %322 : vector<1x32x4xf32> to vector<32x4xf32>
    %cst_107 = arith.constant dense<0.000000e+00> : vector<32x4xf32>
    %324 = tpu.matmul %1, %314, %cst_107 {dimension_numbers = #tpu.dot_dimension_numbers<[1], [0], [0], [1], [0, 0, 1, 1], [], []>} : vector<32x8xf32>, vector<8x4xf32>, vector<32x4xf32> -> vector<32x4xf32>
    %325 = arith.addf %323, %324 : vector<32x4xf32>
    %326 = vector.extract_strided_slice %325 {offsets = [0, 0], sizes = [8, 4], strides = [1, 1]} : vector<32x4xf32> to vector<8x4xf32>
    %327 = arith.negf %326 : vector<8x4xf32>
    %328 = math.exp %327 : vector<8x4xf32>
    %cst_108 = arith.constant 1.000000e+00 : f32
    %329 = vector.broadcast %cst_108 : f32 to vector<8x4xf32>
    %330 = arith.addf %329, %328 : vector<8x4xf32>
    %331 = arith.divf %329, %330 : vector<8x4xf32>
    %332 = vector.extract_strided_slice %325 {offsets = [8, 0], sizes = [8, 4], strides = [1, 1]} : vector<32x4xf32> to vector<8x4xf32>
    %333 = arith.negf %332 : vector<8x4xf32>
    %334 = math.exp %333 : vector<8x4xf32>
    %cst_109 = arith.constant 1.000000e+00 : f32
    %335 = vector.broadcast %cst_109 : f32 to vector<8x4xf32>
    %336 = arith.addf %335, %334 : vector<8x4xf32>
    %337 = arith.divf %335, %336 : vector<8x4xf32>
    %338 = vector.extract_strided_slice %325 {offsets = [16, 0], sizes = [8, 4], strides = [1, 1]} : vector<32x4xf32> to vector<8x4xf32>
    %339 = math.tanh %338 : vector<8x4xf32>
    %340 = vector.extract_strided_slice %325 {offsets = [24, 0], sizes = [8, 4], strides = [1, 1]} : vector<32x4xf32> to vector<8x4xf32>
    %341 = arith.negf %340 : vector<8x4xf32>
    %342 = math.exp %341 : vector<8x4xf32>
    %cst_110 = arith.constant 1.000000e+00 : f32
    %343 = vector.broadcast %cst_110 : f32 to vector<8x4xf32>
    %344 = arith.addf %343, %342 : vector<8x4xf32>
    %345 = arith.divf %343, %344 : vector<8x4xf32>
    %346 = arith.mulf %337, %312 : vector<8x4xf32>
    %347 = arith.mulf %331, %339 : vector<8x4xf32>
    %348 = arith.addf %346, %347 : vector<8x4xf32>
    %349 = math.tanh %348 : vector<8x4xf32>
    %350 = arith.mulf %345, %349 : vector<8x4xf32>
    %c1_i32_111 = arith.constant 1 : i32
    %351 = arith.addi %c7_i32, %c1_i32_111 : i32
    %352 = vector.broadcast %351 : i32 to vector<1x4xi32>
    %353 = arith.cmpi eq, %3, %352 : vector<1x4xi32>
    %354 = vector.shape_cast %353 : vector<1x4xi1> to vector<1x4xi1>
    %355 = vector.broadcast %354 : vector<1x4xi1> to vector<8x4xi1>
    %356 = arith.select %355, %350, %320 : vector<8x4xi1>, vector<8x4xf32>
    %c8_i32 = arith.constant 8 : i32
    %c0_112 = arith.constant 0 : index
    %c0_113 = arith.constant 0 : index
    %357 = vector.load %arg21[%c0_112, %c0_113] : memref<24x4xf32, #tpu.memory_space<vmem>>, vector<8x4xf32>
    tpu.vector_store %arg21[%c0_112, %c0_113], %356 {strides = array<i32>} : memref<24x4xf32, #tpu.memory_space<vmem>>, vector<8x4xf32>,
    %c0_114 = arith.constant 0 : index
    %c0_115 = arith.constant 0 : index
    %358 = vector.load %arg7[%c0_114, %c0_115] : memref<64x10xf32, #tpu.memory_space<vmem>>, vector<64x10xf32>
    %c0_116 = arith.constant 0 : index
    %c0_117 = arith.constant 0 : index
    %359 = vector.load %arg8[%c0_116, %c0_117] : memref<64x16xf32, #tpu.memory_space<vmem>>, vector<64x16xf32>
    %c0_118 = arith.constant 0 : index
    %c0_119 = arith.constant 0 : index
    %360 = vector.load %arg9[%c0_118, %c0_119] : memref<64x1xf32, #tpu.memory_space<vmem>>, vector<64x1xf32>
    %c0_120 = arith.constant 0 : index
    %c0_121 = arith.constant 0 : index
    %361 = vector.load %arg3[%c0_120, %c0_121] : memref<1x4xi32, #tpu.memory_space<vmem>>, vector<1x4xi32>
    %c0_122 = arith.constant 0 : index
    %c0_123 = arith.constant 0 : index
    %c0_124 = arith.constant 0 : index
    %362 = vector.load %arg2[%c0_122, %c0_123, %c0_124] : memref<8x10x4xf32, #tpu.memory_space<vmem>>, vector<1x10x4xf32>
    %363 = vector.shape_cast %362 : vector<1x10x4xf32> to vector<10x4xf32>
    %cst_125 = arith.constant dense<0.000000e+00> : vector<64x4xf32>
    %364 = tpu.matmul %358, %363, %cst_125 {dimension_numbers = #tpu.dot_dimension_numbers<[1], [0], [0], [1], [0, 0, 1, 1], [], []>} : vector<64x10xf32>, vector<10x4xf32>, vector<64x4xf32> -> vector<64x4xf32>
    %365 = vector.broadcast %360 : vector<64x1xf32> to vector<64x4xf32>
    %366 = arith.addf %364, %365 : vector<64x4xf32>
    %c0_126 = arith.constant 0 : index
    %c0_127 = arith.constant 0 : index
    %c0_128 = arith.constant 0 : index
    %367 = vector.load %arg20[%c0_126, %c0_127, %c0_128] : memref<8x64x4xf32, #tpu.memory_space<vmem>>, vector<1x64x4xf32>
    %368 = vector.shape_cast %367 : vector<1x64x4xf32> to vector<64x4xf32>
    %369 = vector.shape_cast %366 : vector<64x4xf32> to vector<1x64x4xf32>
    tpu.vector_store %arg20[%c0_126, %c0_127, %c0_128], %369 {strides = array<i32>} : memref<8x64x4xf32, #tpu.memory_space<vmem>>, vector<1x64x4xf32>,
    %c1_129 = arith.constant 1 : index
    %c0_130 = arith.constant 0 : index
    %c0_131 = arith.constant 0 : index
    %370 = vector.load %arg2[%c1_129, %c0_130, %c0_131] : memref<8x10x4xf32, #tpu.memory_space<vmem>>, vector<1x10x4xf32>
    %371 = vector.shape_cast %370 : vector<1x10x4xf32> to vector<10x4xf32>
    %cst_132 = arith.constant dense<0.000000e+00> : vector<64x4xf32>
    %372 = tpu.matmul %358, %371, %cst_132 {dimension_numbers = #tpu.dot_dimension_numbers<[1], [0], [0], [1], [0, 0, 1, 1], [], []>} : vector<64x10xf32>, vector<10x4xf32>, vector<64x4xf32> -> vector<64x4xf32>
    %373 = vector.broadcast %360 : vector<64x1xf32> to vector<64x4xf32>
    %374 = arith.addf %372, %373 : vector<64x4xf32>
    %c1_133 = arith.constant 1 : index
    %c0_134 = arith.constant 0 : index
    %c0_135 = arith.constant 0 : index
    %375 = vector.load %arg20[%c1_133, %c0_134, %c0_135] : memref<8x64x4xf32, #tpu.memory_space<vmem>>, vector<1x64x4xf32>
    %376 = vector.shape_cast %375 : vector<1x64x4xf32> to vector<64x4xf32>
    %377 = vector.shape_cast %374 : vector<64x4xf32> to vector<1x64x4xf32>
    tpu.vector_store %arg20[%c1_133, %c0_134, %c0_135], %377 {strides = array<i32>} : memref<8x64x4xf32, #tpu.memory_space<vmem>>, vector<1x64x4xf32>,
    %c2_136 = arith.constant 2 : index
    %c0_137 = arith.constant 0 : index
    %c0_138 = arith.constant 0 : index
    %378 = vector.load %arg2[%c2_136, %c0_137, %c0_138] : memref<8x10x4xf32, #tpu.memory_space<vmem>>, vector<1x10x4xf32>
    %379 = vector.shape_cast %378 : vector<1x10x4xf32> to vector<10x4xf32>
    %cst_139 = arith.constant dense<0.000000e+00> : vector<64x4xf32>
    %380 = tpu.matmul %358, %379, %cst_139 {dimension_numbers = #tpu.dot_dimension_numbers<[1], [0], [0], [1], [0, 0, 1, 1], [], []>} : vector<64x10xf32>, vector<10x4xf32>, vector<64x4xf32> -> vector<64x4xf32>
    %381 = vector.broadcast %360 : vector<64x1xf32> to vector<64x4xf32>
    %382 = arith.addf %380, %381 : vector<64x4xf32>
    %c2_140 = arith.constant 2 : index
    %c0_141 = arith.constant 0 : index
    %c0_142 = arith.constant 0 : index
    %383 = vector.load %arg20[%c2_140, %c0_141, %c0_142] : memref<8x64x4xf32, #tpu.memory_space<vmem>>, vector<1x64x4xf32>
    %384 = vector.shape_cast %383 : vector<1x64x4xf32> to vector<64x4xf32>
    %385 = vector.shape_cast %382 : vector<64x4xf32> to vector<1x64x4xf32>
    tpu.vector_store %arg20[%c2_140, %c0_141, %c0_142], %385 {strides = array<i32>} : memref<8x64x4xf32, #tpu.memory_space<vmem>>, vector<1x64x4xf32>,
    %c3_143 = arith.constant 3 : index
    %c0_144 = arith.constant 0 : index
    %c0_145 = arith.constant 0 : index
    %386 = vector.load %arg2[%c3_143, %c0_144, %c0_145] : memref<8x10x4xf32, #tpu.memory_space<vmem>>, vector<1x10x4xf32>
    %387 = vector.shape_cast %386 : vector<1x10x4xf32> to vector<10x4xf32>
    %cst_146 = arith.constant dense<0.000000e+00> : vector<64x4xf32>
    %388 = tpu.matmul %358, %387, %cst_146 {dimension_numbers = #tpu.dot_dimension_numbers<[1], [0], [0], [1], [0, 0, 1, 1], [], []>} : vector<64x10xf32>, vector<10x4xf32>, vector<64x4xf32> -> vector<64x4xf32>
    %389 = vector.broadcast %360 : vector<64x1xf32> to vector<64x4xf32>
    %390 = arith.addf %388, %389 : vector<64x4xf32>
    %c3_147 = arith.constant 3 : index
    %c0_148 = arith.constant 0 : index
    %c0_149 = arith.constant 0 : index
    %391 = vector.load %arg20[%c3_147, %c0_148, %c0_149] : memref<8x64x4xf32, #tpu.memory_space<vmem>>, vector<1x64x4xf32>
    %392 = vector.shape_cast %391 : vector<1x64x4xf32> to vector<64x4xf32>
    %393 = vector.shape_cast %390 : vector<64x4xf32> to vector<1x64x4xf32>
    tpu.vector_store %arg20[%c3_147, %c0_148, %c0_149], %393 {strides = array<i32>} : memref<8x64x4xf32, #tpu.memory_space<vmem>>, vector<1x64x4xf32>,
    %c4_150 = arith.constant 4 : index
    %c0_151 = arith.constant 0 : index
    %c0_152 = arith.constant 0 : index
    %394 = vector.load %arg2[%c4_150, %c0_151, %c0_152] : memref<8x10x4xf32, #tpu.memory_space<vmem>>, vector<1x10x4xf32>
    %395 = vector.shape_cast %394 : vector<1x10x4xf32> to vector<10x4xf32>
    %cst_153 = arith.constant dense<0.000000e+00> : vector<64x4xf32>
    %396 = tpu.matmul %358, %395, %cst_153 {dimension_numbers = #tpu.dot_dimension_numbers<[1], [0], [0], [1], [0, 0, 1, 1], [], []>} : vector<64x10xf32>, vector<10x4xf32>, vector<64x4xf32> -> vector<64x4xf32>
    %397 = vector.broadcast %360 : vector<64x1xf32> to vector<64x4xf32>
    %398 = arith.addf %396, %397 : vector<64x4xf32>
    %c4_154 = arith.constant 4 : index
    %c0_155 = arith.constant 0 : index
    %c0_156 = arith.constant 0 : index
    %399 = vector.load %arg20[%c4_154, %c0_155, %c0_156] : memref<8x64x4xf32, #tpu.memory_space<vmem>>, vector<1x64x4xf32>
    %400 = vector.shape_cast %399 : vector<1x64x4xf32> to vector<64x4xf32>
    %401 = vector.shape_cast %398 : vector<64x4xf32> to vector<1x64x4xf32>
    tpu.vector_store %arg20[%c4_154, %c0_155, %c0_156], %401 {strides = array<i32>} : memref<8x64x4xf32, #tpu.memory_space<vmem>>, vector<1x64x4xf32>,
    %c5_157 = arith.constant 5 : index
    %c0_158 = arith.constant 0 : index
    %c0_159 = arith.constant 0 : index
    %402 = vector.load %arg2[%c5_157, %c0_158, %c0_159] : memref<8x10x4xf32, #tpu.memory_space<vmem>>, vector<1x10x4xf32>
    %403 = vector.shape_cast %402 : vector<1x10x4xf32> to vector<10x4xf32>
    %cst_160 = arith.constant dense<0.000000e+00> : vector<64x4xf32>
    %404 = tpu.matmul %358, %403, %cst_160 {dimension_numbers = #tpu.dot_dimension_numbers<[1], [0], [0], [1], [0, 0, 1, 1], [], []>} : vector<64x10xf32>, vector<10x4xf32>, vector<64x4xf32> -> vector<64x4xf32>
    %405 = vector.broadcast %360 : vector<64x1xf32> to vector<64x4xf32>
    %406 = arith.addf %404, %405 : vector<64x4xf32>
    %c5_161 = arith.constant 5 : index
    %c0_162 = arith.constant 0 : index
    %c0_163 = arith.constant 0 : index
    %407 = vector.load %arg20[%c5_161, %c0_162, %c0_163] : memref<8x64x4xf32, #tpu.memory_space<vmem>>, vector<1x64x4xf32>
    %408 = vector.shape_cast %407 : vector<1x64x4xf32> to vector<64x4xf32>
    %409 = vector.shape_cast %406 : vector<64x4xf32> to vector<1x64x4xf32>
    tpu.vector_store %arg20[%c5_161, %c0_162, %c0_163], %409 {strides = array<i32>} : memref<8x64x4xf32, #tpu.memory_space<vmem>>, vector<1x64x4xf32>,
    %c6_164 = arith.constant 6 : index
    %c0_165 = arith.constant 0 : index
    %c0_166 = arith.constant 0 : index
    %410 = vector.load %arg2[%c6_164, %c0_165, %c0_166] : memref<8x10x4xf32, #tpu.memory_space<vmem>>, vector<1x10x4xf32>
    %411 = vector.shape_cast %410 : vector<1x10x4xf32> to vector<10x4xf32>
    %cst_167 = arith.constant dense<0.000000e+00> : vector<64x4xf32>
    %412 = tpu.matmul %358, %411, %cst_167 {dimension_numbers = #tpu.dot_dimension_numbers<[1], [0], [0], [1], [0, 0, 1, 1], [], []>} : vector<64x10xf32>, vector<10x4xf32>, vector<64x4xf32> -> vector<64x4xf32>
    %413 = vector.broadcast %360 : vector<64x1xf32> to vector<64x4xf32>
    %414 = arith.addf %412, %413 : vector<64x4xf32>
    %c6_168 = arith.constant 6 : index
    %c0_169 = arith.constant 0 : index
    %c0_170 = arith.constant 0 : index
    %415 = vector.load %arg20[%c6_168, %c0_169, %c0_170] : memref<8x64x4xf32, #tpu.memory_space<vmem>>, vector<1x64x4xf32>
    %416 = vector.shape_cast %415 : vector<1x64x4xf32> to vector<64x4xf32>
    %417 = vector.shape_cast %414 : vector<64x4xf32> to vector<1x64x4xf32>
    tpu.vector_store %arg20[%c6_168, %c0_169, %c0_170], %417 {strides = array<i32>} : memref<8x64x4xf32, #tpu.memory_space<vmem>>, vector<1x64x4xf32>,
    %c7_171 = arith.constant 7 : index
    %c0_172 = arith.constant 0 : index
    %c0_173 = arith.constant 0 : index
    %418 = vector.load %arg2[%c7_171, %c0_172, %c0_173] : memref<8x10x4xf32, #tpu.memory_space<vmem>>, vector<1x10x4xf32>
    %419 = vector.shape_cast %418 : vector<1x10x4xf32> to vector<10x4xf32>
    %cst_174 = arith.constant dense<0.000000e+00> : vector<64x4xf32>
    %420 = tpu.matmul %358, %419, %cst_174 {dimension_numbers = #tpu.dot_dimension_numbers<[1], [0], [0], [1], [0, 0, 1, 1], [], []>} : vector<64x10xf32>, vector<10x4xf32>, vector<64x4xf32> -> vector<64x4xf32>
    %421 = vector.broadcast %360 : vector<64x1xf32> to vector<64x4xf32>
    %422 = arith.addf %420, %421 : vector<64x4xf32>
    %c7_175 = arith.constant 7 : index
    %c0_176 = arith.constant 0 : index
    %c0_177 = arith.constant 0 : index
    %423 = vector.load %arg20[%c7_175, %c0_176, %c0_177] : memref<8x64x4xf32, #tpu.memory_space<vmem>>, vector<1x64x4xf32>
    %424 = vector.shape_cast %423 : vector<1x64x4xf32> to vector<64x4xf32>
    %425 = vector.shape_cast %422 : vector<64x4xf32> to vector<1x64x4xf32>
    tpu.vector_store %arg20[%c7_175, %c0_176, %c0_177], %425 {strides = array<i32>} : memref<8x64x4xf32, #tpu.memory_space<vmem>>, vector<1x64x4xf32>,
    %cst_178 = arith.constant 0.000000e+00 : f32
    %426 = vector.broadcast %cst_178 : f32 to vector<16x4xf32>
    %c0_i32_179 = arith.constant 0 : i32
    %427 = arith.index_cast %c0_i32_179 : i32 to index
    %c0_180 = arith.constant 0 : index
    %c0_181 = arith.constant 0 : index
    %428 = vector.load %arg20[%427, %c0_180, %c0_181] : memref<8x64x4xf32, #tpu.memory_space<vmem>>, vector<1x64x4xf32>
    %429 = vector.shape_cast %428 : vector<1x64x4xf32> to vector<64x4xf32>
    %cst_182 = arith.constant dense<0.000000e+00> : vector<64x4xf32>
    %430 = tpu.matmul %359, %426, %cst_182 {dimension_numbers = #tpu.dot_dimension_numbers<[1], [0], [0], [1], [0, 0, 1, 1], [], []>} : vector<64x16xf32>, vector<16x4xf32>, vector<64x4xf32> -> vector<64x4xf32>
    %431 = arith.addf %429, %430 : vector<64x4xf32>
    %432 = vector.extract_strided_slice %431 {offsets = [0, 0], sizes = [16, 4], strides = [1, 1]} : vector<64x4xf32> to vector<16x4xf32>
    %433 = arith.negf %432 : vector<16x4xf32>
    %434 = math.exp %433 : vector<16x4xf32>
    %cst_183 = arith.constant 1.000000e+00 : f32
    %435 = vector.broadcast %cst_183 : f32 to vector<16x4xf32>
    %436 = arith.addf %435, %434 : vector<16x4xf32>
    %437 = arith.divf %435, %436 : vector<16x4xf32>
    %438 = vector.extract_strided_slice %431 {offsets = [16, 0], sizes = [16, 4], strides = [1, 1]} : vector<64x4xf32> to vector<16x4xf32>
    %439 = arith.negf %438 : vector<16x4xf32>
    %440 = math.exp %439 : vector<16x4xf32>
    %cst_184 = arith.constant 1.000000e+00 : f32
    %441 = vector.broadcast %cst_184 : f32 to vector<16x4xf32>
    %442 = arith.addf %441, %440 : vector<16x4xf32>
    %443 = arith.divf %441, %442 : vector<16x4xf32>
    %444 = vector.extract_strided_slice %431 {offsets = [32, 0], sizes = [16, 4], strides = [1, 1]} : vector<64x4xf32> to vector<16x4xf32>
    %445 = math.tanh %444 : vector<16x4xf32>
    %446 = vector.extract_strided_slice %431 {offsets = [48, 0], sizes = [16, 4], strides = [1, 1]} : vector<64x4xf32> to vector<16x4xf32>
    %447 = arith.negf %446 : vector<16x4xf32>
    %448 = math.exp %447 : vector<16x4xf32>
    %cst_185 = arith.constant 1.000000e+00 : f32
    %449 = vector.broadcast %cst_185 : f32 to vector<16x4xf32>
    %450 = arith.addf %449, %448 : vector<16x4xf32>
    %451 = arith.divf %449, %450 : vector<16x4xf32>
    %452 = arith.mulf %443, %426 : vector<16x4xf32>
    %453 = arith.mulf %437, %445 : vector<16x4xf32>
    %454 = arith.addf %452, %453 : vector<16x4xf32>
    %455 = math.tanh %454 : vector<16x4xf32>
    %456 = arith.mulf %451, %455 : vector<16x4xf32>
    %c1_i32_186 = arith.constant 1 : i32
    %457 = arith.addi %c0_i32_179, %c1_i32_186 : i32
    %458 = vector.broadcast %457 : i32 to vector<1x4xi32>
    %459 = arith.cmpi eq, %361, %458 : vector<1x4xi32>
    %460 = vector.shape_cast %459 : vector<1x4xi1> to vector<1x4xi1>
    %461 = vector.broadcast %460 : vector<1x4xi1> to vector<16x4xi1>
    %462 = arith.select %461, %456, %426 : vector<16x4xi1>, vector<16x4xf32>
    %c1_i32_187 = arith.constant 1 : i32
    %463 = arith.index_cast %c1_i32_187 : i32 to index
    %c0_188 = arith.constant 0 : index
    %c0_189 = arith.constant 0 : index
    %464 = vector.load %arg20[%463, %c0_188, %c0_189] : memref<8x64x4xf32, #tpu.memory_space<vmem>>, vector<1x64x4xf32>
    %465 = vector.shape_cast %464 : vector<1x64x4xf32> to vector<64x4xf32>
    %cst_190 = arith.constant dense<0.000000e+00> : vector<64x4xf32>
    %466 = tpu.matmul %359, %456, %cst_190 {dimension_numbers = #tpu.dot_dimension_numbers<[1], [0], [0], [1], [0, 0, 1, 1], [], []>} : vector<64x16xf32>, vector<16x4xf32>, vector<64x4xf32> -> vector<64x4xf32>
    %467 = arith.addf %465, %466 : vector<64x4xf32>
    %468 = vector.extract_strided_slice %467 {offsets = [0, 0], sizes = [16, 4], strides = [1, 1]} : vector<64x4xf32> to vector<16x4xf32>
    %469 = arith.negf %468 : vector<16x4xf32>
    %470 = math.exp %469 : vector<16x4xf32>
    %cst_191 = arith.constant 1.000000e+00 : f32
    %471 = vector.broadcast %cst_191 : f32 to vector<16x4xf32>
    %472 = arith.addf %471, %470 : vector<16x4xf32>
    %473 = arith.divf %471, %472 : vector<16x4xf32>
    %474 = vector.extract_strided_slice %467 {offsets = [16, 0], sizes = [16, 4], strides = [1, 1]} : vector<64x4xf32> to vector<16x4xf32>
    %475 = arith.negf %474 : vector<16x4xf32>
    %476 = math.exp %475 : vector<16x4xf32>
    %cst_192 = arith.constant 1.000000e+00 : f32
    %477 = vector.broadcast %cst_192 : f32 to vector<16x4xf32>
    %478 = arith.addf %477, %476 : vector<16x4xf32>
    %479 = arith.divf %477, %478 : vector<16x4xf32>
    %480 = vector.extract_strided_slice %467 {offsets = [32, 0], sizes = [16, 4], strides = [1, 1]} : vector<64x4xf32> to vector<16x4xf32>
    %481 = math.tanh %480 : vector<16x4xf32>
    %482 = vector.extract_strided_slice %467 {offsets = [48, 0], sizes = [16, 4], strides = [1, 1]} : vector<64x4xf32> to vector<16x4xf32>
    %483 = arith.negf %482 : vector<16x4xf32>
    %484 = math.exp %483 : vector<16x4xf32>
    %cst_193 = arith.constant 1.000000e+00 : f32
    %485 = vector.broadcast %cst_193 : f32 to vector<16x4xf32>
    %486 = arith.addf %485, %484 : vector<16x4xf32>
    %487 = arith.divf %485, %486 : vector<16x4xf32>
    %488 = arith.mulf %479, %454 : vector<16x4xf32>
    %489 = arith.mulf %473, %481 : vector<16x4xf32>
    %490 = arith.addf %488, %489 : vector<16x4xf32>
    %491 = math.tanh %490 : vector<16x4xf32>
    %492 = arith.mulf %487, %491 : vector<16x4xf32>
    %c1_i32_194 = arith.constant 1 : i32
    %493 = arith.addi %c1_i32_187, %c1_i32_194 : i32
    %494 = vector.broadcast %493 : i32 to vector<1x4xi32>
    %495 = arith.cmpi eq, %361, %494 : vector<1x4xi32>
    %496 = vector.shape_cast %495 : vector<1x4xi1> to vector<1x4xi1>
    %497 = vector.broadcast %496 : vector<1x4xi1> to vector<16x4xi1>
    %498 = arith.select %497, %492, %462 : vector<16x4xi1>, vector<16x4xf32>
    %c2_i32_195 = arith.constant 2 : i32
    %499 = arith.index_cast %c2_i32_195 : i32 to index
    %c0_196 = arith.constant 0 : index
    %c0_197 = arith.constant 0 : index
    %500 = vector.load %arg20[%499, %c0_196, %c0_197] : memref<8x64x4xf32, #tpu.memory_space<vmem>>, vector<1x64x4xf32>
    %501 = vector.shape_cast %500 : vector<1x64x4xf32> to vector<64x4xf32>
    %cst_198 = arith.constant dense<0.000000e+00> : vector<64x4xf32>
    %502 = tpu.matmul %359, %492, %cst_198 {dimension_numbers = #tpu.dot_dimension_numbers<[1], [0], [0], [1], [0, 0, 1, 1], [], []>} : vector<64x16xf32>, vector<16x4xf32>, vector<64x4xf32> -> vector<64x4xf32>
    %503 = arith.addf %501, %502 : vector<64x4xf32>
    %504 = vector.extract_strided_slice %503 {offsets = [0, 0], sizes = [16, 4], strides = [1, 1]} : vector<64x4xf32> to vector<16x4xf32>
    %505 = arith.negf %504 : vector<16x4xf32>
    %506 = math.exp %505 : vector<16x4xf32>
    %cst_199 = arith.constant 1.000000e+00 : f32
    %507 = vector.broadcast %cst_199 : f32 to vector<16x4xf32>
    %508 = arith.addf %507, %506 : vector<16x4xf32>
    %509 = arith.divf %507, %508 : vector<16x4xf32>
    %510 = vector.extract_strided_slice %503 {offsets = [16, 0], sizes = [16, 4], strides = [1, 1]} : vector<64x4xf32> to vector<16x4xf32>
    %511 = arith.negf %510 : vector<16x4xf32>
    %512 = math.exp %511 : vector<16x4xf32>
    %cst_200 = arith.constant 1.000000e+00 : f32
    %513 = vector.broadcast %cst_200 : f32 to vector<16x4xf32>
    %514 = arith.addf %513, %512 : vector<16x4xf32>
    %515 = arith.divf %513, %514 : vector<16x4xf32>
    %516 = vector.extract_strided_slice %503 {offsets = [32, 0], sizes = [16, 4], strides = [1, 1]} : vector<64x4xf32> to vector<16x4xf32>
    %517 = math.tanh %516 : vector<16x4xf32>
    %518 = vector.extract_strided_slice %503 {offsets = [48, 0], sizes = [16, 4], strides = [1, 1]} : vector<64x4xf32> to vector<16x4xf32>
    %519 = arith.negf %518 : vector<16x4xf32>
    %520 = math.exp %519 : vector<16x4xf32>
    %cst_201 = arith.constant 1.000000e+00 : f32
    %521 = vector.broadcast %cst_201 : f32 to vector<16x4xf32>
    %522 = arith.addf %521, %520 : vector<16x4xf32>
    %523 = arith.divf %521, %522 : vector<16x4xf32>
    %524 = arith.mulf %515, %490 : vector<16x4xf32>
    %525 = arith.mulf %509, %517 : vector<16x4xf32>
    %526 = arith.addf %524, %525 : vector<16x4xf32>
    %527 = math.tanh %526 : vector<16x4xf32>
    %528 = arith.mulf %523, %527 : vector<16x4xf32>
    %c1_i32_202 = arith.constant 1 : i32
    %529 = arith.addi %c2_i32_195, %c1_i32_202 : i32
    %530 = vector.broadcast %529 : i32 to vector<1x4xi32>
    %531 = arith.cmpi eq, %361, %530 : vector<1x4xi32>
    %532 = vector.shape_cast %531 : vector<1x4xi1> to vector<1x4xi1>
    %533 = vector.broadcast %532 : vector<1x4xi1> to vector<16x4xi1>
    %534 = arith.select %533, %528, %498 : vector<16x4xi1>, vector<16x4xf32>
    %c3_i32_203 = arith.constant 3 : i32
    %535 = arith.index_cast %c3_i32_203 : i32 to index
    %c0_204 = arith.constant 0 : index
    %c0_205 = arith.constant 0 : index
    %536 = vector.load %arg20[%535, %c0_204, %c0_205] : memref<8x64x4xf32, #tpu.memory_space<vmem>>, vector<1x64x4xf32>
    %537 = vector.shape_cast %536 : vector<1x64x4xf32> to vector<64x4xf32>
    %cst_206 = arith.constant dense<0.000000e+00> : vector<64x4xf32>
    %538 = tpu.matmul %359, %528, %cst_206 {dimension_numbers = #tpu.dot_dimension_numbers<[1], [0], [0], [1], [0, 0, 1, 1], [], []>} : vector<64x16xf32>, vector<16x4xf32>, vector<64x4xf32> -> vector<64x4xf32>
    %539 = arith.addf %537, %538 : vector<64x4xf32>
    %540 = vector.extract_strided_slice %539 {offsets = [0, 0], sizes = [16, 4], strides = [1, 1]} : vector<64x4xf32> to vector<16x4xf32>
    %541 = arith.negf %540 : vector<16x4xf32>
    %542 = math.exp %541 : vector<16x4xf32>
    %cst_207 = arith.constant 1.000000e+00 : f32
    %543 = vector.broadcast %cst_207 : f32 to vector<16x4xf32>
    %544 = arith.addf %543, %542 : vector<16x4xf32>
    %545 = arith.divf %543, %544 : vector<16x4xf32>
    %546 = vector.extract_strided_slice %539 {offsets = [16, 0], sizes = [16, 4], strides = [1, 1]} : vector<64x4xf32> to vector<16x4xf32>
    %547 = arith.negf %546 : vector<16x4xf32>
    %548 = math.exp %547 : vector<16x4xf32>
    %cst_208 = arith.constant 1.000000e+00 : f32
    %549 = vector.broadcast %cst_208 : f32 to vector<16x4xf32>
    %550 = arith.addf %549, %548 : vector<16x4xf32>
    %551 = arith.divf %549, %550 : vector<16x4xf32>
    %552 = vector.extract_strided_slice %539 {offsets = [32, 0], sizes = [16, 4], strides = [1, 1]} : vector<64x4xf32> to vector<16x4xf32>
    %553 = math.tanh %552 : vector<16x4xf32>
    %554 = vector.extract_strided_slice %539 {offsets = [48, 0], sizes = [16, 4], strides = [1, 1]} : vector<64x4xf32> to vector<16x4xf32>
    %555 = arith.negf %554 : vector<16x4xf32>
    %556 = math.exp %555 : vector<16x4xf32>
    %cst_209 = arith.constant 1.000000e+00 : f32
    %557 = vector.broadcast %cst_209 : f32 to vector<16x4xf32>
    %558 = arith.addf %557, %556 : vector<16x4xf32>
    %559 = arith.divf %557, %558 : vector<16x4xf32>
    %560 = arith.mulf %551, %526 : vector<16x4xf32>
    %561 = arith.mulf %545, %553 : vector<16x4xf32>
    %562 = arith.addf %560, %561 : vector<16x4xf32>
    %563 = math.tanh %562 : vector<16x4xf32>
    %564 = arith.mulf %559, %563 : vector<16x4xf32>
    %c1_i32_210 = arith.constant 1 : i32
    %565 = arith.addi %c3_i32_203, %c1_i32_210 : i32
    %566 = vector.broadcast %565 : i32 to vector<1x4xi32>
    %567 = arith.cmpi eq, %361, %566 : vector<1x4xi32>
    %568 = vector.shape_cast %567 : vector<1x4xi1> to vector<1x4xi1>
    %569 = vector.broadcast %568 : vector<1x4xi1> to vector<16x4xi1>
    %570 = arith.select %569, %564, %534 : vector<16x4xi1>, vector<16x4xf32>
    %c4_i32_211 = arith.constant 4 : i32
    %571 = arith.index_cast %c4_i32_211 : i32 to index
    %c0_212 = arith.constant 0 : index
    %c0_213 = arith.constant 0 : index
    %572 = vector.load %arg20[%571, %c0_212, %c0_213] : memref<8x64x4xf32, #tpu.memory_space<vmem>>, vector<1x64x4xf32>
    %573 = vector.shape_cast %572 : vector<1x64x4xf32> to vector<64x4xf32>
    %cst_214 = arith.constant dense<0.000000e+00> : vector<64x4xf32>
    %574 = tpu.matmul %359, %564, %cst_214 {dimension_numbers = #tpu.dot_dimension_numbers<[1], [0], [0], [1], [0, 0, 1, 1], [], []>} : vector<64x16xf32>, vector<16x4xf32>, vector<64x4xf32> -> vector<64x4xf32>
    %575 = arith.addf %573, %574 : vector<64x4xf32>
    %576 = vector.extract_strided_slice %575 {offsets = [0, 0], sizes = [16, 4], strides = [1, 1]} : vector<64x4xf32> to vector<16x4xf32>
    %577 = arith.negf %576 : vector<16x4xf32>
    %578 = math.exp %577 : vector<16x4xf32>
    %cst_215 = arith.constant 1.000000e+00 : f32
    %579 = vector.broadcast %cst_215 : f32 to vector<16x4xf32>
    %580 = arith.addf %579, %578 : vector<16x4xf32>
    %581 = arith.divf %579, %580 : vector<16x4xf32>
    %582 = vector.extract_strided_slice %575 {offsets = [16, 0], sizes = [16, 4], strides = [1, 1]} : vector<64x4xf32> to vector<16x4xf32>
    %583 = arith.negf %582 : vector<16x4xf32>
    %584 = math.exp %583 : vector<16x4xf32>
    %cst_216 = arith.constant 1.000000e+00 : f32
    %585 = vector.broadcast %cst_216 : f32 to vector<16x4xf32>
    %586 = arith.addf %585, %584 : vector<16x4xf32>
    %587 = arith.divf %585, %586 : vector<16x4xf32>
    %588 = vector.extract_strided_slice %575 {offsets = [32, 0], sizes = [16, 4], strides = [1, 1]} : vector<64x4xf32> to vector<16x4xf32>
    %589 = math.tanh %588 : vector<16x4xf32>
    %590 = vector.extract_strided_slice %575 {offsets = [48, 0], sizes = [16, 4], strides = [1, 1]} : vector<64x4xf32> to vector<16x4xf32>
    %591 = arith.negf %590 : vector<16x4xf32>
    %592 = math.exp %591 : vector<16x4xf32>
    %cst_217 = arith.constant 1.000000e+00 : f32
    %593 = vector.broadcast %cst_217 : f32 to vector<16x4xf32>
    %594 = arith.addf %593, %592 : vector<16x4xf32>
    %595 = arith.divf %593, %594 : vector<16x4xf32>
    %596 = arith.mulf %587, %562 : vector<16x4xf32>
    %597 = arith.mulf %581, %589 : vector<16x4xf32>
    %598 = arith.addf %596, %597 : vector<16x4xf32>
    %599 = math.tanh %598 : vector<16x4xf32>
    %600 = arith.mulf %595, %599 : vector<16x4xf32>
    %c1_i32_218 = arith.constant 1 : i32
    %601 = arith.addi %c4_i32_211, %c1_i32_218 : i32
    %602 = vector.broadcast %601 : i32 to vector<1x4xi32>
    %603 = arith.cmpi eq, %361, %602 : vector<1x4xi32>
    %604 = vector.shape_cast %603 : vector<1x4xi1> to vector<1x4xi1>
    %605 = vector.broadcast %604 : vector<1x4xi1> to vector<16x4xi1>
    %606 = arith.select %605, %600, %570 : vector<16x4xi1>, vector<16x4xf32>
    %c5_i32_219 = arith.constant 5 : i32
    %607 = arith.index_cast %c5_i32_219 : i32 to index
    %c0_220 = arith.constant 0 : index
    %c0_221 = arith.constant 0 : index
    %608 = vector.load %arg20[%607, %c0_220, %c0_221] : memref<8x64x4xf32, #tpu.memory_space<vmem>>, vector<1x64x4xf32>
    %609 = vector.shape_cast %608 : vector<1x64x4xf32> to vector<64x4xf32>
    %cst_222 = arith.constant dense<0.000000e+00> : vector<64x4xf32>
    %610 = tpu.matmul %359, %600, %cst_222 {dimension_numbers = #tpu.dot_dimension_numbers<[1], [0], [0], [1], [0, 0, 1, 1], [], []>} : vector<64x16xf32>, vector<16x4xf32>, vector<64x4xf32> -> vector<64x4xf32>
    %611 = arith.addf %609, %610 : vector<64x4xf32>
    %612 = vector.extract_strided_slice %611 {offsets = [0, 0], sizes = [16, 4], strides = [1, 1]} : vector<64x4xf32> to vector<16x4xf32>
    %613 = arith.negf %612 : vector<16x4xf32>
    %614 = math.exp %613 : vector<16x4xf32>
    %cst_223 = arith.constant 1.000000e+00 : f32
    %615 = vector.broadcast %cst_223 : f32 to vector<16x4xf32>
    %616 = arith.addf %615, %614 : vector<16x4xf32>
    %617 = arith.divf %615, %616 : vector<16x4xf32>
    %618 = vector.extract_strided_slice %611 {offsets = [16, 0], sizes = [16, 4], strides = [1, 1]} : vector<64x4xf32> to vector<16x4xf32>
    %619 = arith.negf %618 : vector<16x4xf32>
    %620 = math.exp %619 : vector<16x4xf32>
    %cst_224 = arith.constant 1.000000e+00 : f32
    %621 = vector.broadcast %cst_224 : f32 to vector<16x4xf32>
    %622 = arith.addf %621, %620 : vector<16x4xf32>
    %623 = arith.divf %621, %622 : vector<16x4xf32>
    %624 = vector.extract_strided_slice %611 {offsets = [32, 0], sizes = [16, 4], strides = [1, 1]} : vector<64x4xf32> to vector<16x4xf32>
    %625 = math.tanh %624 : vector<16x4xf32>
    %626 = vector.extract_strided_slice %611 {offsets = [48, 0], sizes = [16, 4], strides = [1, 1]} : vector<64x4xf32> to vector<16x4xf32>
    %627 = arith.negf %626 : vector<16x4xf32>
    %628 = math.exp %627 : vector<16x4xf32>
    %cst_225 = arith.constant 1.000000e+00 : f32
    %629 = vector.broadcast %cst_225 : f32 to vector<16x4xf32>
    %630 = arith.addf %629, %628 : vector<16x4xf32>
    %631 = arith.divf %629, %630 : vector<16x4xf32>
    %632 = arith.mulf %623, %598 : vector<16x4xf32>
    %633 = arith.mulf %617, %625 : vector<16x4xf32>
    %634 = arith.addf %632, %633 : vector<16x4xf32>
    %635 = math.tanh %634 : vector<16x4xf32>
    %636 = arith.mulf %631, %635 : vector<16x4xf32>
    %c1_i32_226 = arith.constant 1 : i32
    %637 = arith.addi %c5_i32_219, %c1_i32_226 : i32
    %638 = vector.broadcast %637 : i32 to vector<1x4xi32>
    %639 = arith.cmpi eq, %361, %638 : vector<1x4xi32>
    %640 = vector.shape_cast %639 : vector<1x4xi1> to vector<1x4xi1>
    %641 = vector.broadcast %640 : vector<1x4xi1> to vector<16x4xi1>
    %642 = arith.select %641, %636, %606 : vector<16x4xi1>, vector<16x4xf32>
    %c6_i32_227 = arith.constant 6 : i32
    %643 = arith.index_cast %c6_i32_227 : i32 to index
    %c0_228 = arith.constant 0 : index
    %c0_229 = arith.constant 0 : index
    %644 = vector.load %arg20[%643, %c0_228, %c0_229] : memref<8x64x4xf32, #tpu.memory_space<vmem>>, vector<1x64x4xf32>
    %645 = vector.shape_cast %644 : vector<1x64x4xf32> to vector<64x4xf32>
    %cst_230 = arith.constant dense<0.000000e+00> : vector<64x4xf32>
    %646 = tpu.matmul %359, %636, %cst_230 {dimension_numbers = #tpu.dot_dimension_numbers<[1], [0], [0], [1], [0, 0, 1, 1], [], []>} : vector<64x16xf32>, vector<16x4xf32>, vector<64x4xf32> -> vector<64x4xf32>
    %647 = arith.addf %645, %646 : vector<64x4xf32>
    %648 = vector.extract_strided_slice %647 {offsets = [0, 0], sizes = [16, 4], strides = [1, 1]} : vector<64x4xf32> to vector<16x4xf32>
    %649 = arith.negf %648 : vector<16x4xf32>
    %650 = math.exp %649 : vector<16x4xf32>
    %cst_231 = arith.constant 1.000000e+00 : f32
    %651 = vector.broadcast %cst_231 : f32 to vector<16x4xf32>
    %652 = arith.addf %651, %650 : vector<16x4xf32>
    %653 = arith.divf %651, %652 : vector<16x4xf32>
    %654 = vector.extract_strided_slice %647 {offsets = [16, 0], sizes = [16, 4], strides = [1, 1]} : vector<64x4xf32> to vector<16x4xf32>
    %655 = arith.negf %654 : vector<16x4xf32>
    %656 = math.exp %655 : vector<16x4xf32>
    %cst_232 = arith.constant 1.000000e+00 : f32
    %657 = vector.broadcast %cst_232 : f32 to vector<16x4xf32>
    %658 = arith.addf %657, %656 : vector<16x4xf32>
    %659 = arith.divf %657, %658 : vector<16x4xf32>
    %660 = vector.extract_strided_slice %647 {offsets = [32, 0], sizes = [16, 4], strides = [1, 1]} : vector<64x4xf32> to vector<16x4xf32>
    %661 = math.tanh %660 : vector<16x4xf32>
    %662 = vector.extract_strided_slice %647 {offsets = [48, 0], sizes = [16, 4], strides = [1, 1]} : vector<64x4xf32> to vector<16x4xf32>
    %663 = arith.negf %662 : vector<16x4xf32>
    %664 = math.exp %663 : vector<16x4xf32>
    %cst_233 = arith.constant 1.000000e+00 : f32
    %665 = vector.broadcast %cst_233 : f32 to vector<16x4xf32>
    %666 = arith.addf %665, %664 : vector<16x4xf32>
    %667 = arith.divf %665, %666 : vector<16x4xf32>
    %668 = arith.mulf %659, %634 : vector<16x4xf32>
    %669 = arith.mulf %653, %661 : vector<16x4xf32>
    %670 = arith.addf %668, %669 : vector<16x4xf32>
    %671 = math.tanh %670 : vector<16x4xf32>
    %672 = arith.mulf %667, %671 : vector<16x4xf32>
    %c1_i32_234 = arith.constant 1 : i32
    %673 = arith.addi %c6_i32_227, %c1_i32_234 : i32
    %674 = vector.broadcast %673 : i32 to vector<1x4xi32>
    %675 = arith.cmpi eq, %361, %674 : vector<1x4xi32>
    %676 = vector.shape_cast %675 : vector<1x4xi1> to vector<1x4xi1>
    %677 = vector.broadcast %676 : vector<1x4xi1> to vector<16x4xi1>
    %678 = arith.select %677, %672, %642 : vector<16x4xi1>, vector<16x4xf32>
    %c7_i32_235 = arith.constant 7 : i32
    %679 = arith.index_cast %c7_i32_235 : i32 to index
    %c0_236 = arith.constant 0 : index
    %c0_237 = arith.constant 0 : index
    %680 = vector.load %arg20[%679, %c0_236, %c0_237] : memref<8x64x4xf32, #tpu.memory_space<vmem>>, vector<1x64x4xf32>
    %681 = vector.shape_cast %680 : vector<1x64x4xf32> to vector<64x4xf32>
    %cst_238 = arith.constant dense<0.000000e+00> : vector<64x4xf32>
    %682 = tpu.matmul %359, %672, %cst_238 {dimension_numbers = #tpu.dot_dimension_numbers<[1], [0], [0], [1], [0, 0, 1, 1], [], []>} : vector<64x16xf32>, vector<16x4xf32>, vector<64x4xf32> -> vector<64x4xf32>
    %683 = arith.addf %681, %682 : vector<64x4xf32>
    %684 = vector.extract_strided_slice %683 {offsets = [0, 0], sizes = [16, 4], strides = [1, 1]} : vector<64x4xf32> to vector<16x4xf32>
    %685 = arith.negf %684 : vector<16x4xf32>
    %686 = math.exp %685 : vector<16x4xf32>
    %cst_239 = arith.constant 1.000000e+00 : f32
    %687 = vector.broadcast %cst_239 : f32 to vector<16x4xf32>
    %688 = arith.addf %687, %686 : vector<16x4xf32>
    %689 = arith.divf %687, %688 : vector<16x4xf32>
    %690 = vector.extract_strided_slice %683 {offsets = [16, 0], sizes = [16, 4], strides = [1, 1]} : vector<64x4xf32> to vector<16x4xf32>
    %691 = arith.negf %690 : vector<16x4xf32>
    %692 = math.exp %691 : vector<16x4xf32>
    %cst_240 = arith.constant 1.000000e+00 : f32
    %693 = vector.broadcast %cst_240 : f32 to vector<16x4xf32>
    %694 = arith.addf %693, %692 : vector<16x4xf32>
    %695 = arith.divf %693, %694 : vector<16x4xf32>
    %696 = vector.extract_strided_slice %683 {offsets = [32, 0], sizes = [16, 4], strides = [1, 1]} : vector<64x4xf32> to vector<16x4xf32>
    %697 = math.tanh %696 : vector<16x4xf32>
    %698 = vector.extract_strided_slice %683 {offsets = [48, 0], sizes = [16, 4], strides = [1, 1]} : vector<64x4xf32> to vector<16x4xf32>
    %699 = arith.negf %698 : vector<16x4xf32>
    %700 = math.exp %699 : vector<16x4xf32>
    %cst_241 = arith.constant 1.000000e+00 : f32
    %701 = vector.broadcast %cst_241 : f32 to vector<16x4xf32>
    %702 = arith.addf %701, %700 : vector<16x4xf32>
    %703 = arith.divf %701, %702 : vector<16x4xf32>
    %704 = arith.mulf %695, %670 : vector<16x4xf32>
    %705 = arith.mulf %689, %697 : vector<16x4xf32>
    %706 = arith.addf %704, %705 : vector<16x4xf32>
    %707 = math.tanh %706 : vector<16x4xf32>
    %708 = arith.mulf %703, %707 : vector<16x4xf32>
    %c1_i32_242 = arith.constant 1 : i32
    %709 = arith.addi %c7_i32_235, %c1_i32_242 : i32
    %710 = vector.broadcast %709 : i32 to vector<1x4xi32>
    %711 = arith.cmpi eq, %361, %710 : vector<1x4xi32>
    %712 = vector.shape_cast %711 : vector<1x4xi1> to vector<1x4xi1>
    %713 = vector.broadcast %712 : vector<1x4xi1> to vector<16x4xi1>
    %714 = arith.select %713, %708, %678 : vector<16x4xi1>, vector<16x4xf32>
    %c8_i32_243 = arith.constant 8 : i32
    %c8 = arith.constant 8 : index
    %c0_244 = arith.constant 0 : index
    %715 = vector.load %arg21[%c8, %c0_244] : memref<24x4xf32, #tpu.memory_space<vmem>>, vector<16x4xf32>
    tpu.vector_store %arg21[%c8, %c0_244], %714 {strides = array<i32>} : memref<24x4xf32, #tpu.memory_space<vmem>>, vector<16x4xf32>,
    %c0_245 = arith.constant 0 : index
    %c0_246 = arith.constant 0 : index
    %716 = vector.load %arg21[%c0_245, %c0_246] : memref<24x4xf32, #tpu.memory_space<vmem>>, vector<24x4xf32>
    %c0_247 = arith.constant 0 : index
    %c0_248 = arith.constant 0 : index
    %717 = vector.load %arg10[%c0_247, %c0_248] : memref<16x24xf32, #tpu.memory_space<vmem>>, vector<16x24xf32>
    %cst_249 = arith.constant dense<0.000000e+00> : vector<16x4xf32>
    %718 = tpu.matmul %717, %716, %cst_249 {dimension_numbers = #tpu.dot_dimension_numbers<[1], [0], [0], [1], [0, 0, 1, 1], [], []>} : vector<16x24xf32>, vector<24x4xf32>, vector<16x4xf32> -> vector<16x4xf32>
    %c0_250 = arith.constant 0 : index
    %c0_251 = arith.constant 0 : index
    %719 = vector.load %arg11[%c0_250, %c0_251] : memref<16x1xf32, #tpu.memory_space<vmem>>, vector<16x1xf32>
    %720 = vector.broadcast %719 : vector<16x1xf32> to vector<16x4xf32>
    %721 = arith.addf %718, %720 : vector<16x4xf32>
    %cst_252 = arith.constant dense<0.000000e+00> : vector<16xf32>
    %722 = vector.multi_reduction <add>, %721, %cst_252 [1] : vector<16x4xf32> to vector<16xf32>
    %723 = vector.shape_cast %722 : vector<16xf32> to vector<16x1xf32>
    %cst_253 = arith.constant 4.000000e+00 : f32
    %724 = vector.broadcast %cst_253 : f32 to vector<16x1xf32>
    %725 = arith.divf %723, %724 : vector<16x1xf32>
    %726 = vector.broadcast %725 : vector<16x1xf32> to vector<16x4xf32>
    %727 = arith.subf %721, %726 : vector<16x4xf32>
    %728 = arith.mulf %727, %727 : vector<16x4xf32>
    %cst_254 = arith.constant dense<0.000000e+00> : vector<16xf32>
    %729 = vector.multi_reduction <add>, %728, %cst_254 [1] : vector<16x4xf32> to vector<16xf32>
    %730 = vector.shape_cast %729 : vector<16xf32> to vector<16x1xf32>
    %cst_255 = arith.constant 4.000000e+00 : f32
    %731 = vector.broadcast %cst_255 : f32 to vector<16x1xf32>
    %732 = arith.divf %730, %731 : vector<16x1xf32>
    %733 = vector.broadcast %725 : vector<16x1xf32> to vector<16x4xf32>
    %734 = arith.subf %721, %733 : vector<16x4xf32>
    %cst_256 = arith.constant 9.99999974E-6 : f32
    %735 = vector.broadcast %cst_256 : f32 to vector<16x1xf32>
    %736 = arith.addf %732, %735 : vector<16x1xf32>
    %737 = math.rsqrt %736 : vector<16x1xf32>
    %738 = vector.broadcast %737 : vector<16x1xf32> to vector<16x4xf32>
    %739 = arith.mulf %734, %738 : vector<16x4xf32>
    %c0_257 = arith.constant 0 : index
    %c0_258 = arith.constant 0 : index
    %740 = vector.load %arg12[%c0_257, %c0_258] : memref<16x1xf32, #tpu.memory_space<vmem>>, vector<16x1xf32>
    %741 = vector.broadcast %740 : vector<16x1xf32> to vector<16x4xf32>
    %742 = arith.mulf %741, %739 : vector<16x4xf32>
    %c0_259 = arith.constant 0 : index
    %c0_260 = arith.constant 0 : index
    %743 = vector.load %arg13[%c0_259, %c0_260] : memref<16x1xf32, #tpu.memory_space<vmem>>, vector<16x1xf32>
    %744 = vector.broadcast %743 : vector<16x1xf32> to vector<16x4xf32>
    %745 = arith.addf %742, %744 : vector<16x4xf32>
    %cst_261 = arith.constant 0.000000e+00 : f32
    %746 = vector.broadcast %cst_261 : f32 to vector<16x4xf32>
    %747 = arith.cmpf ogt, %745, %746 : vector<16x4xf32>
    %748 = math.exp %745 : vector<16x4xf32>
    %cst_262 = arith.constant 1.000000e+00 : f32
    %749 = vector.broadcast %cst_262 : f32 to vector<16x4xf32>
    %750 = arith.subf %748, %749 : vector<16x4xf32>
    %cst_263 = arith.constant 1.67326319 : f32
    %751 = vector.broadcast %cst_263 : f32 to vector<16x4xf32>
    %752 = arith.mulf %751, %750 : vector<16x4xf32>
    %753 = arith.select %747, %745, %752 : vector<16x4xi1>, vector<16x4xf32>
    %cst_264 = arith.constant 1.05070102 : f32
    %754 = vector.broadcast %cst_264 : f32 to vector<16x4xf32>
    %755 = arith.mulf %754, %753 : vector<16x4xf32>
    %c0_265 = arith.constant 0 : index
    %c0_266 = arith.constant 0 : index
    %756 = vector.load %arg14[%c0_265, %c0_266] : memref<1x16xf32, #tpu.memory_space<vmem>>, vector<1x16xf32>
    %cst_267 = arith.constant dense<0.000000e+00> : vector<1x4xf32>
    %757 = tpu.matmul %756, %755, %cst_267 {dimension_numbers = #tpu.dot_dimension_numbers<[1], [0], [0], [1], [0, 0, 1, 1], [], []>} : vector<1x16xf32>, vector<16x4xf32>, vector<1x4xf32> -> vector<1x4xf32>
    %c0_268 = arith.constant 0 : index
    %c0_269 = arith.constant 0 : index
    %758 = vector.load %arg15[%c0_268, %c0_269] : memref<1x1xf32, #tpu.memory_space<vmem>>, vector<1x1xf32>
    %759 = vector.broadcast %758 : vector<1x1xf32> to vector<1x4xf32>
    %760 = arith.addf %757, %759 : vector<1x4xf32>
    %cst_270 = arith.constant dense<0.000000e+00> : vector<1xf32>
    %761 = vector.multi_reduction <add>, %760, %cst_270 [1] : vector<1x4xf32> to vector<1xf32>
    %762 = vector.shape_cast %761 : vector<1xf32> to vector<1x1xf32>
    %cst_271 = arith.constant 4.000000e+00 : f32
    %763 = vector.broadcast %cst_271 : f32 to vector<1x1xf32>
    %764 = arith.divf %762, %763 : vector<1x1xf32>
    %765 = vector.broadcast %764 : vector<1x1xf32> to vector<1x4xf32>
    %766 = arith.subf %760, %765 : vector<1x4xf32>
    %767 = arith.mulf %766, %766 : vector<1x4xf32>
    %cst_272 = arith.constant dense<0.000000e+00> : vector<1xf32>
    %768 = vector.multi_reduction <add>, %767, %cst_272 [1] : vector<1x4xf32> to vector<1xf32>
    %769 = vector.shape_cast %768 : vector<1xf32> to vector<1x1xf32>
    %cst_273 = arith.constant 4.000000e+00 : f32
    %770 = vector.broadcast %cst_273 : f32 to vector<1x1xf32>
    %771 = arith.divf %769, %770 : vector<1x1xf32>
    %772 = vector.broadcast %764 : vector<1x1xf32> to vector<1x4xf32>
    %773 = arith.subf %760, %772 : vector<1x4xf32>
    %cst_274 = arith.constant 9.99999974E-6 : f32
    %774 = vector.broadcast %cst_274 : f32 to vector<1x1xf32>
    %775 = arith.addf %771, %774 : vector<1x1xf32>
    %776 = math.rsqrt %775 : vector<1x1xf32>
    %777 = vector.broadcast %776 : vector<1x1xf32> to vector<1x4xf32>
    %778 = arith.mulf %773, %777 : vector<1x4xf32>
    %c0_275 = arith.constant 0 : index
    %c0_276 = arith.constant 0 : index
    %779 = vector.load %arg16[%c0_275, %c0_276] : memref<1x1xf32, #tpu.memory_space<vmem>>, vector<1x1xf32>
    %780 = vector.broadcast %779 : vector<1x1xf32> to vector<1x4xf32>
    %781 = arith.mulf %780, %778 : vector<1x4xf32>
    %c0_277 = arith.constant 0 : index
    %c0_278 = arith.constant 0 : index
    %782 = vector.load %arg17[%c0_277, %c0_278] : memref<1x1xf32, #tpu.memory_space<vmem>>, vector<1x1xf32>
    %783 = vector.broadcast %782 : vector<1x1xf32> to vector<1x4xf32>
    %784 = arith.addf %781, %783 : vector<1x4xf32>
    %cst_279 = arith.constant 0.000000e+00 : f32
    %785 = vector.broadcast %cst_279 : f32 to vector<1x4xf32>
    %786 = arith.cmpf ogt, %784, %785 : vector<1x4xf32>
    %787 = math.exp %784 : vector<1x4xf32>
    %cst_280 = arith.constant 1.000000e+00 : f32
    %788 = vector.broadcast %cst_280 : f32 to vector<1x4xf32>
    %789 = arith.subf %787, %788 : vector<1x4xf32>
    %cst_281 = arith.constant 1.67326319 : f32
    %790 = vector.broadcast %cst_281 : f32 to vector<1x4xf32>
    %791 = arith.mulf %790, %789 : vector<1x4xf32>
    %792 = arith.select %786, %784, %791 : vector<1x4xi1>, vector<1x4xf32>
    %cst_282 = arith.constant 1.05070102 : f32
    %793 = vector.broadcast %cst_282 : f32 to vector<1x4xf32>
    %794 = arith.mulf %793, %792 : vector<1x4xf32>
    %c0_283 = arith.constant 0 : index
    %c0_284 = arith.constant 0 : index
    %795 = vector.load %arg18[%c0_283, %c0_284] : memref<1x4xf32, #tpu.memory_space<vmem>>, vector<1x4xf32>
    tpu.vector_store %arg18[%c0_283, %c0_284], %794 {strides = array<i32>} : memref<1x4xf32, #tpu.memory_space<vmem>>, vector<1x4xf32>,
    return
  }
}

</mosaic_0001>

<bundles_post_ra>
// kernel: tpu_custom_call.1
= control target key start
LH: loop header
LB: loop body
LE: loop exit
PB: predicated region body
PF: predicated region fallthrough
CT: control target
= control target key end

     0   :  { %s7431_s0 = inlined_call_operand.vmem [shape: f32[8,6,4], index: 0, kind: input, shape index: {}]   ;;  %s7432_s1 = inlined_call_operand.vmem [shape: s32[1,4], index: 1, kind: input, shape index: {}]   ;;  %s7433_s2 = inlined_call_operand.vmem [shape: f32[8,10,4], index: 2, kind: input, shape index: {}]   ;;  %s7434_s3 = inlined_call_operand.vmem [shape: s32[1,4], index: 3, kind: input, shape index: {}]   ;;  %s7435_s4 = inlined_call_operand.vmem [shape: f32[32,6], index: 4, kind: input, shape index: {}]   ;;  %s7436_s5 = inlined_call_operand.vmem [shape: f32[32,8], index: 5, kind: input, shape index: {}]   ;;  %s7437_s6 = inlined_call_operand.vmem [shape: f32[32,1], index: 6, kind: input, shape index: {}]   ;;  %s7438_s7 = inlined_call_operand.vmem [shape: f32[64,10], index: 7, kind: input, shape index: {}]   ;;  %s7439_s8 = inlined_call_operand.vmem [shape: f32[64,16], index: 8, kind: input, shape index: {}]   ;;  %s7440_s9 = inlined_call_operand.vmem [shape: f32[64,1], index: 9, kind: input, shape index: {}]   ;;  %s7441_s10 = inlined_call_operand.vmem [shape: f32[16,24], index: 10, kind: input, shape index: {}]   ;;  %s7442_s11 = inlined_call_operand.vmem [shape: f32[16,1], index: 11, kind: input, shape index: {}]   ;;  %s7443_s12 = inlined_call_operand.vmem [shape: f32[16,1], index: 12, kind: input, shape index: {}]   ;;  %s7444_s13 = inlined_call_operand.vmem [shape: f32[16,1], index: 13, kind: input, shape index: {}]   ;;  %s7445_s14 = inlined_call_operand.vmem [shape: f32[1,16], index: 14, kind: input, shape index: {}]   ;;  %s7446_s15 = inlined_call_operand.<no memory space> [shape: f32[1,1], index: 15, kind: input, shape index: {}]   ;;  %s7447_s18 = inlined_call_operand.hbm [shape: f32[1,4], index: 18, kind: output, shape index: {}]   ;;  %s7448_s16 = inlined_call_operand.<no memory space> [shape: f32[1,1], index: 16, kind: input, shape index: {}]   ;;  %s7449_s17 = inlined_call_operand.<no memory space> [shape: f32[1,1], index: 17, kind: input, shape index: {}]  }
   0x1   :  { %7453 = sst [smem:[#allocation11_spill]] %s7431_s0  ;;  %v23_v0 = vstv %s7446_s15  ;;  %v25_v1 = vstv %s7448_s16  ;;  %v27_v2 = vstv %s7449_s17 }
   0x2   :  { %7454 = sst [smem:[#allocation12_spill]] %s7432_s1  ;;  %24 = vst [vmem:[#allocation5] sm:$0x1] %v23_v0  ;;  %26 = vst [vmem:[#allocation6] sm:$0x1] %v25_v1 }
   0x3   :  { %7455 = sst [smem:[#allocation13_spill]] %s7433_s2  ;;  %28 = vst [vmem:[#allocation7] sm:$0x1] %v27_v2 }
   0x4   :  { %s7456_s21 = sld [smem:[#allocation11_spill]]  ;;  %vm113_vm0 = vcmask 1045504   ;;  %v6202_v5 = vld [vmem:[%s7435_s4] sm:$0xff]  ;;  %vm100_vm1 = vcmask 48128   ;;  %v6209_v6 = vld [vmem:[%s7435_s4 + $0x8] sm:$0xff]  ;;  %v6217_v7 = vld [vmem:[%s7435_s4 + $0x10] sm:$0xff] }
   0x5   :  { %5252 = vmatprep.mubr.msk.f32.mxu0 %vm100_vm1, %v6202_v5  ;;  %5260 = vmatprep.mubr.msk.f32.mxu1 %vm100_vm1, %v6202_v5  ;;  %v6239_v10 = vld [vmem:[%s7435_s4 + $0x18] sm:$0xff] }
   0xa   :  { %v79_v3 = vld [vmem:[%s7456_s21] sm:$0x3f]  ;;  %v4701_v4 = vld [vmem:[%s7456_s21 + $0x8] sm:$0x3f]  ;;  %v4707_v8 = vld [vmem:[%s7456_s21 + $0x10] sm:$0x3f] }
   0xb   :  { %5250 = vmatprep.subr.msk.mxu0 %vm113_vm0, %v79_v3  ;;  %5258 = vmatprep.subr.msk.mxu1 %vm113_vm0, %v4701_v4  ;;  %v4713_v9 = vld [vmem:[%s7456_s21 + $0x18] sm:$0x3f]  ;;  %v4719_v11 = vld [vmem:[%s7456_s21 + $0x20] sm:$0x3f]  ;;  %v4725_v12 = vld [vmem:[%s7456_s21 + $0x28] sm:$0x3f] }
   0xc   :  { %5251 = vmatpush3.msk.msra.mxu0 %vm113_vm0, %v79_v3  ;;  %5259 = vmatpush3.msk.msra.mxu1 %vm113_vm0, %v4701_v4 }
   0xd   :  { %5253 = vmatmul.mubr.msk.f32.vlgmr.msra.gmra.mxu0 %vm100_vm1, %v6209_v6  ;;  %5261 = vmatmul.mubr.msk.f32.vlgmr.msra.gmra.mxu1 %vm100_vm1, %v6209_v6 }
   0xe   :  { %5255 = vmatprep.mubr.msk.f32.mxu0 %vm100_vm1, %v6217_v7  ;;  %5263 = vmatprep.mubr.msk.f32.mxu1 %vm100_vm1, %v6217_v7 }
   0xf   :  { %5266 = vmatprep.subr.msk.mxu0 %vm113_vm0, %v4707_v8  ;;  %5274 = vmatprep.subr.msk.mxu1 %vm113_vm0, %v4713_v9 }
  0x10   :  { %5267 = vmatpush3.msk.msra.mxu0 %vm113_vm0, %v4707_v8  ;;  %5275 = vmatpush3.msk.msra.mxu1 %vm113_vm0, %v4713_v9 }
  0x11   :  { %5256 = vmatmul.mubr.msk.f32.gmra.mxu0 %vm100_vm1, %v6239_v10  ;;  %5264 = vmatmul.mubr.msk.f32.gmra.mxu1 %vm100_vm1, %v6239_v10 }
  0x12   :  { %5268 = vmatprep.mubr.msk.f32.mxu0 %vm100_vm1, %v6202_v5  ;;  %5276 = vmatprep.mubr.msk.f32.mxu1 %vm100_vm1, %v6202_v5 }
  0x13   :  { %5282 = vmatprep.subr.msk.mxu0 %vm113_vm0, %v4719_v11  ;;  %5290 = vmatprep.subr.msk.mxu1 %vm113_vm0, %v4725_v12 }
  0x14   :  { %29 = vsyncpa [#allocation9], 0  ;;  %v6085_v13 = vmov 0   ;;  %v4731_v14 = vld [vmem:[%s7456_s21 + $0x30] sm:$0x3f]  ;;  %v74_v16 = vld [vmem:[%s7437_s6] sm:$0xff] }
  0x15   :  { %5652 = vset.pattern.permute.xlu0 %v6085_v13  ;;  %5653 = vset.pattern.permute.xlu1 %v6085_v13  ;;  %v4737_v15 = vld [vmem:[%s7456_s21 + $0x38] sm:$0x3f]  ;;  %v76_v17 = vld [vmem:[%s7437_s6 + $0x10] sm:$0xff]  ;;  %v75_v18 = vld [vmem:[%s7437_s6 + $0x8] sm:$0xff]  ;;  %v6086_v19 = vmov 0.0   ;;  %vm876_vm2 = vcmask 64512  }
  0x16   :  { %5269 = vmatmul.mubr.msk.f32.vlgmr.msra.gmra.mxu0 %vm100_vm1, %v6209_v6  ;;  %5277 = vmatmul.mubr.msk.f32.vlgmr.msra.gmra.mxu1 %vm100_vm1, %v6209_v6  ;;  %v77_v20 = vld [vmem:[%s7437_s6 + $0x18] sm:$0xff]  ;;  %v1903_v21 = vld [vmem:[%s7440_s9 + $0x8] sm:$0xff]  ;;  %v1902_v23 = vld [vmem:[%s7440_s9] sm:$0xff]  ;;  %vm202_vm3 = vcmask 31744   ;;  %s7457_s4 = sld [smem:[#allocation12_spill]] }
  0x17   :  { %5271 = vmatprep.mubr.msk.f32.mxu0 %vm100_vm1, %v6217_v7  ;;  %5279 = vmatprep.mubr.msk.f32.mxu1 %vm100_vm1, %v6217_v7  ;;  %v1905_v22 = vld [vmem:[%s7440_s9 + $0x18] sm:$0xff]  ;;  %v6339_v24 = vld [vmem:[%s7436_s5] sm:$0xff]  ;;  %v1904_v25 = vld [vmem:[%s7440_s9 + $0x10] sm:$0xff]  ;;  %s7462_s23 = sld [smem:[#allocation13_spill]] }
  0x18   :  { %5283 = vmatpush3.msk.msra.mxu0 %vm113_vm0, %v4719_v11  ;;  %5291 = vmatpush3.msk.msra.mxu1 %vm113_vm0, %v4725_v12  ;;  %v1907_v26 = vld [vmem:[%s7440_s9 + $0x28] sm:$0xff]  ;;  %v6365_v28 = vld [vmem:[%s7436_s5 + $0x10] sm:$0xff]  ;;  %v1909_v29 = vld [vmem:[%s7440_s9 + $0x38] sm:$0xff] }
  0x19   :  { %5298 = vmatprep.subr.msk.mxu0 %vm113_vm0, %v4731_v14  ;;  %5306 = vmatprep.subr.msk.mxu1 %vm113_vm0, %v4737_v15  ;;  %v6358_v27 = vld [vmem:[%s7436_s5 + $0x8] sm:$0xff]  ;;  %v1906_v30 = vld [vmem:[%s7440_s9 + $0x20] sm:$0xff]  ;;  %v6380_v31 = vld [vmem:[%s7436_s5 + $0x18] sm:$0xff] }
  0x1a   :  { %5272 = vmatmul.mubr.msk.f32.gmra.mxu0 %vm100_vm1, %v6239_v10  ;;  %5280 = vmatmul.mubr.msk.f32.gmra.mxu1 %vm100_vm1, %v6239_v10  ;;  %v1908_v32 = vld [vmem:[%s7440_s9 + $0x30] sm:$0xff]  ;;  %v4392_v33 = vld [vmem:[%s7442_s11 + $0x8] sm:$0xff]  ;;  %v4391_v34 = vld [vmem:[%s7442_s11] sm:$0xff] }
  0x1b   :  { %5284 = vmatprep.mubr.msk.f32.mxu0 %vm100_vm1, %v6202_v5  ;;  %5292 = vmatprep.mubr.msk.f32.mxu1 %vm100_vm1, %v6202_v5 }
  0x1c   :  { %82 = vperm.xlu0 %5652, %v74_v16   ;;  %92 = vperm.xlu1 %5653, %v76_v17  }
  0x1e   :  { %5285 = vmatmul.mubr.msk.f32.vlgmr.msra.gmra.mxu0 %vm100_vm1, %v6209_v6  ;;  %5293 = vmatmul.mubr.msk.f32.vlgmr.msra.gmra.mxu1 %vm100_vm1, %v6209_v6 }
  0x1f   :  { %5287 = vmatprep.mubr.msk.f32.mxu0 %vm100_vm1, %v6217_v7  ;;  %5295 = vmatprep.mubr.msk.f32.mxu1 %vm100_vm1, %v6217_v7 }
  0x20   :  { %5299 = vmatpush3.msk.msra.mxu0 %vm113_vm0, %v4731_v14  ;;  %5307 = vmatpush3.msk.msra.mxu1 %vm113_vm0, %v4737_v15  ;;  %vm1978_vm0 = vcmask 1041408  }
  0x21   :  { %5314 = vmatprep.subr.mxu0 %v6086_v19  ;;  %87 = vperm.xlu0 %5652, %v75_v18  }
  0x22   :  { %5288 = vmatmul.mubr.msk.f32.gmra.mxu0 %vm100_vm1, %v6239_v10  ;;  %5296 = vmatmul.mubr.msk.f32.gmra.mxu1 %vm100_vm1, %v6239_v10 }
  0x23   :  { %5300 = vmatprep.mubr.msk.f32.mxu0 %vm100_vm1, %v6202_v5  ;;  %5308 = vmatprep.mubr.msk.f32.mxu1 %vm100_vm1, %v6202_v5 }
  0x24   :  { %97 = vperm.xlu1 %5653, %v77_v20  }
  0x25   :  { %1920 = vperm.xlu0 %5652, %v1903_v21  }
  0x26   :  { %5301 = vmatmul.mubr.msk.f32.vlgmr.msra.gmra.mxu0 %vm100_vm1, %v6209_v6  ;;  %5309 = vmatmul.mubr.msk.f32.vlgmr.msra.gmra.mxu1 %vm100_vm1, %v6209_v6 }
  0x27   :  { %5303 = vmatprep.mubr.msk.f32.mxu0 %vm100_vm1, %v6217_v7  ;;  %5315 = vmatpush3.msra.mxu0 %v6086_v19 }
  0x28   :  { %5311 = vmatprep.mubr.msk.f32.mxu1 %vm100_vm1, %v6217_v7  ;;  %1930 = vperm.xlu1 %5653, %v1905_v22  }
  0x29   :  { %1915 = vperm.xlu0 %5652, %v1902_v23  }
  0x2a   :  { %5304 = vmatmul.mubr.msk.f32.gmra.mxu0 %vm100_vm1, %v6239_v10  ;;  %5312 = vmatmul.mubr.msk.f32.gmra.mxu1 %vm100_vm1, %v6239_v10  ;;  %vm1953_vm1 = vcmask 80896  }
  0x2b   :  { %5316 = vmatprep.mubr.msk.f32.mxu0 %vm876_vm2, %v6339_v24  ;;  %5324 = vmatprep.mubr.msk.f32.mxu1 %vm876_vm2, %v6339_v24 }
  0x2c   :  { %1925 = vperm.xlu1 %5653, %v1904_v25  }
  0x2d   :  { %1940 = vperm.xlu0 %5652, %v1907_v26  }
  0x2e   :  { %5317 = vmatmul.mubr.msk.f32.vlgmr.msra.gmra.mxu0 %vm876_vm2, %v6358_v27 }
  0x2f   :  { %5319 = vmatprep.mubr.msk.f32.mxu0 %vm876_vm2, %v6365_v28 }
  0x30   :  { %1950 = vperm.xlu1 %5653, %v1909_v29  }
  0x31   :  { %1935 = vperm.xlu0 %5652, %v1906_v30  }
  0x32   :  { %5320 = vmatmul.mubr.msk.f32.gmra.mxu0 %vm876_vm2, %v6380_v31 }
  0x33   :  { %5332 = vmatprep.mubr.msk.f32.mxu0 %vm876_vm2, %v6339_v24 }
  0x34   :  { %1945 = vperm.xlu1 %5653, %v1908_v32  }
  0x35   :  { %4400 = vperm.xlu0 %5652, %v4392_v33  }
  0x38   :  { %4395 = vperm.xlu1 %5653, %v4391_v34  }
  0x97   :  { %v6395_v35 = vpop.permute.xlu0 %82  ;;  %v6397_v36 = vpop.permute.xlu1 %92 }
  0x9c   :  { %v6399_v37 = vpop.permute.xlu0 %87 }
  0x9f   :  { %v6403_v42 = vpop.permute.xlu1 %97 }
  0xcd   :  { %v5254_v38 = vpop.f32.mrf.mxu0  ;;  %v5262_v39 = vpop.f32.mrf.mxu1 }
  0xce   :  { %v189_v40 = vadd.f32 %v5254_v38, %v6399_v37  ;;  %v284_v41 = vadd.f32 %v5262_v39, %v6399_v37 }
  0xcf   :  { %v183_v43 = vpop.f32.mrf.mxu0  ;;  %v278_v44 = vpop.f32.mrf.mxu1 }
  0xd0   :  { %204 = vst.msk [vmem:[#allocation2 + $0x8] sm:$0xff] %vm202_vm3, %v189_v40  ;;  %299 = vst.msk [vmem:[#allocation2 + $0x28] sm:$0xff] %vm202_vm3, %v284_v41  ;;  %v184_v45 = vadd.f32 %v183_v43, %v6395_v35  ;;  %v279_v46 = vadd.f32 %v278_v44, %v6395_v35 }
  0xd1   :  { %v5257_v47 = vpop.f32.mrf.mxu0  ;;  %v5265_v48 = vpop.f32.mrf.mxu1 }
  0xd2   :  { %203 = vst.msk [vmem:[#allocation2] sm:$0xff] %vm202_vm3, %v184_v45  ;;  %298 = vst.msk [vmem:[#allocation2 + $0x20] sm:$0xff] %vm202_vm3, %v279_v46  ;;  %v199_v49 = vadd.f32 %v5257_v47, %v6403_v42  ;;  %v294_v50 = vadd.f32 %v5265_v48, %v6403_v42 }
  0xd3   :  { %v193_v51 = vpop.f32.mrf.mxu0  ;;  %v288_v52 = vpop.f32.mrf.mxu1 }
  0xd4   :  { %206 = vst.msk [vmem:[#allocation2 + $0x18] sm:$0xff] %vm202_vm3, %v199_v49  ;;  %301 = vst.msk [vmem:[#allocation2 + $0x38] sm:$0xff] %vm202_vm3, %v294_v50  ;;  %v194_v53 = vadd.f32 %v193_v51, %v6397_v36  ;;  %v289_v54 = vadd.f32 %v288_v52, %v6397_v36 }
  0xd6   :  { %v5270_v55 = vpop.f32.mrf.mxu0  ;;  %v5278_v56 = vpop.f32.mrf.mxu1  ;;  %205 = vst.msk [vmem:[#allocation2 + $0x10] sm:$0xff] %vm202_vm3, %v194_v53  ;;  %300 = vst.msk [vmem:[#allocation2 + $0x30] sm:$0xff] %vm202_vm3, %v289_v54 }
  0xd7   :  { %v379_v57 = vadd.f32 %v5270_v55, %v6399_v37  ;;  %v474_v58 = vadd.f32 %v5278_v56, %v6399_v37  ;;  %v873_v47 = vld [vmem:[#allocation2 + $0x8] sm:$0xff] }
  0xd8   :  { %v373_v59 = vpop.f32.mrf.mxu0  ;;  %v468_v60 = vpop.f32.mrf.mxu1 }
  0xd9   :  { %394 = vst.msk [vmem:[#allocation2 + $0x48] sm:$0xff] %vm202_vm3, %v379_v57  ;;  %489 = vst.msk [vmem:[#allocation2 + $0x68] sm:$0xff] %vm202_vm3, %v474_v58  ;;  %v374_v61 = vadd.f32 %v373_v59, %v6395_v35  ;;  %v469_v62 = vadd.f32 %v468_v60, %v6395_v35  ;;  %v872_v50 = vld [vmem:[#allocation2] sm:$0xff] }
  0xda   :  { %v5273_v63 = vpop.f32.mrf.mxu0  ;;  %v5281_v0 = vpop.f32.mrf.mxu1 }
  0xdb   :  { %393 = vst.msk [vmem:[#allocation2 + $0x40] sm:$0xff] %vm202_vm3, %v374_v61  ;;  %488 = vst.msk [vmem:[#allocation2 + $0x60] sm:$0xff] %vm202_vm3, %v469_v62  ;;  %v389_v1 = vadd.f32 %v5273_v63, %v6403_v42  ;;  %v484_v2 = vadd.f32 %v5281_v0, %v6403_v42  ;;  %v875_v55 = vld [vmem:[#allocation2 + $0x18] sm:$0xff] }
  0xdc   :  { %v383_v3 = vpop.f32.mrf.mxu0  ;;  %v478_v4 = vpop.f32.mrf.mxu1 }
  0xdd   :  { %396 = vst.msk [vmem:[#allocation2 + $0x58] sm:$0xff] %vm202_vm3, %v389_v1  ;;  %491 = vst.msk [vmem:[#allocation2 + $0x78] sm:$0xff] %vm202_vm3, %v484_v2  ;;  %v384_v5 = vadd.f32 %v383_v3, %v6397_v36  ;;  %v479_v6 = vadd.f32 %v478_v4, %v6397_v36 }
  0xde   :  { %v5286_v7 = vpop.f32.mrf.mxu0  ;;  %v5294_v8 = vpop.f32.mrf.mxu1 }
  0xdf   :  { %395 = vst.msk [vmem:[#allocation2 + $0x50] sm:$0xff] %vm202_vm3, %v384_v5  ;;  %490 = vst.msk [vmem:[#allocation2 + $0x70] sm:$0xff] %vm202_vm3, %v479_v6  ;;  %v569_v9 = vadd.f32 %v5286_v7, %v6399_v37  ;;  %v664_v10 = vadd.f32 %v5294_v8, %v6399_v37 }
  0xe0   :  { %v563_v11 = vpop.f32.mrf.mxu0  ;;  %v658_v12 = vpop.f32.mrf.mxu1 }
  0xe1   :  { %584 = vst.msk [vmem:[#allocation2 + $0x88] sm:$0xff] %vm202_vm3, %v569_v9  ;;  %679 = vst.msk [vmem:[#allocation2 + $0xa8] sm:$0xff] %vm202_vm3, %v664_v10  ;;  %v564_v14 = vadd.f32 %v563_v11, %v6395_v35  ;;  %v659_v15 = vadd.f32 %v658_v12, %v6395_v35  ;;  %v1011_v11 = vld [vmem:[#allocation2 + $0x28] sm:$0xff] }
  0xe2   :  { %v5289_v16 = vpop.f32.mrf.mxu0  ;;  %v5297_v17 = vpop.f32.mrf.mxu1 }
  0xe3   :  { %583 = vst.msk [vmem:[#allocation2 + $0x80] sm:$0xff] %vm202_vm3, %v564_v14  ;;  %678 = vst.msk [vmem:[#allocation2 + $0xa0] sm:$0xff] %vm202_vm3, %v659_v15  ;;  %v579_v18 = vadd.f32 %v5289_v16, %v6403_v42  ;;  %v674_v20 = vadd.f32 %v5297_v17, %v6403_v42  ;;  %v1010_v15 = vld [vmem:[#allocation2 + $0x20] sm:$0xff] }
  0xe4   :  { %v573_v21 = vpop.f32.mrf.mxu0  ;;  %v668_v22 = vpop.f32.mrf.mxu1 }
  0xe5   :  { %586 = vst.msk [vmem:[#allocation2 + $0x98] sm:$0xff] %vm202_vm3, %v579_v18  ;;  %681 = vst.msk [vmem:[#allocation2 + $0xb8] sm:$0xff] %vm202_vm3, %v674_v20  ;;  %v574_v23 = vadd.f32 %v573_v21, %v6397_v36  ;;  %v669_v25 = vadd.f32 %v668_v22, %v6397_v36  ;;  %v1013_v22 = vld [vmem:[#allocation2 + $0x38] sm:$0xff] }
  0xe6   :  { %v5302_v26 = vpop.f32.mrf.mxu0  ;;  %v5310_v29 = vpop.f32.mrf.mxu1 }
  0xe7   :  { %585 = vst.msk [vmem:[#allocation2 + $0x90] sm:$0xff] %vm202_vm3, %v574_v23  ;;  %680 = vst.msk [vmem:[#allocation2 + $0xb0] sm:$0xff] %vm202_vm3, %v669_v25  ;;  %v759_v30 = vadd.f32 %v5302_v26, %v6399_v37  ;;  %v854_v32 = vadd.f32 %v5310_v29, %v6399_v37  ;;  %v1012_v29 = vld [vmem:[#allocation2 + $0x30] sm:$0xff] }
  0xe8   :  { %v753_v33 = vpop.f32.mrf.mxu0  ;;  %v848_v34 = vpop.f32.mrf.mxu1 }
  0xe9   :  { %774 = vst.msk [vmem:[#allocation2 + $0xc8] sm:$0xff] %vm202_vm3, %v759_v30  ;;  %869 = vst.msk [vmem:[#allocation2 + $0xe8] sm:$0xff] %vm202_vm3, %v854_v32  ;;  %v754_v38 = vadd.f32 %v753_v33, %v6395_v35  ;;  %v849_v39 = vadd.f32 %v848_v34, %v6395_v35 }
  0xea   :  { %v5305_v40 = vpop.f32.mrf.mxu0  ;;  %v5313_v41 = vpop.f32.mrf.mxu1 }
  0xeb   :  { %773 = vst.msk [vmem:[#allocation2 + $0xc0] sm:$0xff] %vm202_vm3, %v754_v38  ;;  %868 = vst.msk [vmem:[#allocation2 + $0xe0] sm:$0xff] %vm202_vm3, %v849_v39  ;;  %v769_v43 = vadd.f32 %v5305_v40, %v6403_v42  ;;  %v864_v37 = vadd.f32 %v5313_v41, %v6403_v42 }
  0xec   :  { %v763_v44 = vpop.f32.mrf.mxu0  ;;  %v858_v45 = vpop.f32.mrf.mxu1 }
  0xed   :  { %776 = vst.msk [vmem:[#allocation2 + $0xd8] sm:$0xff] %vm202_vm3, %v769_v43  ;;  %v764_v46 = vadd.f32 %v763_v44, %v6397_v36  ;;  %871 = vst.msk [vmem:[#allocation2 + $0xf8] sm:$0xff] %vm202_vm3, %v864_v37  ;;  %v859_v35 = vadd.f32 %v858_v45, %v6397_v36  ;;  %v874_v36 = vld [vmem:[#allocation2 + $0x10] sm:$0xff]  ;;  %v1004_v44 = vlaneseq }
  0xee   :  { %v5318_v48 = vpop.f32.mrf.mxu0 }
  0xef   :  { %775 = vst.msk [vmem:[#allocation2 + $0xd0] sm:$0xff] %vm202_vm3, %v764_v46  ;;  %v975_v49 = vadd.f32 %v5318_v48, %v873_v47  ;;  %870 = vst.msk [vmem:[#allocation2 + $0xf0] sm:$0xff] %vm202_vm3, %v859_v35  ;;  %v6478_v47 = vld [vmem:[%s7457_s4] sm:$0x1]  ;;  %v1005_v48 = vshrl.u32 %v1004_v44, 7 }
  0xf0   :  { %v955_v51 = vpop.f32.mrf.mxu0  ;;  %vm1002_vm4 = vcmp.eq.s32.totalorder %v6478_v47, 1  ;;  %vm1127_vm5 = vcmp.eq.s32.totalorder %v6478_v47, 2  ;;  %vm1252_vm8 = vcmp.eq.s32.totalorder %v6478_v47, 3  ;;  %vm1377_vm10 = vcmp.eq.s32.totalorder %v6478_v47, 4 }
  0xf1   :  { %v4748_v42 = vmul.f32 -1.442695, %v975_v49  ;;  %v974_v52 = vadd.f32 %v955_v51, %v872_v50  ;;  %v6482_v49 = vsub.s32 0, %v1005_v48  ;;  %v1003_v50 = vsel %vm1002_vm4, 1, %v6085_v13 }
  0xf2   :  { %v5321_v54 = vpop.f32.mrf.mxu0  ;;  %v1128_v51 = vsel %vm1127_vm5, 1, %v6085_v13  ;;  %vm1502_vm12 = vcmp.eq.s32.totalorder %v6478_v47, 5  ;;  %vm1627_vm14 = vcmp.eq.s32.totalorder %v6478_v47, 6  ;;  %vm2943_vm4 = vcmask 130048  }
  0xf3   :  { %5654 = vpow2.f32 %v4748_v42  ;;  %v4747_v53 = vmul.f32 -1.442695, %v974_v52  ;;  %v977_v56 = vadd.f32 %v5321_v54, %v875_v55  ;;  %v1007_v42 = vrot.slane %v1003_v50, %v6482_v49  ;;  %v1262_v50 = vld [vmem:[#allocation2 + $0x70] sm:$0xff] }
  0xf4   :  { %v965_v57 = vpop.f32.mrf.mxu0  ;;  %v1132_v52 = vrot.slane %v1128_v51, %v6482_v49  ;;  %vm1752_vm5 = vcmp.eq.s32.totalorder %v6478_v47, 7 }
  0xf5   :  { %5656 = vpow2.f32 %v4747_v53  ;;  %v4749_v58 = vmul.f32 -1.442695, %v977_v56  ;;  %v976_v60 = vadd.f32 %v965_v57, %v874_v36  ;;  %vm1008_vm6 = vcmp.eq.s32.totalorder %v1007_v42, 1 }
  0xf6   :  { %vm1133_vm7 = vcmp.eq.s32.totalorder %v1132_v52, 1 }
  0xf7   :  { %5658 = vpow2.f32 %v4749_v58  ;;  %v1136_v58 = vld [vmem:[#allocation2 + $0x48] sm:$0xff] }
 0x100   :  { %v5655_v59 = vpop.eup %5654 }
 0x101   :  { %v987_v61 = vadd.f32 1.0, %v5655_v59 }
 0x102   :  { %v5657_v62 = vpop.eup %5656 }
 0x103   :  { %5660 = vrcp.f32 %v987_v61  ;;  %v981_v63 = vadd.f32 1.0, %v5657_v62 }
 0x104   :  { %5662 = vtanh.f32 %v976_v60  ;;  %v5659_v0 = vpop.eup %5658  ;;  %v1135_v60 = vld [vmem:[#allocation2 + $0x40] sm:$0xff] }
 0x105   :  { %5664 = vrcp.f32 %v981_v63  ;;  %v994_v4 = vadd.f32 1.0, %v5659_v0 }
 0x107   :  { %5666 = vrcp.f32 %v994_v4 }
 0x110   :  { %v5661_v1 = vpop.eup %5660 }
 0x111   :  { %v5663_v2 = vpop.eup %5662  ;;  %v997_v5 = vmul.f32 0.0, %v5661_v1 }
 0x112   :  { %v5665_v3 = vpop.eup %5664 }
 0x113   :  { %v998_v6 = vmul.f32 %v5665_v3, %v5663_v2  ;;  %v1138_v2 = vld [vmem:[#allocation2 + $0x58] sm:$0xff] }
 0x114   :  { %v5667_v8 = vpop.eup %5666 }
 0x115   :  { %v999_v7 = vadd.f32 %v998_v6, %v997_v5  ;;  %v1137_v6 = vld [vmem:[#allocation2 + $0x50] sm:$0xff] }
 0x117   :  { %5668 = vtanh.f32 %v999_v7 }
 0x124   :  { %v5669_v9 = vpop.eup %5668 }
 0x125   :  { %v1001_v10 = vmul.f32 %v5669_v9, %v5667_v8 }
 0x127   :  { %5322 = vmatprep.subr.mxu1 %v1001_v10  ;;  %v1009_v56 = vsel %vm1008_vm6, %v1001_v10, 0.0 }
 0x128   :  { %5323 = vmatpush3.msra.mxu1 %v1001_v10 }
 0x129   :  { %5325 = vmatmul.mubr.msk.f32.vlgmr.msra.gmra.mxu1 %vm876_vm2, %v6358_v27 }
 0x12a   :  { %5327 = vmatprep.mubr.msk.f32.mxu1 %vm876_vm2, %v6365_v28 }
 0x12d   :  { %5328 = vmatmul.mubr.msk.f32.gmra.mxu1 %vm876_vm2, %v6380_v31 }
 0x12e   :  { %5340 = vmatprep.mubr.msk.f32.mxu1 %vm876_vm2, %v6339_v24 }
 0x1e9   :  { %v5326_v12 = vpop.f32.mrf.mxu1 }
 0x1ea   :  { %v1100_v14 = vadd.f32 %v5326_v12, %v1011_v11 }
 0x1eb   :  { %v1080_v16 = vpop.f32.mrf.mxu1 }
 0x1ec   :  { %v4755_v17 = vmul.f32 -1.442695, %v1100_v14  ;;  %v1099_v18 = vadd.f32 %v1080_v16, %v1010_v15 }
 0x1ed   :  { %v5329_v21 = vpop.f32.mrf.mxu1 }
 0x1ee   :  { %5670 = vpow2.f32 %v4755_v17  ;;  %v4754_v20 = vmul.f32 -1.442695, %v1099_v18  ;;  %v1102_v23 = vadd.f32 %v5329_v21, %v1013_v22  ;;  %v1253_v22 = vsel %vm1252_vm8, 1, %v6085_v13 }
 0x1ef   :  { %v1090_v25 = vpop.f32.mrf.mxu1 }
 0x1f0   :  { %5672 = vpow2.f32 %v4754_v20  ;;  %v4756_v26 = vmul.f32 -1.442695, %v1102_v23  ;;  %v1101_v32 = vadd.f32 %v1090_v25, %v1012_v29  ;;  %v1257_v23 = vrot.slane %v1253_v22, %v6482_v49 }
 0x1f2   :  { %5674 = vpow2.f32 %v4756_v26  ;;  %vm6501_vm9 = vcmp.eq.s32.totalorder %v1257_v23, 1 }
 0x1fb   :  { %v5671_v30 = vpop.eup %5670 }
 0x1fc   :  { %v1112_v33 = vadd.f32 1.0, %v5671_v30 }
 0x1fd   :  { %v5673_v34 = vpop.eup %5672 }
 0x1fe   :  { %5676 = vrcp.f32 %v1112_v33  ;;  %v1106_v38 = vadd.f32 1.0, %v5673_v34  ;;  %v1261_v33 = vld [vmem:[#allocation2 + $0x68] sm:$0xff] }
 0x1ff   :  { %5678 = vtanh.f32 %v1101_v32  ;;  %v5675_v39 = vpop.eup %5674 }
 0x200   :  { %5680 = vrcp.f32 %v1106_v38  ;;  %v1119_v37 = vadd.f32 1.0, %v5675_v39  ;;  %v1260_v39 = vld [vmem:[#allocation2 + $0x60] sm:$0xff] }
 0x202   :  { %5682 = vrcp.f32 %v1119_v37 }
 0x20b   :  { %v5677_v40 = vpop.eup %5676 }
 0x20c   :  { %v5679_v41 = vpop.eup %5678  ;;  %v1122_v45 = vmul.f32 %v5677_v40, %v999_v7 }
 0x20d   :  { %v5681_v43 = vpop.eup %5680 }
 0x20e   :  { %v1123_v46 = vmul.f32 %v5681_v43, %v5679_v41 }
 0x20f   :  { %v5683_v53 = vpop.eup %5682 }
 0x210   :  { %v1124_v35 = vadd.f32 %v1123_v46, %v1122_v45  ;;  %v1263_v45 = vld [vmem:[#allocation2 + $0x78] sm:$0xff] }
 0x212   :  { %5684 = vtanh.f32 %v1124_v35 }
 0x21f   :  { %v5685_v54 = vpop.eup %5684 }
 0x220   :  { %v1126_v55 = vmul.f32 %v5685_v54, %v5683_v53 }
 0x222   :  { %v6488_v57 = vsel %vm1133_vm7, %v1126_v55, %v1009_v56  ;;  %5330 = vmatprep.subr.mxu0 %v1126_v55 }
 0x223   :  { %5331 = vmatpush3.msra.mxu0 %v1126_v55 }
 0x224   :  { %5333 = vmatmul.mubr.msk.f32.vlgmr.msra.gmra.mxu0 %vm876_vm2, %v6358_v27 }
 0x225   :  { %5335 = vmatprep.mubr.msk.f32.mxu0 %vm876_vm2, %v6365_v28 }
 0x228   :  { %5336 = vmatmul.mubr.msk.f32.gmra.mxu0 %vm876_vm2, %v6380_v31 }
 0x229   :  { %5348 = vmatprep.mubr.msk.f32.mxu0 %vm876_vm2, %v6339_v24 }
 0x2e4   :  { %v5334_v36 = vpop.f32.mrf.mxu0 }
 0x2e5   :  { %v1225_v59 = vadd.f32 %v5334_v36, %v1136_v58 }
 0x2e6   :  { %v1205_v61 = vpop.f32.mrf.mxu0 }
 0x2e7   :  { %v4762_v62 = vmul.f32 -1.442695, %v1225_v59  ;;  %v1224_v63 = vadd.f32 %v1205_v61, %v1135_v60 }
 0x2e8   :  { %v5337_v1 = vpop.f32.mrf.mxu0 }
 0x2e9   :  { %5686 = vpow2.f32 %v4762_v62  ;;  %v4761_v0 = vmul.f32 -1.442695, %v1224_v63  ;;  %v1227_v3 = vadd.f32 %v5337_v1, %v1138_v2  ;;  %v1378_v62 = vsel %vm1377_vm10, 1, %v6085_v13 }
 0x2ea   :  { %v1215_v4 = vpop.f32.mrf.mxu0  ;;  %v1382_v63 = vrot.slane %v1378_v62, %v6482_v49 }
 0x2eb   :  { %5688 = vpow2.f32 %v4761_v0  ;;  %v4763_v5 = vmul.f32 -1.442695, %v1227_v3  ;;  %v1226_v8 = vadd.f32 %v1215_v4, %v1137_v6  ;;  %v1386_v4 = vld [vmem:[#allocation2 + $0x88] sm:$0xff] }
 0x2ec   :  { %vm1383_vm11 = vcmp.eq.s32.totalorder %v1382_v63, 1 }
 0x2ed   :  { %5690 = vpow2.f32 %v4763_v5 }
 0x2f6   :  { %v5687_v7 = vpop.eup %5686 }
 0x2f7   :  { %v1237_v9 = vadd.f32 1.0, %v5687_v7  ;;  %v1385_v7 = vld [vmem:[#allocation2 + $0x80] sm:$0xff] }
 0x2f8   :  { %v5689_v10 = vpop.eup %5688 }
 0x2f9   :  { %5692 = vrcp.f32 %v1237_v9  ;;  %v1231_v11 = vadd.f32 1.0, %v5689_v10 }
 0x2fa   :  { %5694 = vtanh.f32 %v1226_v8  ;;  %v5691_v12 = vpop.eup %5690 }
 0x2fb   :  { %5696 = vrcp.f32 %v1231_v11  ;;  %v1244_v17 = vadd.f32 1.0, %v5691_v12 }
 0x2fd   :  { %5698 = vrcp.f32 %v1244_v17 }
 0x306   :  { %v5693_v14 = vpop.eup %5692 }
 0x307   :  { %v5695_v15 = vpop.eup %5694  ;;  %v1247_v18 = vmul.f32 %v5693_v14, %v1124_v35  ;;  %v1388_v14 = vld [vmem:[#allocation2 + $0x98] sm:$0xff] }
 0x308   :  { %v5697_v16 = vpop.eup %5696 }
 0x309   :  { %v1248_v20 = vmul.f32 %v5697_v16, %v5695_v15 }
 0x30a   :  { %v5699_v25 = vpop.eup %5698 }
 0x30b   :  { %v1249_v21 = vadd.f32 %v1248_v20, %v1247_v18  ;;  %v1387_v18 = vld [vmem:[#allocation2 + $0x90] sm:$0xff] }
 0x30d   :  { %5700 = vtanh.f32 %v1249_v21 }
 0x31a   :  { %v5701_v26 = vpop.eup %5700 }
 0x31b   :  { %v1251_v30 = vmul.f32 %v5701_v26, %v5699_v25 }
 0x31d   :  { %v1259_v32 = vsel %vm6501_vm9, %v1251_v30, %v6488_v57  ;;  %5338 = vmatprep.subr.mxu1 %v1251_v30 }
 0x31e   :  { %5339 = vmatpush3.msra.mxu1 %v1251_v30 }
 0x31f   :  { %5341 = vmatmul.mubr.msk.f32.vlgmr.msra.gmra.mxu1 %vm876_vm2, %v6358_v27 }
 0x320   :  { %5343 = vmatprep.mubr.msk.f32.mxu1 %vm876_vm2, %v6365_v28 }
 0x323   :  { %5344 = vmatmul.mubr.msk.f32.gmra.mxu1 %vm876_vm2, %v6380_v31 }
 0x324   :  { %5356 = vmatprep.mubr.msk.f32.mxu1 %vm876_vm2, %v6339_v24 }
 0x3df   :  { %v5342_v34 = vpop.f32.mrf.mxu1 }
 0x3e0   :  { %v1350_v38 = vadd.f32 %v5342_v34, %v1261_v33 }
 0x3e1   :  { %v1330_v40 = vpop.f32.mrf.mxu1 }
 0x3e2   :  { %v4769_v41 = vmul.f32 -1.442695, %v1350_v38  ;;  %v1349_v43 = vadd.f32 %v1330_v40, %v1260_v39  ;;  %v1503_v40 = vsel %vm1502_vm12, 1, %v6085_v13 }
 0x3e3   :  { %v5345_v44 = vpop.f32.mrf.mxu1 }
 0x3e4   :  { %5702 = vpow2.f32 %v4769_v41  ;;  %v4768_v37 = vmul.f32 -1.442695, %v1349_v43  ;;  %v1352_v46 = vadd.f32 %v5345_v44, %v1263_v45  ;;  %v1507_v41 = vrot.slane %v1503_v40, %v6482_v49  ;;  %v6728_v40 = vld [vmem:[%s7439_s8 + $0x20] sm:$0xff]  ;;  %v6757_v44 = vpop.permute.xlu0 %1920 }
 0x3e5   :  { %v1340_v35 = vpop.f32.mrf.mxu1 }
 0x3e6   :  { %5704 = vpow2.f32 %v4768_v37  ;;  %v4770_v48 = vmul.f32 -1.442695, %v1352_v46  ;;  %v1351_v42 = vadd.f32 %v1340_v35, %v1262_v50  ;;  %vm6532_vm13 = vcmp.eq.s32.totalorder %v1507_v41, 1  ;;  %v1511_v35 = vld [vmem:[#allocation2 + $0xa8] sm:$0xff] }
 0x3e7   :  { %v6737_v41 = vld [vmem:[%s7439_s8 + $0x28] sm:$0xff] }
 0x3e8   :  { %5706 = vpow2.f32 %v4770_v48 }
 0x3f1   :  { %v5703_v51 = vpop.eup %5702 }
 0x3f2   :  { %v1362_v52 = vadd.f32 1.0, %v5703_v51  ;;  %v1510_v51 = vld [vmem:[#allocation2 + $0xa0] sm:$0xff] }
 0x3f3   :  { %v5705_v53 = vpop.eup %5704 }
 0x3f4   :  { %5708 = vrcp.f32 %v1362_v52  ;;  %v1356_v54 = vadd.f32 1.0, %v5705_v53 }
 0x3f5   :  { %5710 = vtanh.f32 %v1351_v42  ;;  %v5707_v55 = vpop.eup %5706 }
 0x3f6   :  { %5712 = vrcp.f32 %v1356_v54  ;;  %v1369_v36 = vadd.f32 1.0, %v5707_v55 }
 0x3f8   :  { %5714 = vrcp.f32 %v1369_v36 }
 0x401   :  { %v5709_v56 = vpop.eup %5708 }
 0x402   :  { %v5711_v57 = vpop.eup %5710  ;;  %v1372_v59 = vmul.f32 %v5709_v56, %v1249_v21  ;;  %v1513_v56 = vld [vmem:[#allocation2 + $0xb8] sm:$0xff] }
 0x403   :  { %v5713_v58 = vpop.eup %5712 }
 0x404   :  { %v1373_v60 = vmul.f32 %v5713_v58, %v5711_v57 }
 0x405   :  { %v5715_v0 = vpop.eup %5714 }
 0x406   :  { %v1374_v61 = vadd.f32 %v1373_v60, %v1372_v59  ;;  %v1512_v59 = vld [vmem:[#allocation2 + $0xb0] sm:$0xff] }
 0x408   :  { %5716 = vtanh.f32 %v1374_v61 }
 0x415   :  { %v5717_v1 = vpop.eup %5716 }
 0x416   :  { %v1376_v2 = vmul.f32 %v5717_v1, %v5715_v0 }
 0x418   :  { %v6519_v3 = vsel %vm1383_vm11, %v1376_v2, %v1259_v32  ;;  %5346 = vmatprep.subr.mxu0 %v1376_v2 }
 0x419   :  { %5347 = vmatpush3.msra.mxu0 %v1376_v2 }
 0x41a   :  { %5349 = vmatmul.mubr.msk.f32.vlgmr.msra.gmra.mxu0 %vm876_vm2, %v6358_v27 }
 0x41b   :  { %5351 = vmatprep.mubr.msk.f32.mxu0 %vm876_vm2, %v6365_v28 }
 0x41e   :  { %5352 = vmatmul.mubr.msk.f32.gmra.mxu0 %vm876_vm2, %v6380_v31 }
 0x41f   :  { %5364 = vmatprep.mubr.msk.f32.mxu0 %vm876_vm2, %v6339_v24 }
 0x4da   :  { %v5350_v5 = vpop.f32.mrf.mxu0 }
 0x4db   :  { %v1475_v6 = vadd.f32 %v5350_v5, %v1386_v4 }
 0x4dc   :  { %v1455_v8 = vpop.f32.mrf.mxu0 }
 0x4dd   :  { %v4776_v9 = vmul.f32 -1.442695, %v1475_v6  ;;  %v1474_v10 = vadd.f32 %v1455_v8, %v1385_v7  ;;  %v1628_v8 = vsel %vm1627_vm14, 1, %v6085_v13 }
 0x4de   :  { %v5353_v12 = vpop.f32.mrf.mxu0 }
 0x4df   :  { %5718 = vpow2.f32 %v4776_v9  ;;  %v4775_v11 = vmul.f32 -1.442695, %v1474_v10  ;;  %v1477_v15 = vadd.f32 %v5353_v12, %v1388_v14  ;;  %v1632_v9 = vrot.slane %v1628_v8, %v6482_v49  ;;  %v1912_v14 = vld [vmem:[%s7462_s23 + $0x8] sm:$0x3] }
 0x4e0   :  { %v1465_v16 = vpop.f32.mrf.mxu0 }
 0x4e1   :  { %5720 = vpow2.f32 %v4775_v11  ;;  %v4777_v17 = vmul.f32 -1.442695, %v1477_v15  ;;  %v1476_v21 = vadd.f32 %v1465_v16, %v1387_v18  ;;  %vm1633_vm15 = vcmp.eq.s32.totalorder %v1632_v9, 1  ;;  %v1911_v16 = vld [vmem:[%s7462_s23] sm:$0xff] }
 0x4e2   :  { %v6573_v18 = vld [vmem:[%s7438_s7] sm:$0xff] }
 0x4e3   :  { %5722 = vpow2.f32 %v4777_v17  ;;  %v4820_v17 = vld [vmem:[%s7462_s23 + $0x28] sm:$0x3] }
 0x4ec   :  { %v5719_v20 = vpop.eup %5718 }
 0x4ed   :  { %v1487_v22 = vadd.f32 1.0, %v5719_v20  ;;  %v4819_v20 = vld [vmem:[%s7462_s23 + $0x20] sm:$0xff] }
 0x4ee   :  { %v5721_v23 = vpop.eup %5720 }
 0x4ef   :  { %5724 = vrcp.f32 %v1487_v22  ;;  %v1481_v25 = vadd.f32 1.0, %v5721_v23  ;;  %v6609_v22 = vld [vmem:[%s7438_s7 + $0x20] sm:$0xff]  ;;  %v6619_v23 = vld [vmem:[%s7438_s7 + $0x28] sm:$0xff] }
 0x4f0   :  { %5726 = vtanh.f32 %v1476_v21  ;;  %v5723_v26 = vpop.eup %5722  ;;  %v4842_v21 = vld [vmem:[%s7462_s23 + $0x48] sm:$0x3] }
 0x4f1   :  { %5728 = vrcp.f32 %v1481_v25  ;;  %v1494_v33 = vadd.f32 1.0, %v5723_v26  ;;  %v6624_v25 = vld [vmem:[%s7438_s7 + $0x30] sm:$0xff]  ;;  %v6633_v26 = vld [vmem:[%s7438_s7 + $0x38] sm:$0xff] }
 0x4f3   :  { %5730 = vrcp.f32 %v1494_v33  ;;  %v6700_v33 = vld [vmem:[%s7439_s8] sm:$0xff] }
 0x4fc   :  { %v5725_v29 = vpop.eup %5724 }
 0x4fd   :  { %v5727_v30 = vpop.eup %5726  ;;  %v1497_v34 = vmul.f32 %v5725_v29, %v1374_v61  ;;  %v4841_v29 = vld [vmem:[%s7462_s23 + $0x40] sm:$0xff] }
 0x4fe   :  { %v5729_v32 = vpop.eup %5728 }
 0x4ff   :  { %v1498_v38 = vmul.f32 %v5729_v32, %v5727_v30  ;;  %v4864_v30 = vld [vmem:[%s7462_s23 + $0x68] sm:$0x3]  ;;  %v4863_v32 = vld [vmem:[%s7462_s23 + $0x60] sm:$0xff] }
 0x500   :  { %v5731_v43 = vpop.eup %5730 }
 0x501   :  { %v1499_v39 = vadd.f32 %v1498_v38, %v1497_v34  ;;  %v6709_v34 = vld [vmem:[%s7439_s8 + $0x8] sm:$0xff]  ;;  %v6714_v38 = vld [vmem:[%s7439_s8 + $0x10] sm:$0xff] }
 0x503   :  { %5732 = vtanh.f32 %v1499_v39 }
 0x510   :  { %v5733_v37 = vpop.eup %5732 }
 0x511   :  { %v1501_v45 = vmul.f32 %v5733_v37, %v5731_v43  ;;  %v6742_v43 = vld [vmem:[%s7439_s8 + $0x30] sm:$0xff]  ;;  %v6751_v37 = vld [vmem:[%s7439_s8 + $0x38] sm:$0xff] }
 0x513   :  { %v1509_v46 = vsel %vm6532_vm13, %v1501_v45, %v6519_v3  ;;  %5354 = vmatprep.subr.mxu1 %v1501_v45 }
 0x514   :  { %5355 = vmatpush3.msra.mxu1 %v1501_v45  ;;  %v1636_v45 = vld [vmem:[#allocation2 + $0xc8] sm:$0xff] }
 0x515   :  { %5357 = vmatmul.mubr.msk.f32.vlgmr.msra.gmra.mxu1 %vm876_vm2, %v6358_v27 }
 0x516   :  { %5359 = vmatprep.mubr.msk.f32.mxu1 %vm876_vm2, %v6365_v28 }
 0x519   :  { %5360 = vmatmul.mubr.msk.f32.gmra.mxu1 %vm876_vm2, %v6380_v31 }
 0x51a   :  { %5372 = vmatprep.mubr.msk.f32.mxu1 %vm876_vm2, %v6339_v24 }
 0x5d5   :  { %v5358_v48 = vpop.f32.mrf.mxu1 }
 0x5d6   :  { %v1600_v50 = vadd.f32 %v5358_v48, %v1511_v35  ;;  %v1635_v48 = vld [vmem:[#allocation2 + $0xc0] sm:$0xff] }
 0x5d7   :  { %v1580_v42 = vpop.f32.mrf.mxu1 }
 0x5d8   :  { %v4783_v52 = vmul.f32 -1.442695, %v1600_v50  ;;  %v1599_v53 = vadd.f32 %v1580_v42, %v1510_v51 }
 0x5d9   :  { %v5361_v55 = vpop.f32.mrf.mxu1 }
 0x5da   :  { %5734 = vpow2.f32 %v4783_v52  ;;  %v4782_v54 = vmul.f32 -1.442695, %v1599_v53  ;;  %v1602_v57 = vadd.f32 %v5361_v55, %v1513_v56  ;;  %v6759_v52 = vpop.permute.xlu1 %1930  ;;  %v6761_v55 = vpop.permute.xlu0 %1915 }
 0x5db   :  { %v1590_v58 = vpop.f32.mrf.mxu1 }
 0x5dc   :  { %5736 = vpow2.f32 %v4782_v54  ;;  %v4784_v36 = vmul.f32 -1.442695, %v1602_v57  ;;  %v1601_v61 = vadd.f32 %v1590_v58, %v1512_v59 }
 0x5de   :  { %5738 = vpow2.f32 %v4784_v36  ;;  %v6764_v36 = vpop.permute.xlu1 %1925 }
 0x5e7   :  { %v5735_v60 = vpop.eup %5734 }
 0x5e8   :  { %v1612_v62 = vadd.f32 1.0, %v5735_v60  ;;  %v1638_v60 = vld [vmem:[#allocation2 + $0xd8] sm:$0xff] }
 0x5e9   :  { %v5737_v24 = vpop.eup %5736 }
 0x5ea   :  { %5740 = vrcp.f32 %v1612_v62  ;;  %v1606_v63 = vadd.f32 1.0, %v5737_v24  ;;  %v6768_v62 = vpop.permute.xlu0 %1940 }
 0x5eb   :  { %5742 = vtanh.f32 %v1601_v61  ;;  %v5739_v0 = vpop.eup %5738 }
 0x5ec   :  { %5744 = vrcp.f32 %v1606_v63  ;;  %v1619_v4 = vadd.f32 1.0, %v5739_v0 }
 0x5ee   :  { %5746 = vrcp.f32 %v1619_v4 }
 0x5f7   :  { %v5741_v1 = vpop.eup %5740 }
 0x5f8   :  { %v5743_v2 = vpop.eup %5742  ;;  %v1622_v5 = vmul.f32 %v5741_v1, %v1499_v39  ;;  %v6723_v39 = vld [vmem:[%s7439_s8 + $0x18] sm:$0xff] }
 0x5f9   :  { %v5745_v3 = vpop.eup %5744 }
 0x5fa   :  { %v1623_v6 = vmul.f32 %v5745_v3, %v5743_v2  ;;  %v6774_v3 = vpop.permute.xlu1 %1950 }
 0x5fb   :  { %v5747_v10 = vpop.eup %5746 }
 0x5fc   :  { %v6547_v7 = vadd.f32 %v1623_v6, %v1622_v5  ;;  %v1637_v6 = vld [vmem:[#allocation2 + $0xd0] sm:$0xff] }
 0x5fe   :  { %5748 = vtanh.f32 %v6547_v7 }
 0x60b   :  { %v5749_v11 = vpop.eup %5748 }
 0x60c   :  { %v1626_v12 = vmul.f32 %v5749_v11, %v5747_v10  ;;  %v6778_v10 = vpop.permute.xlu0 %1935 }
 0x60e   :  { %v6556_v15 = vsel %vm1633_vm15, %v1626_v12, %v1509_v46  ;;  %5362 = vmatprep.subr.mxu0 %v1626_v12 }
 0x60f   :  { %5363 = vmatpush3.msra.mxu0 %v1626_v12 }
 0x610   :  { %5365 = vmatmul.mubr.msk.f32.vlgmr.msra.gmra.mxu0 %vm876_vm2, %v6358_v27  ;;  %5378 = vmatprep.subr.msk.mxu0 %vm1978_vm0, %v1912_v14  ;;  %v6583_v27 = vld [vmem:[%s7438_s7 + $0x8] sm:$0xff] }
 0x611   :  { %5367 = vmatprep.mubr.msk.f32.mxu0 %vm876_vm2, %v6365_v28  ;;  %5379 = vmatpush3.msk.msra.mxu0 %vm1978_vm0, %v1912_v14  ;;  %v6588_v28 = vld [vmem:[%s7438_s7 + $0x10] sm:$0xff] }
 0x612   :  { %5380 = vmatprep.subr.mxu0 %v1911_v16 }
 0x613   :  { %5381 = vmatpush3.msra.mxu0 %v1911_v16 }
 0x614   :  { %5368 = vmatmul.mubr.msk.f32.gmra.mxu0 %vm876_vm2, %v6380_v31  ;;  %5410 = vmatprep.subr.msk.mxu0 %vm1978_vm0, %v4820_v17  ;;  %v6600_v31 = vld [vmem:[%s7438_s7 + $0x18] sm:$0xff] }
 0x615   :  { %5382 = vmatprep.mubr.msk.f32.mxu0 %vm1953_vm1, %v6573_v18 }
 0x618   :  { %5383 = vmatmul.mubr.msk.f32.vlgmr.msra.gmra.mxu0 %vm1953_vm1, %v6583_v27 }
 0x619   :  { %5385 = vmatprep.mubr.msk.f32.mxu0 %vm1953_vm1, %v6588_v28  ;;  %5411 = vmatpush3.msk.msra.mxu0 %vm1978_vm0, %v4820_v17 }
 0x61a   :  { %5412 = vmatprep.subr.mxu0 %v4819_v20 }
 0x61b   :  { %5413 = vmatpush3.msra.mxu0 %v4819_v20 }
 0x61c   :  { %5386 = vmatmul.mubr.msk.f32.gmra.mxu0 %vm1953_vm1, %v6600_v31  ;;  %5442 = vmatprep.subr.msk.mxu0 %vm1978_vm0, %v4842_v21 }
 0x61d   :  { %5388 = vmatprep.mubr.msk.f32.mxu0 %vm1953_vm1, %v6609_v22 }
 0x620   :  { %5389 = vmatmul.mubr.msk.f32.gmra.mxu0 %vm1953_vm1, %v6619_v23 }
 0x621   :  { %5391 = vmatprep.mubr.msk.f32.mxu0 %vm1953_vm1, %v6624_v25 }
 0x624   :  { %5392 = vmatmul.mubr.msk.f32.gmra.mxu0 %vm1953_vm1, %v6633_v26 }
 0x625   :  { %5414 = vmatprep.mubr.msk.f32.mxu0 %vm1953_vm1, %v6573_v18 }
 0x628   :  { %5415 = vmatmul.mubr.msk.f32.vlgmr.msra.gmra.mxu0 %vm1953_vm1, %v6583_v27 }
 0x629   :  { %5417 = vmatprep.mubr.msk.f32.mxu0 %vm1953_vm1, %v6588_v28  ;;  %5443 = vmatpush3.msk.msra.mxu0 %vm1978_vm0, %v4842_v21 }
 0x62a   :  { %5444 = vmatprep.subr.mxu0 %v4841_v29 }
 0x62b   :  { %5445 = vmatpush3.msra.mxu0 %v4841_v29 }
 0x62c   :  { %5418 = vmatmul.mubr.msk.f32.gmra.mxu0 %vm1953_vm1, %v6600_v31  ;;  %5474 = vmatprep.subr.msk.mxu0 %vm1978_vm0, %v4864_v30 }
 0x62d   :  { %5420 = vmatprep.mubr.msk.f32.mxu0 %vm1953_vm1, %v6609_v22 }
 0x630   :  { %5421 = vmatmul.mubr.msk.f32.gmra.mxu0 %vm1953_vm1, %v6619_v23 }
 0x631   :  { %5423 = vmatprep.mubr.msk.f32.mxu0 %vm1953_vm1, %v6624_v25 }
 0x634   :  { %5424 = vmatmul.mubr.msk.f32.gmra.mxu0 %vm1953_vm1, %v6633_v26 }
 0x635   :  { %5446 = vmatprep.mubr.msk.f32.mxu0 %vm1953_vm1, %v6573_v18 }
 0x638   :  { %5447 = vmatmul.mubr.msk.f32.vlgmr.msra.gmra.mxu0 %vm1953_vm1, %v6583_v27 }
 0x639   :  { %5449 = vmatprep.mubr.msk.f32.mxu0 %vm1953_vm1, %v6588_v28  ;;  %5475 = vmatpush3.msk.msra.mxu0 %vm1978_vm0, %v4864_v30  ;;  %v6784_v30 = vpop.permute.xlu1 %1945 }
 0x63a   :  { %5476 = vmatprep.subr.mxu0 %v4863_v32 }
 0x63b   :  { %5477 = vmatpush3.msra.mxu0 %v4863_v32 }
 0x63c   :  { %5450 = vmatmul.mubr.msk.f32.gmra.mxu0 %vm1953_vm1, %v6600_v31  ;;  %5506 = vmatprep.subr.mxu0 %v6086_v19 }
 0x63d   :  { %5452 = vmatprep.mubr.msk.f32.mxu0 %vm1953_vm1, %v6609_v22 }
 0x640   :  { %5453 = vmatmul.mubr.msk.f32.gmra.mxu0 %vm1953_vm1, %v6619_v23 }
 0x641   :  { %5455 = vmatprep.mubr.msk.f32.mxu0 %vm1953_vm1, %v6624_v25 }
 0x644   :  { %5456 = vmatmul.mubr.msk.f32.gmra.mxu0 %vm1953_vm1, %v6633_v26 }
 0x645   :  { %5478 = vmatprep.mubr.msk.f32.mxu0 %vm1953_vm1, %v6573_v18 }
 0x648   :  { %5479 = vmatmul.mubr.msk.f32.vlgmr.msra.gmra.mxu0 %vm1953_vm1, %v6583_v27 }
 0x649   :  { %5481 = vmatprep.mubr.msk.f32.mxu0 %vm1953_vm1, %v6588_v28  ;;  %5507 = vmatpush3.msra.mxu0 %v6086_v19 }
 0x64c   :  { %5482 = vmatmul.mubr.msk.f32.gmra.mxu0 %vm1953_vm1, %v6600_v31 }
 0x64d   :  { %5484 = vmatprep.mubr.msk.f32.mxu0 %vm1953_vm1, %v6609_v22 }
 0x650   :  { %5485 = vmatmul.mubr.msk.f32.gmra.mxu0 %vm1953_vm1, %v6619_v23 }
 0x651   :  { %5487 = vmatprep.mubr.msk.f32.mxu0 %vm1953_vm1, %v6624_v25 }
 0x654   :  { %5488 = vmatmul.mubr.msk.f32.gmra.mxu0 %vm1953_vm1, %v6633_v26 }
 0x655   :  { %5508 = vmatprep.mubr.msk.f32.mxu0 %vm2943_vm4, %v6700_v33 }
 0x658   :  { %5509 = vmatmul.mubr.msk.f32.vlgmr.msra.gmra.mxu0 %vm2943_vm4, %v6709_v34 }
 0x659   :  { %5511 = vmatprep.mubr.msk.f32.mxu0 %vm2943_vm4, %v6714_v38 }
 0x65c   :  { %5512 = vmatmul.mubr.msk.f32.gmra.mxu0 %vm2943_vm4, %v6723_v39 }
 0x65d   :  { %5514 = vmatprep.mubr.msk.f32.mxu0 %vm2943_vm4, %v6728_v40 }
 0x660   :  { %5515 = vmatmul.mubr.msk.f32.gmra.mxu0 %vm2943_vm4, %v6737_v41 }
 0x661   :  { %5517 = vmatprep.mubr.msk.f32.mxu0 %vm2943_vm4, %v6742_v43 }
 0x664   :  { %5518 = vmatmul.mubr.msk.f32.gmra.mxu0 %vm2943_vm4, %v6751_v37 }
 0x665   :  { %5540 = vmatprep.mubr.msk.f32.mxu0 %vm2943_vm4, %v6700_v33 }
 0x6d0   :  { %v5366_v46 = vpop.f32.mrf.mxu0 }
 0x6d1   :  { %v1725_v35 = vadd.f32 %v5366_v46, %v1636_v45 }
 0x6d2   :  { %v1705_v50 = vpop.f32.mrf.mxu0 }
 0x6d3   :  { %v4790_v51 = vmul.f32 -1.442695, %v1725_v35  ;;  %v1724_v42 = vadd.f32 %v1705_v50, %v1635_v48 }
 0x6d4   :  { %v5369_v53 = vpop.f32.mrf.mxu0 }
 0x6d5   :  { %5750 = vpow2.f32 %v4790_v51  ;;  %v4789_v54 = vmul.f32 -1.442695, %v1724_v42  ;;  %v1727_v24 = vadd.f32 %v5369_v53, %v1638_v60 }
 0x6d6   :  { %v1715_v56 = vpop.f32.mrf.mxu0 }
 0x6d7   :  { %5752 = vpow2.f32 %v4789_v54  ;;  %v4791_v4 = vmul.f32 -1.442695, %v1727_v24  ;;  %v1726_v11 = vadd.f32 %v1715_v56, %v1637_v6 }
 0x6d8   :  { %v5384_v57 = vpop.f32.mrf.mxu0 }
 0x6d9   :  { %v2054_v58 = vadd.f32 %v5384_v57, %v6757_v44  ;;  %5754 = vpow2.f32 %v4791_v4 }
 0x6da   :  { %v2048_v59 = vpop.f32.mrf.mxu0 }
 0x6db   :  { %2088 = vst.msk [vmem:[#allocation3 + $0x8] sm:$0xff] %vm202_vm3, %v2054_v58  ;;  %v2049_v61 = vadd.f32 %v2048_v59, %v6761_v55 }
 0x6dc   :  { %v5387_v63 = vpop.f32.mrf.mxu0 }
 0x6dd   :  { %2087 = vst.msk [vmem:[#allocation3] sm:$0xff] %vm202_vm3, %v2049_v61  ;;  %v2064_v0 = vadd.f32 %v5387_v63, %v6759_v52 }
 0x6de   :  { %v2058_v1 = vpop.f32.mrf.mxu0 }
 0x6df   :  { %2090 = vst.msk [vmem:[#allocation3 + $0x18] sm:$0xff] %vm202_vm3, %v2064_v0  ;;  %v2059_v2 = vadd.f32 %v2058_v1, %v6764_v36 }
 0x6e0   :  { %v5390_v5 = vpop.f32.mrf.mxu0 }
 0x6e1   :  { %2089 = vst.msk [vmem:[#allocation3 + $0x10] sm:$0xff] %vm202_vm3, %v2059_v2  ;;  %v2074_v8 = vadd.f32 %v5390_v5, %v6768_v62 }
 0x6e2   :  { %v5751_v9 = vpop.eup %5750  ;;  %v2068_v12 = vpop.f32.mrf.mxu0 }
 0x6e3   :  { %v1737_v14 = vadd.f32 1.0, %v5751_v9  ;;  %2092 = vst.msk [vmem:[#allocation3 + $0x28] sm:$0xff] %vm202_vm3, %v2074_v8  ;;  %v2069_v16 = vadd.f32 %v2068_v12, %v6778_v10 }
 0x6e4   :  { %v5753_v17 = vpop.eup %5752  ;;  %v5393_v20 = vpop.f32.mrf.mxu0 }
 0x6e5   :  { %5756 = vrcp.f32 %v1737_v14  ;;  %v1731_v21 = vadd.f32 1.0, %v5753_v17  ;;  %2091 = vst.msk [vmem:[#allocation3 + $0x20] sm:$0xff] %vm202_vm3, %v2069_v16  ;;  %v2084_v29 = vadd.f32 %v5393_v20, %v6774_v3 }
 0x6e6   :  { %5758 = vtanh.f32 %v1726_v11  ;;  %v2078_v32 = vpop.f32.mrf.mxu0  ;;  %v5755_v57 = vpop.eup %5754 }
 0x6e7   :  { %5760 = vrcp.f32 %v1731_v21  ;;  %2094 = vst.msk [vmem:[#allocation3 + $0x38] sm:$0xff] %vm202_vm3, %v2084_v29  ;;  %v2079_v45 = vadd.f32 %v2078_v32, %v6784_v30  ;;  %v1744_v0 = vadd.f32 1.0, %v5755_v57  ;;  %v1753_v29 = vsel %vm1752_vm5, 1, %v6085_v13 }
 0x6e8   :  { %v5416_v46 = vpop.f32.mrf.mxu0 }
 0x6e9   :  { %2093 = vst.msk [vmem:[#allocation3 + $0x30] sm:$0xff] %vm202_vm3, %v2079_v45  ;;  %v2293_v35 = vadd.f32 %v5416_v46, %v6757_v44  ;;  %5762 = vrcp.f32 %v1744_v0 }
 0x6ea   :  { %v2287_v48 = vpop.f32.mrf.mxu0 }
 0x6eb   :  { %2328 = vst.msk [vmem:[#allocation3 + $0x88] sm:$0xff] %vm202_vm3, %v2293_v35  ;;  %v2288_v50 = vadd.f32 %v2287_v48, %v6761_v55  ;;  %v1757_v35 = vrot.slane %v1753_v29, %v6482_v49  ;;  %v4853_v29 = vld [vmem:[%s7462_s23 + $0x58] sm:$0x3] }
 0x6ec   :  { %v5419_v51 = vpop.f32.mrf.mxu0 }
 0x6ed   :  { %2327 = vst.msk [vmem:[#allocation3 + $0x80] sm:$0xff] %vm202_vm3, %v2288_v50  ;;  %v2303_v42 = vadd.f32 %v5419_v51, %v6759_v52  ;;  %vm6825_vm6 = vcmp.eq.s32.totalorder %v1757_v35, 1  ;;  %v2936_v35 = vld [vmem:[#allocation3 + $0x8] sm:$0xff] }
 0x6ee   :  { %v2297_v53 = vpop.f32.mrf.mxu0 }
 0x6ef   :  { %2330 = vst.msk [vmem:[#allocation3 + $0x98] sm:$0xff] %vm202_vm3, %v2303_v42  ;;  %v2298_v54 = vadd.f32 %v2297_v53, %v6764_v36 }
 0x6f0   :  { %v5422_v56 = vpop.f32.mrf.mxu0 }
 0x6f1   :  { %2329 = vst.msk [vmem:[#allocation3 + $0x90] sm:$0xff] %vm202_vm3, %v2298_v54  ;;  %v2313_v58 = vadd.f32 %v5422_v56, %v6768_v62 }
 0x6f2   :  { %v5757_v59 = vpop.eup %5756  ;;  %v2307_v60 = vpop.f32.mrf.mxu0 }
 0x6f3   :  { %v5759_v61 = vpop.eup %5758  ;;  %2332 = vst.msk [vmem:[#allocation3 + $0xa8] sm:$0xff] %vm202_vm3, %v2313_v58  ;;  %v2308_v24 = vadd.f32 %v2307_v60, %v6778_v10  ;;  %v1747_v2 = vmul.f32 %v5757_v59, %v6547_v7  ;;  %v4809_v59 = vld [vmem:[%s7462_s23 + $0x18] sm:$0x3] }
 0x6f4   :  { %v5761_v63 = vpop.eup %5760  ;;  %v5425_v1 = vpop.f32.mrf.mxu0 }
 0x6f5   :  { %v1748_v4 = vmul.f32 %v5761_v63, %v5759_v61  ;;  %2331 = vst.msk [vmem:[#allocation3 + $0xa0] sm:$0xff] %vm202_vm3, %v2308_v24  ;;  %v2323_v5 = vadd.f32 %v5425_v1, %v6774_v3  ;;  %v4808_v63 = vld [vmem:[%s7462_s23 + $0x10] sm:$0xff]  ;;  %v6050_v1 = vld [vmem:[%s7436_s5 + $0x8] sm:$0xff] }
 0x6f6   :  { %v2317_v6 = vpop.f32.mrf.mxu0  ;;  %v5763_v50 = vpop.eup %5762 }
 0x6f7   :  { %v6803_v8 = vadd.f32 %v1748_v4, %v1747_v2  ;;  %2334 = vst.msk [vmem:[#allocation3 + $0xb8] sm:$0xff] %vm202_vm3, %v2323_v5  ;;  %v2318_v9 = vadd.f32 %v2317_v6, %v6784_v30  ;;  %v6051_v4 = vld [vmem:[%s7436_s5 + $0x10] sm:$0xff]  ;;  %v4831_v5 = vld [vmem:[%s7462_s23 + $0x38] sm:$0x3] }
 0x6f8   :  { %v5448_v11 = vpop.f32.mrf.mxu0 }
 0x6f9   :  { %2333 = vst.msk [vmem:[#allocation3 + $0xb0] sm:$0xff] %vm202_vm3, %v2318_v9  ;;  %v2533_v12 = vadd.f32 %v5448_v11, %v6757_v44  ;;  %5764 = vtanh.f32 %v6803_v8 }
 0x6fa   :  { %v2527_v7 = vpop.f32.mrf.mxu0 }
 0x6fb   :  { %2568 = vst.msk [vmem:[#allocation3 + $0x108] sm:$0xff] %vm202_vm3, %v2533_v12  ;;  %v2528_v14 = vadd.f32 %v2527_v7, %v6761_v55  ;;  %v6052_v12 = vld [vmem:[%s7436_s5 + $0x18] sm:$0xff] }
 0x6fc   :  { %v5451_v16 = vpop.f32.mrf.mxu0 }
 0x6fd   :  { %2567 = vst.msk [vmem:[#allocation3 + $0x100] sm:$0xff] %vm202_vm3, %v2528_v14  ;;  %v2543_v17 = vadd.f32 %v5451_v16, %v6759_v52 }
 0x6fe   :  { %v2537_v20 = vpop.f32.mrf.mxu0 }
 0x6ff   :  { %2570 = vst.msk [vmem:[#allocation3 + $0x118] sm:$0xff] %vm202_vm3, %v2543_v17  ;;  %v2538_v21 = vadd.f32 %v2537_v20, %v6764_v36  ;;  %v4830_v17 = vld [vmem:[%s7462_s23 + $0x30] sm:$0xff] }
 0x700   :  { %v5454_v32 = vpop.f32.mrf.mxu0 }
 0x701   :  { %2569 = vst.msk [vmem:[#allocation3 + $0x110] sm:$0xff] %vm202_vm3, %v2538_v21  ;;  %v2553_v45 = vadd.f32 %v5454_v32, %v6768_v62 }
 0x702   :  { %v2547_v46 = vpop.f32.mrf.mxu0 }
 0x703   :  { %2572 = vst.msk [vmem:[#allocation3 + $0x128] sm:$0xff] %vm202_vm3, %v2553_v45  ;;  %v2548_v47 = vadd.f32 %v2547_v46, %v6778_v10 }
 0x704   :  { %v5457_v48 = vpop.f32.mrf.mxu0 }
 0x705   :  { %2571 = vst.msk [vmem:[#allocation3 + $0x120] sm:$0xff] %vm202_vm3, %v2548_v47  ;;  %v2563_v51 = vadd.f32 %v5457_v48, %v6774_v3 }
 0x706   :  { %v5765_v42 = vpop.eup %5764  ;;  %v2557_v53 = vpop.f32.mrf.mxu0 }
 0x707   :  { %2574 = vst.msk [vmem:[#allocation3 + $0x138] sm:$0xff] %vm202_vm3, %v2563_v51  ;;  %v2558_v56 = vadd.f32 %v2557_v53, %v6784_v30  ;;  %v6831_v57 = vmul.f32 %v5765_v42, %v5763_v50  ;;  %v2935_v50 = vld [vmem:[#allocation3] sm:$0xff] }
 0x708   :  { %v5480_v58 = vpop.f32.mrf.mxu0 }
 0x709   :  { %2573 = vst.msk [vmem:[#allocation3 + $0x130] sm:$0xff] %vm202_vm3, %v2558_v56  ;;  %v2773_v60 = vadd.f32 %v5480_v58, %v6757_v44  ;;  %v1759_v61 = vsel %vm6825_vm6, %v6831_v57, %v6556_v15  ;;  %5370 = vmatprep.subr.mxu1 %v6831_v57  ;;  %v2938_v56 = vld [vmem:[#allocation3 + $0x18] sm:$0xff] }
 0x70a   :  { %5371 = vmatpush3.msra.mxu1 %v6831_v57  ;;  %v2767_v24 = vpop.f32.mrf.mxu0 }
 0x70b   :  { %2808 = vst.msk [vmem:[#allocation3 + $0x188] sm:$0xff] %vm202_vm3, %v2773_v60  ;;  %v2768_v0 = vadd.f32 %v2767_v24, %v6761_v55  ;;  %5373 = vmatmul.mubr.msk.f32.vlgmr.msra.gmra.mxu1 %vm876_vm2, %v6050_v1  ;;  %5394 = vmatprep.subr.msk.mxu1 %vm1978_vm0, %v4809_v59  ;;  %v2937_v24 = vld [vmem:[#allocation3 + $0x10] sm:$0xff] }
 0x70c   :  { %v5483_v2 = vpop.f32.mrf.mxu0  ;;  %5375 = vmatprep.mubr.msk.f32.mxu1 %vm876_vm2, %v6051_v4  ;;  %5395 = vmatpush3.msk.msra.mxu1 %vm1978_vm0, %v4809_v59 }
 0x70d   :  { %2807 = vst.msk [vmem:[#allocation3 + $0x180] sm:$0xff] %vm202_vm3, %v2768_v0  ;;  %v2783_v6 = vadd.f32 %v5483_v2, %v6759_v52  ;;  %5396 = vmatprep.subr.mxu1 %v4808_v63 }
 0x70e   :  { %v2777_v9 = vpop.f32.mrf.mxu0  ;;  %5397 = vmatpush3.msra.mxu1 %v4808_v63 }
 0x70f   :  { %2810 = vst.msk [vmem:[#allocation3 + $0x198] sm:$0xff] %vm202_vm3, %v2783_v6  ;;  %v2778_v11 = vadd.f32 %v2777_v9, %v6764_v36  ;;  %5376 = vmatmul.mubr.msk.f32.gmra.mxu1 %vm876_vm2, %v6052_v12  ;;  %5426 = vmatprep.subr.msk.mxu1 %vm1978_vm0, %v4831_v5  ;;  %v4852_v6 = vld [vmem:[%s7462_s23 + $0x50] sm:$0xff]  ;;  %v2942_v9 = vld [vmem:[#allocation3 + $0x38] sm:$0xff] }
 0x710   :  { %v5486_v7 = vpop.f32.mrf.mxu0  ;;  %5398 = vmatprep.mubr.msk.f32.mxu1 %vm1953_vm1, %v6573_v18  ;;  %v4875_v12 = vld [vmem:[%s7462_s23 + $0x78] sm:$0x3] }
 0x711   :  { %2809 = vst.msk [vmem:[#allocation3 + $0x190] sm:$0xff] %vm202_vm3, %v2778_v11  ;;  %v2793_v14 = vadd.f32 %v5486_v7, %v6768_v62 }
 0x712   :  { %v2787_v16 = vpop.f32.mrf.mxu0 }
 0x713   :  { %2812 = vst.msk [vmem:[#allocation3 + $0x1a8] sm:$0xff] %vm202_vm3, %v2793_v14  ;;  %v2788_v20 = vadd.f32 %v2787_v16, %v6778_v10  ;;  %5399 = vmatmul.mubr.msk.f32.vlgmr.msra.gmra.mxu1 %vm1953_vm1, %v6583_v27  ;;  %v2941_v14 = vld [vmem:[#allocation3 + $0x30] sm:$0xff] }
 0x714   :  { %v5489_v21 = vpop.f32.mrf.mxu0  ;;  %5401 = vmatprep.mubr.msk.f32.mxu1 %vm1953_vm1, %v6588_v28  ;;  %5427 = vmatpush3.msk.msra.mxu1 %vm1978_vm0, %v4831_v5 }
 0x715   :  { %2811 = vst.msk [vmem:[#allocation3 + $0x1a0] sm:$0xff] %vm202_vm3, %v2788_v20  ;;  %v2803_v32 = vadd.f32 %v5489_v21, %v6774_v3  ;;  %5428 = vmatprep.subr.mxu1 %v4830_v17 }
 0x716   :  { %v2797_v45 = vpop.f32.mrf.mxu0  ;;  %5429 = vmatpush3.msra.mxu1 %v4830_v17  ;;  %v2940_v17 = vld [vmem:[#allocation3 + $0x28] sm:$0xff] }
 0x717   :  { %2814 = vst.msk [vmem:[#allocation3 + $0x1b8] sm:$0xff] %vm202_vm3, %v2803_v32  ;;  %v2798_v46 = vadd.f32 %v2797_v45, %v6784_v30  ;;  %5402 = vmatmul.mubr.msk.f32.gmra.mxu1 %vm1953_vm1, %v6600_v31  ;;  %5458 = vmatprep.subr.msk.mxu1 %vm1978_vm0, %v4853_v29 }
 0x718   :  { %v5510_v47 = vpop.f32.mrf.mxu0  ;;  %5404 = vmatprep.mubr.msk.f32.mxu1 %vm1953_vm1, %v6609_v22 }
 0x719   :  { %2813 = vst.msk [vmem:[#allocation3 + $0x1b0] sm:$0xff] %vm202_vm3, %v2798_v46  ;;  %v3074_v48 = vadd.f32 %v5510_v47, %v2936_v35 }
 0x71a   :  { %v3034_v51 = vpop.f32.mrf.mxu0 }
 0x71b   :  { %v4894_v42 = vmul.f32 -1.442695, %v3074_v48  ;;  %v3073_v53 = vadd.f32 %v3034_v51, %v2935_v50  ;;  %5405 = vmatmul.mubr.msk.f32.gmra.mxu1 %vm1953_vm1, %v6619_v23  ;;  %v2939_v48 = vld [vmem:[#allocation3 + $0x20] sm:$0xff] }
 0x71c   :  { %v5513_v58 = vpop.f32.mrf.mxu0  ;;  %5407 = vmatprep.mubr.msk.f32.mxu1 %vm1953_vm1, %v6624_v25 }
 0x71d   :  { %5766 = vpow2.f32 %v4894_v42  ;;  %v4893_v59 = vmul.f32 -1.442695, %v3073_v53  ;;  %v3076_v60 = vadd.f32 %v5513_v58, %v2938_v56  ;;  %v4874_v58 = vld [vmem:[%s7462_s23 + $0x70] sm:$0xff] }
 0x71e   :  { %v3044_v63 = vpop.f32.mrf.mxu0 }
 0x71f   :  { %5768 = vpow2.f32 %v4893_v59  ;;  %v4896_v0 = vmul.f32 -1.442695, %v3076_v60  ;;  %v3075_v1 = vadd.f32 %v3044_v63, %v2937_v24  ;;  %5408 = vmatmul.mubr.msk.f32.gmra.mxu1 %vm1953_vm1, %v6633_v26 }
 0x720   :  { %v5516_v2 = vpop.f32.mrf.mxu0  ;;  %5430 = vmatprep.mubr.msk.f32.mxu1 %vm1953_vm1, %v6573_v18 }
 0x721   :  { %5770 = vpow2.f32 %v4896_v0  ;;  %v4895_v4 = vmul.f32 -1.442695, %v3075_v1  ;;  %v3078_v21 = vadd.f32 %v5516_v2, %v2940_v17 }
 0x722   :  { %v3054_v5 = vpop.f32.mrf.mxu0 }
 0x723   :  { %5772 = vpow2.f32 %v4895_v4  ;;  %5431 = vmatmul.mubr.msk.f32.vlgmr.msra.gmra.mxu1 %vm1953_vm1, %v6583_v27  ;;  %v3077_v51 = vadd.f32 %v3054_v5, %v2939_v48 }
 0x724   :  { %v5519_v11 = vpop.f32.mrf.mxu0  ;;  %5433 = vmatprep.mubr.msk.f32.mxu1 %vm1953_vm1, %v6588_v28  ;;  %5459 = vmatpush3.msk.msra.mxu1 %vm1978_vm0, %v4853_v29  ;;  %5774 = vtanh.f32 %v3078_v21 }
 0x725   :  { %v3080_v7 = vadd.f32 %v5519_v11, %v2942_v9  ;;  %5460 = vmatprep.subr.mxu1 %v4852_v6 }
 0x726   :  { %v3064_v16 = vpop.f32.mrf.mxu0  ;;  %5461 = vmatpush3.msra.mxu1 %v4852_v6 }
 0x727   :  { %v3079_v20 = vadd.f32 %v3064_v16, %v2941_v14  ;;  %5434 = vmatmul.mubr.msk.f32.gmra.mxu1 %vm1953_vm1, %v6600_v31  ;;  %5490 = vmatprep.subr.msk.mxu1 %vm1978_vm0, %v4875_v12  ;;  %v4898_v29 = vmul.f32 -1.442695, %v3080_v7 }
 0x728   :  { %5436 = vmatprep.mubr.msk.f32.mxu1 %vm1953_vm1, %v6609_v22 }
 0x729   :  { %v4897_v45 = vmul.f32 -1.442695, %v3079_v20  ;;  %5776 = vpow2.f32 %v4898_v29 }
 0x72a   :  { %v5767_v32 = vpop.eup %5766 }
 0x72b   :  { %v3088_v46 = vadd.f32 1.0, %v5767_v32  ;;  %5437 = vmatmul.mubr.msk.f32.gmra.mxu1 %vm1953_vm1, %v6619_v23  ;;  %5778 = vpow2.f32 %v4897_v45 }
 0x72c   :  { %v5769_v35 = vpop.eup %5768  ;;  %5439 = vmatprep.mubr.msk.f32.mxu1 %vm1953_vm1, %v6624_v25 }
 0x72d   :  { %v3087_v47 = vadd.f32 1.0, %v5769_v35  ;;  %5780 = vrcp.f32 %v3088_v46 }
 0x72e   :  { %v5771_v50 = vpop.eup %5770 }
 0x72f   :  { %v3100_v42 = vadd.f32 1.0, %v5771_v50  ;;  %5440 = vmatmul.mubr.msk.f32.gmra.mxu1 %vm1953_vm1, %v6633_v26  ;;  %5782 = vrcp.f32 %v3087_v47 }
 0x730   :  { %v5773_v53 = vpop.eup %5772  ;;  %5462 = vmatprep.mubr.msk.f32.mxu1 %vm1953_vm1, %v6573_v18 }
 0x731   :  { %5784 = vrcp.f32 %v3100_v42  ;;  %v3099_v56 = vadd.f32 1.0, %v5773_v53  ;;  %v5775_v59 = vpop.eup %5774  ;;  %v1762_v42 = vld [vmem:[#allocation2 + $0xf0] sm:$0xff] }
 0x732   :  { %5786 = vtanh.f32 %v3077_v51 }
 0x733   :  { %5788 = vrcp.f32 %v3099_v56  ;;  %5463 = vmatmul.mubr.msk.f32.vlgmr.msra.gmra.mxu1 %vm1953_vm1, %v6583_v27 }
 0x734   :  { %5465 = vmatprep.mubr.msk.f32.mxu1 %vm1953_vm1, %v6588_v28  ;;  %5491 = vmatpush3.msk.msra.mxu1 %vm1978_vm0, %v4875_v12 }
 0x735   :  { %5492 = vmatprep.subr.mxu1 %v4874_v58 }
 0x736   :  { %5493 = vmatpush3.msra.mxu1 %v4874_v58  ;;  %v5777_v60 = vpop.eup %5776 }
 0x737   :  { %5466 = vmatmul.mubr.msk.f32.gmra.mxu1 %vm1953_vm1, %v6600_v31  ;;  %v3114_v2 = vadd.f32 1.0, %v5777_v60 }
 0x738   :  { %5468 = vmatprep.mubr.msk.f32.mxu1 %vm1953_vm1, %v6609_v22  ;;  %v5779_v24 = vpop.eup %5778 }
 0x739   :  { %v3113_v11 = vadd.f32 1.0, %v5779_v24  ;;  %5790 = vrcp.f32 %v3114_v2 }
 0x73a   :  { %v5781_v63 = vpop.eup %5780 }
 0x73b   :  { %5469 = vmatmul.mubr.msk.f32.gmra.mxu1 %vm1953_vm1, %v6619_v23  ;;  %v3122_v6 = vmul.f32 %v5781_v63, %v5775_v59 }
 0x73c   :  { %5471 = vmatprep.mubr.msk.f32.mxu1 %vm1953_vm1, %v6624_v25  ;;  %v5783_v0 = vpop.eup %5782 }
 0x73e   :  { %v5785_v1 = vpop.eup %5784 }
 0x73f   :  { %v5787_v4 = vpop.eup %5786  ;;  %v3120_v5 = vmul.f32 0.0, %v5785_v1  ;;  %5472 = vmatmul.mubr.msk.f32.gmra.mxu1 %vm1953_vm1, %v6633_v26 }
 0x740   :  { %v5789_v9 = vpop.eup %5788  ;;  %5494 = vmatprep.mubr.msk.f32.mxu1 %vm1953_vm1, %v6573_v18  ;;  %v3121_v14 = vmul.f32 %v5787_v4, %v5783_v0 }
 0x741   :  { %v3119_v12 = vmul.f32 0.0, %v5789_v9  ;;  %v6950_v7 = vadd.f32 %v3122_v6, %v3120_v5 }
 0x743   :  { %v6952_v16 = vadd.f32 %v3121_v14, %v3119_v12  ;;  %5495 = vmatmul.mubr.msk.f32.vlgmr.msra.gmra.mxu1 %vm1953_vm1, %v6583_v27  ;;  %5792 = vtanh.f32 %v6950_v7 }
 0x744   :  { %5794 = vrcp.f32 %v3113_v11  ;;  %5497 = vmatprep.mubr.msk.f32.mxu1 %vm1953_vm1, %v6588_v28 }
 0x745   :  { %5796 = vtanh.f32 %v6952_v16 }
 0x746   :  { %v5791_v18 = vpop.eup %5790 }
 0x747   :  { %5498 = vmatmul.mubr.msk.f32.gmra.mxu1 %vm1953_vm1, %v6600_v31 }
 0x748   :  { %5500 = vmatprep.mubr.msk.f32.mxu1 %vm1953_vm1, %v6609_v22 }
 0x74b   :  { %5501 = vmatmul.mubr.msk.f32.gmra.mxu1 %vm1953_vm1, %v6619_v23  ;;  %v1761_v23 = vld [vmem:[#allocation2 + $0xe8] sm:$0xff] }
 0x74c   :  { %5503 = vmatprep.mubr.msk.f32.mxu1 %vm1953_vm1, %v6624_v25 }
 0x74f   :  { %5504 = vmatmul.mubr.msk.f32.gmra.mxu1 %vm1953_vm1, %v6633_v26 }
 0x750   :  { %v5793_v27 = vpop.eup %5792  ;;  %5524 = vmatprep.mubr.msk.f32.mxu1 %vm2943_vm4, %v6700_v33 }
 0x751   :  { %v5795_v28 = vpop.eup %5794  ;;  %v6972_v17 = vmul.f32 %v5793_v27, %v5791_v18 }
 0x752   :  { %v5797_v31 = vpop.eup %5796 }
 0x753   :  { %5520 = vmatprep.subr.mxu1 %v6972_v17  ;;  %v6975_v22 = vmul.f32 %v5797_v31, %v5795_v28 }
 0x754   :  { %5521 = vmatpush3.msra.mxu1 %v6972_v17 }
 0x755   :  { %5522 = vmatprep.subr.mxu1 %v6975_v22 }
 0x756   :  { %5523 = vmatpush3.msra.mxu1 %v6975_v22 }
 0x757   :  { %5525 = vmatmul.mubr.msk.f32.vlgmr.msra.gmra.mxu1 %vm2943_vm4, %v6709_v34  ;;  %v1760_v34 = vld [vmem:[#allocation2 + $0xe0] sm:$0xff] }
 0x758   :  { %5527 = vmatprep.mubr.msk.f32.mxu1 %vm2943_vm4, %v6714_v38 }
 0x75b   :  { %5528 = vmatmul.mubr.msk.f32.gmra.mxu1 %vm2943_vm4, %v6723_v39 }
 0x75c   :  { %5530 = vmatprep.mubr.msk.f32.mxu1 %vm2943_vm4, %v6728_v40 }
 0x75f   :  { %5531 = vmatmul.mubr.msk.f32.gmra.mxu1 %vm2943_vm4, %v6737_v41 }
 0x760   :  { %5533 = vmatprep.mubr.msk.f32.mxu1 %vm2943_vm4, %v6742_v43 }
 0x763   :  { %5534 = vmatmul.mubr.msk.f32.gmra.mxu1 %vm2943_vm4, %v6751_v37  ;;  %v1763_v37 = vld [vmem:[#allocation2 + $0xf8] sm:$0xff] }
 0x764   :  { %5556 = vmatprep.mubr.msk.f32.mxu1 %vm2943_vm4, %v6700_v33 }
 0x7cb   :  { %v5374_v25 = vpop.f32.mrf.mxu1 }
 0x7cc   :  { %v1850_v26 = vadd.f32 %v5374_v25, %v1761_v23 }
 0x7cd   :  { %v1830_v38 = vpop.f32.mrf.mxu1 }
 0x7ce   :  { %v4797_v39 = vmul.f32 -1.442695, %v1850_v26  ;;  %v1849_v20 = vadd.f32 %v1830_v38, %v1760_v34 }
 0x7cf   :  { %v5377_v40 = vpop.f32.mrf.mxu1 }
 0x7d0   :  { %5798 = vpow2.f32 %v4797_v39  ;;  %v4796_v21 = vmul.f32 -1.442695, %v1849_v20  ;;  %v1852_v45 = vadd.f32 %v5377_v40, %v1763_v37 }
 0x7d1   :  { %v1840_v41 = vpop.f32.mrf.mxu1 }
 0x7d2   :  { %5800 = vpow2.f32 %v4796_v21  ;;  %v4798_v50 = vmul.f32 -1.442695, %v1852_v45  ;;  %v1851_v58 = vadd.f32 %v1840_v41, %v1762_v42 }
 0x7d3   :  { %v5400_v29 = vpop.f32.mrf.mxu1 }
 0x7d4   :  { %v2173_v43 = vadd.f32 %v5400_v29, %v6757_v44  ;;  %5802 = vpow2.f32 %v4798_v50 }
 0x7d5   :  { %v2167_v32 = vpop.f32.mrf.mxu1 }
 0x7d6   :  { %2208 = vst.msk [vmem:[#allocation3 + $0x48] sm:$0xff] %vm202_vm3, %v2173_v43  ;;  %v2168_v33 = vadd.f32 %v2167_v32, %v6761_v55 }
 0x7d7   :  { %v5403_v46 = vpop.f32.mrf.mxu1 }
 0x7d8   :  { %2207 = vst.msk [vmem:[#allocation3 + $0x40] sm:$0xff] %vm202_vm3, %v2168_v33  ;;  %v2183_v35 = vadd.f32 %v5403_v46, %v6759_v52 }
 0x7d9   :  { %v2177_v47 = vpop.f32.mrf.mxu1 }
 0x7da   :  { %2210 = vst.msk [vmem:[#allocation3 + $0x58] sm:$0xff] %vm202_vm3, %v2183_v35  ;;  %v2178_v48 = vadd.f32 %v2177_v47, %v6764_v36 }
 0x7db   :  { %v5406_v51 = vpop.f32.mrf.mxu1 }
 0x7dc   :  { %2209 = vst.msk [vmem:[#allocation3 + $0x50] sm:$0xff] %vm202_vm3, %v2178_v48  ;;  %v2193_v53 = vadd.f32 %v5406_v51, %v6768_v62  ;;  %v6053_v48 = vld [vmem:[%s7457_s4] sm:$0x1] }
 0x7dd   :  { %v5799_v56 = vpop.eup %5798  ;;  %v2187_v59 = vpop.f32.mrf.mxu1  ;;  %vm1877_vm2 = vcmp.eq.s32.totalorder %v6053_v48, 8 }
 0x7de   :  { %v1862_v60 = vadd.f32 1.0, %v5799_v56  ;;  %2212 = vst.msk [vmem:[#allocation3 + $0x68] sm:$0xff] %vm202_vm3, %v2193_v53  ;;  %v2188_v24 = vadd.f32 %v2187_v59, %v6778_v10  ;;  %v1878_v53 = vsel %vm1877_vm2, 1, %v6085_v13 }
 0x7df   :  { %v5801_v63 = vpop.eup %5800  ;;  %v5409_v0 = vpop.f32.mrf.mxu1 }
 0x7e0   :  { %5804 = vrcp.f32 %v1862_v60  ;;  %v1856_v1 = vadd.f32 1.0, %v5801_v63  ;;  %2211 = vst.msk [vmem:[#allocation3 + $0x60] sm:$0xff] %vm202_vm3, %v2188_v24  ;;  %v2203_v2 = vadd.f32 %v5409_v0, %v6774_v3  ;;  %v1882_v60 = vrot.slane %v1878_v53, %v6482_v49 }
 0x7e1   :  { %5806 = vtanh.f32 %v1851_v58  ;;  %v2197_v4 = vpop.f32.mrf.mxu1  ;;  %v5803_v23 = vpop.eup %5802 }
 0x7e2   :  { %5808 = vrcp.f32 %v1856_v1  ;;  %2214 = vst.msk [vmem:[#allocation3 + $0x78] sm:$0xff] %vm202_vm3, %v2203_v2  ;;  %v2198_v5 = vadd.f32 %v2197_v4, %v6784_v30  ;;  %v1869_v40 = vadd.f32 1.0, %v5803_v23  ;;  %vm1883_vm7 = vcmp.eq.s32.totalorder %v1882_v60, 1 }
 0x7e3   :  { %v5432_v6 = vpop.f32.mrf.mxu1 }
 0x7e4   :  { %2213 = vst.msk [vmem:[#allocation3 + $0x70] sm:$0xff] %vm202_vm3, %v2198_v5  ;;  %v2413_v9 = vadd.f32 %v5432_v6, %v6757_v44  ;;  %5810 = vrcp.f32 %v1869_v40 }
 0x7e5   :  { %v2407_v11 = vpop.f32.mrf.mxu1  ;;  %v3143_v48 = vld [vmem:[#allocation3 + $0x68] sm:$0xff] }
 0x7e6   :  { %2448 = vst.msk [vmem:[#allocation3 + $0xc8] sm:$0xff] %vm202_vm3, %v2413_v9  ;;  %v2408_v12 = vadd.f32 %v2407_v11, %v6761_v55 }
 0x7e7   :  { %v5435_v14 = vpop.f32.mrf.mxu1 }
 0x7e8   :  { %2447 = vst.msk [vmem:[#allocation3 + $0xc0] sm:$0xff] %vm202_vm3, %v2408_v12  ;;  %v2423_v18 = vadd.f32 %v5435_v14, %v6759_v52 }
 0x7e9   :  { %v2417_v27 = vpop.f32.mrf.mxu1 }
 0x7ea   :  { %2450 = vst.msk [vmem:[#allocation3 + $0xd8] sm:$0xff] %vm202_vm3, %v2423_v18  ;;  %v2418_v28 = vadd.f32 %v2417_v27, %v6764_v36 }
 0x7eb   :  { %v5438_v31 = vpop.f32.mrf.mxu1 }
 0x7ec   :  { %2449 = vst.msk [vmem:[#allocation3 + $0xd0] sm:$0xff] %vm202_vm3, %v2418_v28  ;;  %v2433_v25 = vadd.f32 %v5438_v31, %v6768_v62 }
 0x7ed   :  { %v5805_v26 = vpop.eup %5804  ;;  %v2427_v34 = vpop.f32.mrf.mxu1 }
 0x7ee   :  { %v5807_v38 = vpop.eup %5806  ;;  %2452 = vst.msk [vmem:[#allocation3 + $0xe8] sm:$0xff] %vm202_vm3, %v2433_v25  ;;  %v2428_v39 = vadd.f32 %v2427_v34, %v6778_v10  ;;  %v1872_v41 = vmul.f32 %v5805_v26, %v6803_v8  ;;  %v3139_v25 = vld [vmem:[#allocation3 + $0x48] sm:$0xff]  ;;  %v3138_v34 = vld [vmem:[#allocation3 + $0x40] sm:$0xff] }
 0x7ef   :  { %v5809_v20 = vpop.eup %5808  ;;  %v5441_v21 = vpop.f32.mrf.mxu1 }
 0x7f0   :  { %v1873_v29 = vmul.f32 %v5809_v20, %v5807_v38  ;;  %2451 = vst.msk [vmem:[#allocation3 + $0xe0] sm:$0xff] %vm202_vm3, %v2428_v39  ;;  %v2443_v43 = vadd.f32 %v5441_v21, %v6774_v3 }
 0x7f1   :  { %v2437_v32 = vpop.f32.mrf.mxu1  ;;  %v5811_v0 = vpop.eup %5810 }
 0x7f2   :  { %v1874_v37 = vadd.f32 %v1873_v29, %v1872_v41  ;;  %2454 = vst.msk [vmem:[#allocation3 + $0xf8] sm:$0xff] %vm202_vm3, %v2443_v43  ;;  %v2438_v33 = vadd.f32 %v2437_v32, %v6784_v30 }
 0x7f3   :  { %v5464_v45 = vpop.f32.mrf.mxu1 }
 0x7f4   :  { %5812 = vtanh.f32 %v1874_v37  ;;  %2453 = vst.msk [vmem:[#allocation3 + $0xf0] sm:$0xff] %vm202_vm3, %v2438_v33  ;;  %v2653_v46 = vadd.f32 %v5464_v45, %v6757_v44  ;;  %v3145_v45 = vld [vmem:[#allocation3 + $0x78] sm:$0xff] }
 0x7f5   :  { %v2647_v35 = vpop.f32.mrf.mxu1 }
 0x7f6   :  { %2688 = vst.msk [vmem:[#allocation3 + $0x148] sm:$0xff] %vm202_vm3, %v2653_v46  ;;  %v2648_v8 = vadd.f32 %v2647_v35, %v6761_v55 }
 0x7f7   :  { %v5467_v47 = vpop.f32.mrf.mxu1 }
 0x7f8   :  { %2687 = vst.msk [vmem:[#allocation3 + $0x140] sm:$0xff] %vm202_vm3, %v2648_v8  ;;  %v2663_v50 = vadd.f32 %v5467_v47, %v6759_v52  ;;  %v3144_v8 = vld [vmem:[#allocation3 + $0x70] sm:$0xff] }
 0x7f9   :  { %v2657_v51 = vpop.f32.mrf.mxu1 }
 0x7fa   :  { %2690 = vst.msk [vmem:[#allocation3 + $0x158] sm:$0xff] %vm202_vm3, %v2663_v50  ;;  %v2658_v42 = vadd.f32 %v2657_v51, %v6764_v36 }
 0x7fb   :  { %v5470_v56 = vpop.f32.mrf.mxu1 }
 0x7fc   :  { %2689 = vst.msk [vmem:[#allocation3 + $0x150] sm:$0xff] %vm202_vm3, %v2658_v42  ;;  %v2673_v58 = vadd.f32 %v5470_v56, %v6768_v62 }
 0x7fd   :  { %v2667_v59 = vpop.f32.mrf.mxu1 }
 0x7fe   :  { %2692 = vst.msk [vmem:[#allocation3 + $0x168] sm:$0xff] %vm202_vm3, %v2673_v58  ;;  %v2668_v24 = vadd.f32 %v2667_v59, %v6778_v10 }
 0x7ff   :  { %v5473_v63 = vpop.f32.mrf.mxu1 }
 0x800   :  { %2691 = vst.msk [vmem:[#allocation3 + $0x160] sm:$0xff] %vm202_vm3, %v2668_v24  ;;  %v2683_v1 = vadd.f32 %v5473_v63, %v6774_v3  ;;  %v3142_v24 = vld [vmem:[#allocation3 + $0x60] sm:$0xff] }
 0x801   :  { %v5813_v2 = vpop.eup %5812  ;;  %v2677_v4 = vpop.f32.mrf.mxu1 }
 0x802   :  { %v1876_v5 = vmul.f32 %v5813_v2, %v5811_v0  ;;  %2694 = vst.msk [vmem:[#allocation3 + $0x178] sm:$0xff] %vm202_vm3, %v2683_v1  ;;  %v2678_v6 = vadd.f32 %v2677_v4, %v6784_v30 }
 0x803   :  { %v5496_v9 = vpop.f32.mrf.mxu1 }
 0x804   :  { %2693 = vst.msk [vmem:[#allocation3 + $0x170] sm:$0xff] %vm202_vm3, %v2678_v6  ;;  %v2893_v11 = vadd.f32 %v5496_v9, %v6757_v44  ;;  %v1884_v12 = vsel %vm1883_vm7, %v1876_v5, %v1759_v61 }
 0x805   :  { %v2887_v14 = vpop.f32.mrf.mxu1  ;;  %1885 = vst.msk [vmem:[#allocation4] sm:$0xff] %vm202_vm3, %v1884_v12 }
 0x806   :  { %2928 = vst.msk [vmem:[#allocation3 + $0x1c8] sm:$0xff] %vm202_vm3, %v2893_v11  ;;  %v2888_v18 = vadd.f32 %v2887_v14, %v6761_v55 }
 0x807   :  { %v5499_v27 = vpop.f32.mrf.mxu1 }
 0x808   :  { %2927 = vst.msk [vmem:[#allocation3 + $0x1c0] sm:$0xff] %vm202_vm3, %v2888_v18  ;;  %v2903_v28 = vadd.f32 %v5499_v27, %v6759_v52 }
 0x809   :  { %v2897_v31 = vpop.f32.mrf.mxu1 }
 0x80a   :  { %2930 = vst.msk [vmem:[#allocation3 + $0x1d8] sm:$0xff] %vm202_vm3, %v2903_v28  ;;  %v2898_v44 = vadd.f32 %v2897_v31, %v6764_v36 }
 0x80b   :  { %v5502_v54 = vpop.f32.mrf.mxu1 }
 0x80c   :  { %2929 = vst.msk [vmem:[#allocation3 + $0x1d0] sm:$0xff] %vm202_vm3, %v2898_v44  ;;  %v2913_v15 = vadd.f32 %v5502_v54, %v6768_v62 }
 0x80d   :  { %v2907_v57 = vpop.f32.mrf.mxu1 }
 0x80e   :  { %2932 = vst.msk [vmem:[#allocation3 + $0x1e8] sm:$0xff] %vm202_vm3, %v2913_v15  ;;  %v2908_v55 = vadd.f32 %v2907_v57, %v6778_v10  ;;  %v3141_v10 = vld [vmem:[#allocation3 + $0x58] sm:$0xff] }
 0x80f   :  { %v5505_v61 = vpop.f32.mrf.mxu1 }
 0x810   :  { %2931 = vst.msk [vmem:[#allocation3 + $0x1e0] sm:$0xff] %vm202_vm3, %v2908_v55  ;;  %v2923_v52 = vadd.f32 %v5505_v61, %v6774_v3  ;;  %v3140_v3 = vld [vmem:[#allocation3 + $0x50] sm:$0xff]  ;;  %v7079_v61 = vld [vmem:[%s7434_s3] sm:$0x1] }
 0x811   :  { %v2917_v23 = vpop.f32.mrf.mxu1  ;;  %vm3129_vm8 = vcmp.eq.s32.totalorder %v7079_v61, 1  ;;  %vm3307_vm9 = vcmp.eq.s32.totalorder %v7079_v61, 2  ;;  %vm3485_vm12 = vcmp.eq.s32.totalorder %v7079_v61, 3  ;;  %vm3663_vm14 = vcmp.eq.s32.totalorder %v7079_v61, 4 }
 0x812   :  { %2934 = vst.msk [vmem:[#allocation3 + $0x1f8] sm:$0xff] %vm202_vm3, %v2923_v52  ;;  %v2918_v36 = vadd.f32 %v2917_v23, %v6784_v30  ;;  %vm3841_vm0 = vcmp.eq.s32.totalorder %v7079_v61, 5  ;;  %vm4019_vm5 = vcmp.eq.s32.totalorder %v7079_v61, 6  ;;  %vm4197_vm2 = vcmp.eq.s32.totalorder %v7079_v61, 7 }
 0x814   :  { %2933 = vst.msk [vmem:[#allocation3 + $0x1f0] sm:$0xff] %vm202_vm3, %v2918_v36 }
 0x817   :  { %v5526_v26 = vpop.f32.mrf.mxu1 }
 0x818   :  { %v3252_v62 = vadd.f32 %v5526_v26, %v3139_v25 }
 0x819   :  { %v3212_v38 = vpop.f32.mrf.mxu1 }
 0x81a   :  { %v4908_v39 = vmul.f32 -1.442695, %v3252_v62  ;;  %v3251_v20 = vadd.f32 %v3212_v38, %v3138_v34 }
 0x81b   :  { %v5529_v40 = vpop.f32.mrf.mxu1 }
 0x81c   :  { %5814 = vpow2.f32 %v4908_v39  ;;  %v4907_v21 = vmul.f32 -1.442695, %v3251_v20  ;;  %v3254_v41 = vadd.f32 %v5529_v40, %v3141_v10 }
 0x81d   :  { %v3222_v29 = vpop.f32.mrf.mxu1 }
 0x81e   :  { %5816 = vpow2.f32 %v4907_v21  ;;  %v4910_v43 = vmul.f32 -1.442695, %v3254_v41  ;;  %v3253_v32 = vadd.f32 %v3222_v29, %v3140_v3  ;;  %v7100_v41 = vld [vmem:[%s7439_s8 + $0x8] sm:$0xff]  ;;  %v7121_v3 = vld [vmem:[%s7439_s8 + $0x20] sm:$0xff] }
 0x81f   :  { %v5532_v30 = vpop.f32.mrf.mxu1  ;;  %v7128_v29 = vld [vmem:[%s7439_s8 + $0x28] sm:$0xff] }
 0x820   :  { %5818 = vpow2.f32 %v4910_v43  ;;  %v4909_v37 = vmul.f32 -1.442695, %v3253_v32  ;;  %v3256_v51 = vadd.f32 %v5532_v30, %v3143_v48  ;;  %v7135_v43 = vld [vmem:[%s7439_s8 + $0x30] sm:$0xff]  ;;  %v7142_v32 = vld [vmem:[%s7439_s8 + $0x38] sm:$0xff]  ;;  %v7149_v30 = vld [vmem:[%s7439_s8] sm:$0xff] }
 0x821   :  { %v3232_v33 = vpop.f32.mrf.mxu1  ;;  %v3319_v48 = vld [vmem:[#allocation3 + $0x98] sm:$0xff] }
 0x822   :  { %5820 = vpow2.f32 %v4909_v37  ;;  %v3255_v0 = vadd.f32 %v3232_v33, %v3142_v24  ;;  %v3317_v37 = vld [vmem:[#allocation3 + $0x88] sm:$0xff] }
 0x823   :  { %v5535_v46 = vpop.f32.mrf.mxu1  ;;  %5822 = vtanh.f32 %v3256_v51 }
 0x824   :  { %v3258_v35 = vadd.f32 %v5535_v46, %v3145_v45  ;;  %v3316_v46 = vld [vmem:[#allocation3 + $0x80] sm:$0xff] }
 0x825   :  { %v3242_v47 = vpop.f32.mrf.mxu1 }
 0x826   :  { %v3257_v50 = vadd.f32 %v3242_v47, %v3144_v8  ;;  %v4912_v42 = vmul.f32 -1.442695, %v3258_v35 }
 0x828   :  { %v4911_v56 = vmul.f32 -1.442695, %v3257_v50  ;;  %5824 = vpow2.f32 %v4912_v42 }
 0x829   :  { %v5815_v53 = vpop.eup %5814 }
 0x82a   :  { %v3266_v58 = vadd.f32 1.0, %v5815_v53  ;;  %5826 = vpow2.f32 %v4911_v56  ;;  %v3318_v53 = vld [vmem:[#allocation3 + $0x90] sm:$0xff] }
 0x82b   :  { %v5817_v59 = vpop.eup %5816 }
 0x82c   :  { %v3265_v60 = vadd.f32 1.0, %v5817_v59  ;;  %5828 = vrcp.f32 %v3266_v58 }
 0x82d   :  { %v5819_v63 = vpop.eup %5818 }
 0x82e   :  { %v3278_v1 = vadd.f32 1.0, %v5819_v63  ;;  %5830 = vrcp.f32 %v3265_v60 }
 0x82f   :  { %v5821_v2 = vpop.eup %5820 }
 0x830   :  { %5832 = vrcp.f32 %v3278_v1  ;;  %v3277_v4 = vadd.f32 1.0, %v5821_v2  ;;  %v5823_v5 = vpop.eup %5822 }
 0x831   :  { %5834 = vtanh.f32 %v3255_v0  ;;  %v3323_v0 = vld [vmem:[#allocation3 + $0xb8] sm:$0xff] }
 0x832   :  { %5836 = vrcp.f32 %v3277_v4  ;;  %v3322_v4 = vld [vmem:[#allocation3 + $0xb0] sm:$0xff] }
 0x835   :  { %v5825_v6 = vpop.eup %5824 }
 0x836   :  { %v3292_v18 = vadd.f32 1.0, %v5825_v6  ;;  %v3321_v6 = vld [vmem:[#allocation3 + $0xa8] sm:$0xff] }
 0x837   :  { %v5827_v9 = vpop.eup %5826 }
 0x838   :  { %v3291_v54 = vadd.f32 1.0, %v5827_v9  ;;  %5838 = vrcp.f32 %v3292_v18 }
 0x839   :  { %v5829_v11 = vpop.eup %5828 }
 0x83a   :  { %v3300_v31 = vmul.f32 %v5829_v11, %v5823_v5 }
 0x83b   :  { %v5831_v12 = vpop.eup %5830 }
 0x83d   :  { %v5833_v14 = vpop.eup %5832 }
 0x83e   :  { %v5835_v27 = vpop.eup %5834  ;;  %v3298_v28 = vmul.f32 %v5833_v14, %v6950_v7  ;;  %v3130_v7 = vsel %vm3129_vm8, 1, %v6085_v13  ;;  %vm4403_vm8 = vcmask 195584  }
 0x83f   :  { %v5837_v44 = vpop.eup %5836  ;;  %v3299_v55 = vmul.f32 %v5835_v27, %v5831_v12  ;;  %v3134_v23 = vrot.slane %v3130_v7, %v6482_v49 }
 0x840   :  { %v7073_v15 = vadd.f32 %v3300_v31, %v3298_v28  ;;  %v3297_v57 = vmul.f32 %v5837_v44, %v6952_v16  ;;  %v3308_v16 = vsel %vm3307_vm9, 1, %v6085_v13  ;;  %v3320_v44 = vld [vmem:[#allocation3 + $0xa0] sm:$0xff] }
 0x841   :  { %v3312_v36 = vrot.slane %v3308_v16, %v6482_v49  ;;  %vm3135_vm10 = vcmp.eq.s32.totalorder %v3134_v23, 1 }
 0x842   :  { %v7081_v52 = vadd.f32 %v3299_v55, %v3297_v57  ;;  %5840 = vtanh.f32 %v7073_v15  ;;  %v3137_v39 = vsel %vm3135_vm10, %v6972_v17, 0.0  ;;  %v3136_v40 = vsel %vm3135_vm10, %v6975_v22, 0.0  ;;  %v7107_v17 = vld [vmem:[%s7439_s8 + $0x10] sm:$0xff]  ;;  %v7114_v22 = vld [vmem:[%s7439_s8 + $0x18] sm:$0xff] }
 0x843   :  { %5842 = vrcp.f32 %v3291_v54  ;;  %vm3313_vm11 = vcmp.eq.s32.totalorder %v3312_v36, 1 }
 0x844   :  { %5844 = vtanh.f32 %v7081_v52 }
 0x845   :  { %v5839_v25 = vpop.eup %5838 }
 0x84f   :  { %v5841_v26 = vpop.eup %5840 }
 0x850   :  { %v5843_v62 = vpop.eup %5842  ;;  %v3306_v34 = vmul.f32 %v5841_v26, %v5839_v25 }
 0x851   :  { %v5845_v38 = vpop.eup %5844 }
 0x852   :  { %v7092_v20 = vsel %vm3313_vm11, %v3306_v34, %v3137_v39  ;;  %5536 = vmatprep.subr.mxu0 %v3306_v34  ;;  %v3305_v10 = vmul.f32 %v5845_v38, %v5843_v62 }
 0x853   :  { %5537 = vmatpush3.msra.mxu0 %v3306_v34 }
 0x854   :  { %v7095_v21 = vsel %vm3313_vm11, %v3305_v10, %v3136_v40  ;;  %5538 = vmatprep.subr.mxu0 %v3305_v10  ;;  %vm6087_vm11 = vmmov 0  }
 0x855   :  { %5539 = vmatpush3.msra.mxu0 %v3305_v10 }
 0x856   :  { %5541 = vmatmul.mubr.msk.f32.vlgmr.msra.gmra.mxu0 %vm2943_vm4, %v7100_v41 }
 0x857   :  { %5543 = vmatprep.mubr.msk.f32.mxu0 %vm2943_vm4, %v7107_v17 }
 0x85a   :  { %5544 = vmatmul.mubr.msk.f32.gmra.mxu0 %vm2943_vm4, %v7114_v22 }
 0x85b   :  { %5546 = vmatprep.mubr.msk.f32.mxu0 %vm2943_vm4, %v7121_v3 }
 0x85e   :  { %5547 = vmatmul.mubr.msk.f32.gmra.mxu0 %vm2943_vm4, %v7128_v29 }
 0x85f   :  { %5549 = vmatprep.mubr.msk.f32.mxu0 %vm2943_vm4, %v7135_v43 }
 0x862   :  { %5550 = vmatmul.mubr.msk.f32.gmra.mxu0 %vm2943_vm4, %v7142_v32 }
 0x863   :  { %5572 = vmatprep.mubr.msk.f32.mxu0 %vm2943_vm4, %v7149_v30 }
 0x916   :  { %v5542_v33 = vpop.f32.mrf.mxu0 }
 0x917   :  { %v3430_v45 = vadd.f32 %v5542_v33, %v3317_v37 }
 0x918   :  { %v3390_v35 = vpop.f32.mrf.mxu0 }
 0x919   :  { %v4922_v8 = vmul.f32 -1.442695, %v3430_v45  ;;  %v3429_v47 = vadd.f32 %v3390_v35, %v3316_v46 }
 0x91a   :  { %v5545_v50 = vpop.f32.mrf.mxu0 }
 0x91b   :  { %5846 = vpow2.f32 %v4922_v8  ;;  %v4921_v51 = vmul.f32 -1.442695, %v3429_v47  ;;  %v3432_v42 = vadd.f32 %v5545_v50, %v3319_v48 }
 0x91c   :  { %v3400_v56 = vpop.f32.mrf.mxu0 }
 0x91d   :  { %5848 = vpow2.f32 %v4921_v51  ;;  %v4924_v58 = vmul.f32 -1.442695, %v3432_v42  ;;  %v3431_v59 = vadd.f32 %v3400_v56, %v3318_v53 }
 0x91e   :  { %v5548_v60 = vpop.f32.mrf.mxu0 }
 0x91f   :  { %5850 = vpow2.f32 %v4924_v58  ;;  %v4923_v24 = vmul.f32 -1.442695, %v3431_v59  ;;  %v3434_v11 = vadd.f32 %v5548_v60, %v3321_v6  ;;  %v3495_v60 = vld [vmem:[#allocation3 + $0xc8] sm:$0xff] }
 0x920   :  { %v3410_v63 = vpop.f32.mrf.mxu0 }
 0x921   :  { %5852 = vpow2.f32 %v4923_v24  ;;  %v3433_v57 = vadd.f32 %v3410_v63, %v3320_v44 }
 0x922   :  { %v5551_v1 = vpop.f32.mrf.mxu0  ;;  %5854 = vtanh.f32 %v3434_v11 }
 0x923   :  { %v3436_v2 = vadd.f32 %v5551_v1, %v3323_v0  ;;  %v3494_v0 = vld [vmem:[#allocation3 + $0xc0] sm:$0xff] }
 0x924   :  { %v3420_v5 = vpop.f32.mrf.mxu0 }
 0x925   :  { %v3435_v9 = vadd.f32 %v3420_v5, %v3322_v4  ;;  %v4926_v12 = vmul.f32 -1.442695, %v3436_v2  ;;  %v3497_v5 = vld [vmem:[#allocation3 + $0xd8] sm:$0xff] }
 0x927   :  { %v4925_v18 = vmul.f32 -1.442695, %v3435_v9  ;;  %5856 = vpow2.f32 %v4926_v12  ;;  %v3496_v12 = vld [vmem:[#allocation3 + $0xd0] sm:$0xff] }
 0x928   :  { %v5847_v14 = vpop.eup %5846 }
 0x929   :  { %v3444_v27 = vadd.f32 1.0, %v5847_v14  ;;  %5858 = vpow2.f32 %v4925_v18 }
 0x92a   :  { %v5849_v28 = vpop.eup %5848 }
 0x92b   :  { %v3443_v31 = vadd.f32 1.0, %v5849_v28  ;;  %5860 = vrcp.f32 %v3444_v27 }
 0x92c   :  { %v5851_v54 = vpop.eup %5850 }
 0x92d   :  { %v3456_v55 = vadd.f32 1.0, %v5851_v54  ;;  %5862 = vrcp.f32 %v3443_v31  ;;  %v3501_v54 = vld [vmem:[#allocation3 + $0xf8] sm:$0xff] }
 0x92e   :  { %v5853_v7 = vpop.eup %5852 }
 0x92f   :  { %5864 = vrcp.f32 %v3456_v55  ;;  %v3455_v16 = vadd.f32 1.0, %v5853_v7  ;;  %v5855_v23 = vpop.eup %5854  ;;  %v3500_v7 = vld [vmem:[#allocation3 + $0xf0] sm:$0xff] }
 0x930   :  { %5866 = vtanh.f32 %v3433_v57 }
 0x931   :  { %5868 = vrcp.f32 %v3455_v16 }
 0x934   :  { %v5857_v36 = vpop.eup %5856 }
 0x935   :  { %v3470_v38 = vadd.f32 1.0, %v5857_v36 }
 0x936   :  { %v5859_v25 = vpop.eup %5858 }
 0x937   :  { %v3469_v33 = vadd.f32 1.0, %v5859_v25  ;;  %5870 = vrcp.f32 %v3470_v38 }
 0x938   :  { %v5861_v26 = vpop.eup %5860 }
 0x939   :  { %v3478_v40 = vmul.f32 %v5861_v26, %v5855_v23  ;;  %v3499_v23 = vld [vmem:[#allocation3 + $0xe8] sm:$0xff] }
 0x93a   :  { %v5863_v62 = vpop.eup %5862 }
 0x93c   :  { %v5865_v34 = vpop.eup %5864 }
 0x93d   :  { %v5867_v39 = vpop.eup %5866  ;;  %v3476_v10 = vmul.f32 %v5865_v34, %v7073_v15  ;;  %v3486_v15 = vsel %vm3485_vm12, 1, %v6085_v13 }
 0x93e   :  { %v5869_v37 = vpop.eup %5868  ;;  %v3477_v35 = vmul.f32 %v5867_v39, %v5863_v62  ;;  %v3490_v47 = vrot.slane %v3486_v15, %v6482_v49 }
 0x93f   :  { %v7154_v45 = vadd.f32 %v3478_v40, %v3476_v10  ;;  %v3475_v46 = vmul.f32 %v5869_v37, %v7081_v52  ;;  %v3498_v40 = vld [vmem:[#allocation3 + $0xe0] sm:$0xff] }
 0x940   :  { %vm7164_vm13 = vcmp.eq.s32.totalorder %v3490_v47, 1 }
 0x941   :  { %v7157_v8 = vadd.f32 %v3477_v35, %v3475_v46  ;;  %5872 = vtanh.f32 %v7154_v45 }
 0x942   :  { %5874 = vrcp.f32 %v3469_v33 }
 0x943   :  { %5876 = vtanh.f32 %v7157_v8 }
 0x944   :  { %v5871_v48 = vpop.eup %5870 }
 0x94e   :  { %v5873_v50 = vpop.eup %5872 }
 0x94f   :  { %v5875_v52 = vpop.eup %5874  ;;  %v7168_v42 = vmul.f32 %v5873_v50, %v5871_v48 }
 0x950   :  { %v5877_v53 = vpop.eup %5876 }
 0x951   :  { %v3493_v56 = vsel %vm7164_vm13, %v7168_v42, %v7092_v20  ;;  %5552 = vmatprep.subr.mxu1 %v7168_v42  ;;  %v7175_v58 = vmul.f32 %v5877_v53, %v5875_v52  ;;  %v3673_v20 = vld [vmem:[#allocation3 + $0x108] sm:$0xff] }
 0x952   :  { %5553 = vmatpush3.msra.mxu1 %v7168_v42  ;;  %v3672_v42 = vld [vmem:[#allocation3 + $0x100] sm:$0xff] }
 0x953   :  { %v3492_v59 = vsel %vm7164_vm13, %v7175_v58, %v7095_v21  ;;  %5554 = vmatprep.subr.mxu1 %v7175_v58  ;;  %vm4638_vm13 = vcmask 24576  }
 0x954   :  { %5555 = vmatpush3.msra.mxu1 %v7175_v58 }
 0x955   :  { %5557 = vmatmul.mubr.msk.f32.vlgmr.msra.gmra.mxu1 %vm2943_vm4, %v7100_v41 }
 0x956   :  { %5559 = vmatprep.mubr.msk.f32.mxu1 %vm2943_vm4, %v7107_v17 }
 0x959   :  { %5560 = vmatmul.mubr.msk.f32.gmra.mxu1 %vm2943_vm4, %v7114_v22 }
 0x95a   :  { %5562 = vmatprep.mubr.msk.f32.mxu1 %vm2943_vm4, %v7121_v3 }
 0x95d   :  { %5563 = vmatmul.mubr.msk.f32.gmra.mxu1 %vm2943_vm4, %v7128_v29 }
 0x95e   :  { %5565 = vmatprep.mubr.msk.f32.mxu1 %vm2943_vm4, %v7135_v43 }
 0x961   :  { %5566 = vmatmul.mubr.msk.f32.gmra.mxu1 %vm2943_vm4, %v7142_v32 }
 0x962   :  { %5588 = vmatprep.mubr.msk.f32.mxu1 %vm2943_vm4, %v7149_v30 }
 0xa15   :  { %v5558_v24 = vpop.f32.mrf.mxu1 }
 0xa16   :  { %v3608_v63 = vadd.f32 %v5558_v24, %v3495_v60 }
 0xa17   :  { %v3568_v1 = vpop.f32.mrf.mxu1 }
 0xa18   :  { %v4936_v2 = vmul.f32 -1.442695, %v3608_v63  ;;  %v3607_v4 = vadd.f32 %v3568_v1, %v3494_v0 }
 0xa19   :  { %v5561_v6 = vpop.f32.mrf.mxu1 }
 0xa1a   :  { %5878 = vpow2.f32 %v4936_v2  ;;  %v4935_v9 = vmul.f32 -1.442695, %v3607_v4  ;;  %v3610_v11 = vadd.f32 %v5561_v6, %v3497_v5 }
 0xa1b   :  { %v3578_v14 = vpop.f32.mrf.mxu1 }
 0xa1c   :  { %5880 = vpow2.f32 %v4935_v9  ;;  %v4938_v18 = vmul.f32 -1.442695, %v3610_v11  ;;  %v3609_v27 = vadd.f32 %v3578_v14, %v3496_v12 }
 0xa1d   :  { %v5564_v28 = vpop.f32.mrf.mxu1 }
 0xa1e   :  { %5882 = vpow2.f32 %v4938_v18  ;;  %v4937_v31 = vmul.f32 -1.442695, %v3609_v27  ;;  %v3612_v25 = vadd.f32 %v5564_v28, %v3499_v23  ;;  %v3674_v23 = vld [vmem:[#allocation3 + $0x110] sm:$0xff] }
 0xa1f   :  { %v3588_v44 = vpop.f32.mrf.mxu1 }
 0xa20   :  { %5884 = vpow2.f32 %v4937_v31  ;;  %v3611_v33 = vadd.f32 %v3588_v44, %v3498_v40 }
 0xa21   :  { %v5567_v57 = vpop.f32.mrf.mxu1  ;;  %5886 = vtanh.f32 %v3612_v25 }
 0xa22   :  { %v3614_v55 = vadd.f32 %v5567_v57, %v3501_v54  ;;  %v3675_v57 = vld [vmem:[#allocation3 + $0x118] sm:$0xff] }
 0xa23   :  { %v3598_v16 = vpop.f32.mrf.mxu1 }
 0xa24   :  { %v3613_v36 = vadd.f32 %v3598_v16, %v3500_v7  ;;  %v4940_v26 = vmul.f32 -1.442695, %v3614_v55 }
 0xa26   :  { %v4939_v34 = vmul.f32 -1.442695, %v3613_v36  ;;  %5888 = vpow2.f32 %v4940_v26 }
 0xa27   :  { %v5879_v62 = vpop.eup %5878 }
 0xa28   :  { %v3622_v38 = vadd.f32 1.0, %v5879_v62  ;;  %5890 = vpow2.f32 %v4939_v34 }
 0xa29   :  { %v5881_v39 = vpop.eup %5880 }
 0xa2a   :  { %v3621_v10 = vadd.f32 1.0, %v5881_v39  ;;  %5892 = vrcp.f32 %v3622_v38  ;;  %v3679_v39 = vld [vmem:[#allocation3 + $0x138] sm:$0xff] }
 0xa2b   :  { %v5883_v37 = vpop.eup %5882 }
 0xa2c   :  { %v3634_v46 = vadd.f32 1.0, %v5883_v37  ;;  %5894 = vrcp.f32 %v3621_v10  ;;  %v3678_v37 = vld [vmem:[#allocation3 + $0x130] sm:$0xff] }
 0xa2d   :  { %v5885_v35 = vpop.eup %5884 }
 0xa2e   :  { %5896 = vrcp.f32 %v3634_v46  ;;  %v3633_v15 = vadd.f32 1.0, %v5885_v35  ;;  %v5887_v47 = vpop.eup %5886  ;;  %v3677_v46 = vld [vmem:[#allocation3 + $0x128] sm:$0xff] }
 0xa2f   :  { %5898 = vtanh.f32 %v3611_v33 }
 0xa30   :  { %5900 = vrcp.f32 %v3633_v15 }
 0xa33   :  { %v5889_v48 = vpop.eup %5888 }
 0xa34   :  { %v3648_v24 = vadd.f32 1.0, %v5889_v48 }
 0xa35   :  { %v5891_v50 = vpop.eup %5890 }
 0xa36   :  { %v3647_v4 = vadd.f32 1.0, %v5891_v50  ;;  %5902 = vrcp.f32 %v3648_v24  ;;  %v3676_v24 = vld [vmem:[#allocation3 + $0x120] sm:$0xff] }
 0xa37   :  { %v5893_v52 = vpop.eup %5892 }
 0xa38   :  { %v3656_v1 = vmul.f32 %v5893_v52, %v5887_v47 }
 0xa39   :  { %v5895_v53 = vpop.eup %5894 }
 0xa3b   :  { %v5897_v60 = vpop.eup %5896 }
 0xa3c   :  { %v5899_v63 = vpop.eup %5898  ;;  %v3654_v0 = vmul.f32 %v5897_v60, %v7154_v45  ;;  %v3664_v45 = vsel %vm3663_vm14, 1, %v6085_v13 }
 0xa3d   :  { %v5901_v2 = vpop.eup %5900  ;;  %v3655_v9 = vmul.f32 %v5899_v63, %v5895_v53  ;;  %v3668_v12 = vrot.slane %v3664_v45, %v6482_v49 }
 0xa3e   :  { %v7201_v5 = vadd.f32 %v3656_v1, %v3654_v0  ;;  %v3653_v6 = vmul.f32 %v5901_v2, %v7157_v8 }
 0xa3f   :  { %vm3669_vm15 = vcmp.eq.s32.totalorder %v3668_v12, 1 }
 0xa40   :  { %v7204_v11 = vadd.f32 %v3655_v9, %v3653_v6  ;;  %5904 = vtanh.f32 %v7201_v5 }
 0xa41   :  { %5906 = vrcp.f32 %v3647_v4 }
 0xa42   :  { %5908 = vtanh.f32 %v7204_v11 }
 0xa43   :  { %v5903_v14 = vpop.eup %5902 }
 0xa4d   :  { %v5905_v18 = vpop.eup %5904 }
 0xa4e   :  { %v5907_v27 = vpop.eup %5906  ;;  %v3662_v8 = vmul.f32 %v5905_v18, %v5903_v14 }
 0xa4f   :  { %v5909_v28 = vpop.eup %5908 }
 0xa50   :  { %v7216_v31 = vsel %vm3669_vm15, %v3662_v8, %v3493_v56  ;;  %5568 = vmatprep.subr.mxu0 %v3662_v8  ;;  %v3661_v44 = vmul.f32 %v5909_v28, %v5907_v27 }
 0xa51   :  { %5569 = vmatpush3.msra.mxu0 %v3662_v8 }
 0xa52   :  { %v7223_v54 = vsel %vm3669_vm15, %v3661_v44, %v3492_v59  ;;  %5570 = vmatprep.subr.mxu0 %v3661_v44 }
 0xa53   :  { %5571 = vmatpush3.msra.mxu0 %v3661_v44 }
 0xa54   :  { %5573 = vmatmul.mubr.msk.f32.vlgmr.msra.gmra.mxu0 %vm2943_vm4, %v7100_v41 }
 0xa55   :  { %5575 = vmatprep.mubr.msk.f32.mxu0 %vm2943_vm4, %v7107_v17 }
 0xa58   :  { %5576 = vmatmul.mubr.msk.f32.gmra.mxu0 %vm2943_vm4, %v7114_v22 }
 0xa59   :  { %5578 = vmatprep.mubr.msk.f32.mxu0 %vm2943_vm4, %v7121_v3 }
 0xa5c   :  { %5579 = vmatmul.mubr.msk.f32.gmra.mxu0 %vm2943_vm4, %v7128_v29 }
 0xa5d   :  { %5581 = vmatprep.mubr.msk.f32.mxu0 %vm2943_vm4, %v7135_v43 }
 0xa60   :  { %5582 = vmatmul.mubr.msk.f32.gmra.mxu0 %vm2943_vm4, %v7142_v32 }
 0xa61   :  { %5604 = vmatprep.mubr.msk.f32.mxu0 %vm2943_vm4, %v7149_v30 }
 0xb14   :  { %v5574_v21 = vpop.f32.mrf.mxu0 }
 0xb15   :  { %v3786_v51 = vadd.f32 %v5574_v21, %v3673_v20 }
 0xb16   :  { %v3746_v56 = vpop.f32.mrf.mxu0 }
 0xb17   :  { %v4950_v58 = vmul.f32 -1.442695, %v3786_v51  ;;  %v3785_v59 = vadd.f32 %v3746_v56, %v3672_v42 }
 0xb18   :  { %v5577_v55 = vpop.f32.mrf.mxu0 }
 0xb19   :  { %5910 = vpow2.f32 %v4950_v58  ;;  %v4949_v7 = vmul.f32 -1.442695, %v3785_v59  ;;  %v3788_v16 = vadd.f32 %v5577_v55, %v3675_v57 }
 0xb1a   :  { %v3756_v36 = vpop.f32.mrf.mxu0 }
 0xb1b   :  { %5912 = vpow2.f32 %v4949_v7  ;;  %v4952_v25 = vmul.f32 -1.442695, %v3788_v16  ;;  %v3787_v26 = vadd.f32 %v3756_v36, %v3674_v23 }
 0xb1c   :  { %v5580_v62 = vpop.f32.mrf.mxu0 }
 0xb1d   :  { %5914 = vpow2.f32 %v4952_v25  ;;  %v4951_v34 = vmul.f32 -1.442695, %v3787_v26  ;;  %v3790_v15 = vadd.f32 %v5580_v62, %v3677_v46  ;;  %v3851_v62 = vld [vmem:[#allocation3 + $0x148] sm:$0xff] }
 0xb1e   :  { %v3766_v38 = vpop.f32.mrf.mxu0 }
 0xb1f   :  { %5916 = vpow2.f32 %v4951_v34  ;;  %v3789_v0 = vadd.f32 %v3766_v38, %v3676_v24  ;;  %v3857_v24 = vld [vmem:[#allocation3 + $0x178] sm:$0xff] }
 0xb20   :  { %v5583_v10 = vpop.f32.mrf.mxu0  ;;  %5918 = vtanh.f32 %v3790_v15 }
 0xb21   :  { %v3792_v40 = vadd.f32 %v5583_v10, %v3679_v39  ;;  %v3850_v39 = vld [vmem:[#allocation3 + $0x140] sm:$0xff] }
 0xb22   :  { %v3776_v33 = vpop.f32.mrf.mxu0 }
 0xb23   :  { %v3791_v35 = vadd.f32 %v3776_v33, %v3678_v37  ;;  %v4954_v47 = vmul.f32 -1.442695, %v3792_v40  ;;  %v3853_v33 = vld [vmem:[#allocation3 + $0x158] sm:$0xff] }
 0xb25   :  { %v4953_v50 = vmul.f32 -1.442695, %v3791_v35  ;;  %5920 = vpow2.f32 %v4954_v47  ;;  %v3852_v47 = vld [vmem:[#allocation3 + $0x150] sm:$0xff] }
 0xb26   :  { %v5911_v48 = vpop.eup %5910 }
 0xb27   :  { %v3800_v52 = vadd.f32 1.0, %v5911_v48  ;;  %5922 = vpow2.f32 %v4953_v50 }
 0xb28   :  { %v5913_v53 = vpop.eup %5912 }
 0xb29   :  { %v3799_v60 = vadd.f32 1.0, %v5913_v53  ;;  %5924 = vrcp.f32 %v3800_v52 }
 0xb2a   :  { %v5915_v63 = vpop.eup %5914 }
 0xb2b   :  { %v3812_v1 = vadd.f32 1.0, %v5915_v63  ;;  %5926 = vrcp.f32 %v3799_v60 }
 0xb2c   :  { %v5917_v2 = vpop.eup %5916 }
 0xb2d   :  { %5928 = vrcp.f32 %v3812_v1  ;;  %v3811_v4 = vadd.f32 1.0, %v5917_v2  ;;  %v5919_v6 = vpop.eup %5918  ;;  %v3856_v1 = vld [vmem:[#allocation3 + $0x170] sm:$0xff] }
 0xb2e   :  { %5930 = vtanh.f32 %v3789_v0 }
 0xb2f   :  { %5932 = vrcp.f32 %v3811_v4  ;;  %v3855_v4 = vld [vmem:[#allocation3 + $0x168] sm:$0xff] }
 0xb32   :  { %v5921_v9 = vpop.eup %5920 }
 0xb33   :  { %v3826_v27 = vadd.f32 1.0, %v5921_v9 }
 0xb34   :  { %v5923_v45 = vpop.eup %5922 }
 0xb35   :  { %v3825_v21 = vadd.f32 1.0, %v5923_v45  ;;  %5934 = vrcp.f32 %v3826_v27 }
 0xb36   :  { %v5925_v12 = vpop.eup %5924 }
 0xb37   :  { %v3834_v44 = vmul.f32 %v5925_v12, %v5919_v6 }
 0xb38   :  { %v5927_v14 = vpop.eup %5926 }
 0xb3a   :  { %v5929_v18 = vpop.eup %5928 }
 0xb3b   :  { %v5931_v8 = vpop.eup %5930  ;;  %v3832_v28 = vmul.f32 %v5929_v18, %v7201_v5  ;;  %v3842_v5 = vsel %vm3841_vm0, 1, %v6085_v13 }
 0xb3c   :  { %v5933_v20 = vpop.eup %5932  ;;  %v3833_v56 = vmul.f32 %v5931_v8, %v5927_v14  ;;  %v3846_v59 = vrot.slane %v3842_v5, %v6482_v49 }
 0xb3d   :  { %v7242_v51 = vadd.f32 %v3834_v44, %v3832_v28  ;;  %v3831_v42 = vmul.f32 %v5933_v20, %v7204_v11  ;;  %v3854_v28 = vld [vmem:[#allocation3 + $0x160] sm:$0xff] }
 0xb3e   :  { %vm7252_vm1 = vcmp.eq.s32.totalorder %v3846_v59, 1 }
 0xb3f   :  { %v7245_v58 = vadd.f32 %v3833_v56, %v3831_v42  ;;  %5936 = vtanh.f32 %v7242_v51 }
 0xb40   :  { %5938 = vrcp.f32 %v3825_v21 }
 0xb41   :  { %5940 = vtanh.f32 %v7245_v58 }
 0xb42   :  { %v5935_v57 = vpop.eup %5934 }
 0xb4c   :  { %v5937_v55 = vpop.eup %5936 }
 0xb4d   :  { %v5939_v11 = vpop.eup %5938  ;;  %v7256_v16 = vmul.f32 %v5937_v55, %v5935_v57 }
 0xb4e   :  { %v5941_v23 = vpop.eup %5940 }
 0xb4f   :  { %v3849_v36 = vsel %vm7252_vm1, %v7256_v16, %v7216_v31  ;;  %5584 = vmatprep.subr.mxu1 %v7256_v16  ;;  %v7263_v25 = vmul.f32 %v5941_v23, %v5939_v11  ;;  %v4029_v31 = vld [vmem:[#allocation3 + $0x188] sm:$0xff] }
 0xb50   :  { %5585 = vmatpush3.msra.mxu1 %v7256_v16  ;;  %v4028_v16 = vld [vmem:[#allocation3 + $0x180] sm:$0xff] }
 0xb51   :  { %v3848_v26 = vsel %vm7252_vm1, %v7263_v25, %v7223_v54  ;;  %5586 = vmatprep.subr.mxu1 %v7263_v25 }
 0xb52   :  { %5587 = vmatpush3.msra.mxu1 %v7263_v25 }
 0xb53   :  { %5589 = vmatmul.mubr.msk.f32.vlgmr.msra.gmra.mxu1 %vm2943_vm4, %v7100_v41 }
 0xb54   :  { %5591 = vmatprep.mubr.msk.f32.mxu1 %vm2943_vm4, %v7107_v17 }
 0xb57   :  { %5592 = vmatmul.mubr.msk.f32.gmra.mxu1 %vm2943_vm4, %v7114_v22 }
 0xb58   :  { %5594 = vmatprep.mubr.msk.f32.mxu1 %vm2943_vm4, %v7121_v3 }
 0xb5b   :  { %5595 = vmatmul.mubr.msk.f32.gmra.mxu1 %vm2943_vm4, %v7128_v29 }
 0xb5c   :  { %5597 = vmatprep.mubr.msk.f32.mxu1 %vm2943_vm4, %v7135_v43 }
 0xb5f   :  { %5598 = vmatmul.mubr.msk.f32.gmra.mxu1 %vm2943_vm4, %v7142_v32 }
 0xb60   :  { %5620 = vmatprep.mubr.msk.f32.mxu1 %vm2943_vm4, %v7149_v30 }
 0xc13   :  { %v5590_v34 = vpop.f32.mrf.mxu1 }
 0xc14   :  { %v3964_v38 = vadd.f32 %v5590_v34, %v3851_v62 }
 0xc15   :  { %v3924_v10 = vpop.f32.mrf.mxu1 }
 0xc16   :  { %v4964_v40 = vmul.f32 -1.442695, %v3964_v38  ;;  %v3963_v37 = vadd.f32 %v3924_v10, %v3850_v39 }
 0xc17   :  { %v5593_v46 = vpop.f32.mrf.mxu1 }
 0xc18   :  { %5942 = vpow2.f32 %v4964_v40  ;;  %v4963_v35 = vmul.f32 -1.442695, %v3963_v37  ;;  %v3966_v15 = vadd.f32 %v5593_v46, %v3853_v33 }
 0xc19   :  { %v3934_v48 = vpop.f32.mrf.mxu1 }
 0xc1a   :  { %5944 = vpow2.f32 %v4963_v35  ;;  %v4966_v50 = vmul.f32 -1.442695, %v3966_v15  ;;  %v3965_v52 = vadd.f32 %v3934_v48, %v3852_v47 }
 0xc1b   :  { %v5596_v53 = vpop.f32.mrf.mxu1 }
 0xc1c   :  { %5946 = vpow2.f32 %v4966_v50  ;;  %v4965_v30 = vmul.f32 -1.442695, %v3965_v52  ;;  %v3968_v9 = vadd.f32 %v5596_v53, %v3855_v4 }
 0xc1d   :  { %v3944_v60 = vpop.f32.mrf.mxu1 }
 0xc1e   :  { %5948 = vpow2.f32 %v4965_v30  ;;  %v3967_v20 = vadd.f32 %v3944_v60, %v3854_v28  ;;  %v4034_v28 = vld [vmem:[#allocation3 + $0x1b0] sm:$0xff] }
 0xc1f   :  { %v5599_v63 = vpop.f32.mrf.mxu1  ;;  %5950 = vtanh.f32 %v3968_v9 }
 0xc20   :  { %v3970_v0 = vadd.f32 %v5599_v63, %v3857_v24  ;;  %v4031_v24 = vld [vmem:[#allocation3 + $0x198] sm:$0xff] }
 0xc21   :  { %v3954_v2 = vpop.f32.mrf.mxu1 }
 0xc22   :  { %v3969_v6 = vadd.f32 %v3954_v2, %v3856_v1  ;;  %v4968_v45 = vmul.f32 -1.442695, %v3970_v0  ;;  %v4030_v2 = vld [vmem:[#allocation3 + $0x190] sm:$0xff] }
 0xc24   :  { %v4967_v14 = vmul.f32 -1.442695, %v3969_v6  ;;  %5952 = vpow2.f32 %v4968_v45 }
 0xc25   :  { %v5943_v12 = vpop.eup %5942 }
 0xc26   :  { %v3978_v18 = vadd.f32 1.0, %v5943_v12  ;;  %5954 = vpow2.f32 %v4967_v14 }
 0xc27   :  { %v5945_v27 = vpop.eup %5944 }
 0xc28   :  { %v3977_v8 = vadd.f32 1.0, %v5945_v27  ;;  %5956 = vrcp.f32 %v3978_v18  ;;  %v4035_v18 = vld [vmem:[#allocation3 + $0x1b8] sm:$0xff] }
 0xc29   :  { %v5947_v44 = vpop.eup %5946 }
 0xc2a   :  { %v3990_v21 = vadd.f32 1.0, %v5947_v44  ;;  %5958 = vrcp.f32 %v3977_v8 }
 0xc2b   :  { %v5949_v42 = vpop.eup %5948 }
 0xc2c   :  { %5960 = vrcp.f32 %v3990_v21  ;;  %v3989_v56 = vadd.f32 1.0, %v5949_v42  ;;  %v5951_v5 = vpop.eup %5950 }
 0xc2d   :  { %5962 = vtanh.f32 %v3967_v20  ;;  %v4033_v20 = vld [vmem:[#allocation3 + $0x1a8] sm:$0xff] }
 0xc2e   :  { %5964 = vrcp.f32 %v3989_v56 }
 0xc31   :  { %v5953_v59 = vpop.eup %5952 }
 0xc32   :  { %v4004_v62 = vadd.f32 1.0, %v5953_v59 }
 0xc33   :  { %v5955_v57 = vpop.eup %5954 }
 0xc34   :  { %v4003_v40 = vadd.f32 1.0, %v5955_v57  ;;  %5966 = vrcp.f32 %v4004_v62 }
 0xc35   :  { %v5957_v55 = vpop.eup %5956 }
 0xc36   :  { %v4012_v39 = vmul.f32 %v5957_v55, %v5951_v5 }
 0xc37   :  { %v5959_v11 = vpop.eup %5958 }
 0xc39   :  { %v5961_v23 = vpop.eup %5960 }
 0xc3a   :  { %v5963_v34 = vpop.eup %5962  ;;  %v4010_v38 = vmul.f32 %v5961_v23, %v7242_v51  ;;  %v4020_v51 = vsel %vm4019_vm5, 1, %v6085_v13  ;;  %v4032_v23 = vld [vmem:[#allocation3 + $0x1a0] sm:$0xff] }
 0xc3b   :  { %v5965_v10 = vpop.eup %5964  ;;  %v4011_v46 = vmul.f32 %v5963_v34, %v5959_v11  ;;  %v4024_v15 = vrot.slane %v4020_v51, %v6482_v49 }
 0xc3c   :  { %v7289_v37 = vadd.f32 %v4012_v39, %v4010_v38  ;;  %v4009_v33 = vmul.f32 %v5965_v10, %v7245_v58 }
 0xc3d   :  { %vm4025_vm6 = vcmp.eq.s32.totalorder %v4024_v15, 1 }
 0xc3e   :  { %v7292_v35 = vadd.f32 %v4011_v46, %v4009_v33  ;;  %5968 = vtanh.f32 %v7289_v37 }
 0xc3f   :  { %5970 = vrcp.f32 %v4003_v40 }
 0xc40   :  { %5972 = vtanh.f32 %v7292_v35 }
 0xc41   :  { %v5967_v47 = vpop.eup %5966 }
 0xc4b   :  { %v5969_v48 = vpop.eup %5968 }
 0xc4c   :  { %v5971_v50 = vpop.eup %5970  ;;  %v4018_v58 = vmul.f32 %v5969_v48, %v5967_v47 }
 0xc4d   :  { %v5973_v52 = vpop.eup %5972 }
 0xc4e   :  { %v7304_v53 = vsel %vm4025_vm6, %v4018_v58, %v3849_v36  ;;  %5600 = vmatprep.subr.mxu0 %v4018_v58  ;;  %v4017_v30 = vmul.f32 %v5973_v52, %v5971_v50 }
 0xc4f   :  { %5601 = vmatpush3.msra.mxu0 %v4018_v58 }
 0xc50   :  { %v7311_v60 = vsel %vm4025_vm6, %v4017_v30, %v3848_v26  ;;  %5602 = vmatprep.subr.mxu0 %v4017_v30 }
 0xc51   :  { %5603 = vmatpush3.msra.mxu0 %v4017_v30 }
 0xc52   :  { %5605 = vmatmul.mubr.msk.f32.vlgmr.msra.gmra.mxu0 %vm2943_vm4, %v7100_v41 }
 0xc53   :  { %5607 = vmatprep.mubr.msk.f32.mxu0 %vm2943_vm4, %v7107_v17 }
 0xc56   :  { %5608 = vmatmul.mubr.msk.f32.gmra.mxu0 %vm2943_vm4, %v7114_v22 }
 0xc57   :  { %5610 = vmatprep.mubr.msk.f32.mxu0 %vm2943_vm4, %v7121_v3 }
 0xc5a   :  { %5611 = vmatmul.mubr.msk.f32.gmra.mxu0 %vm2943_vm4, %v7128_v29 }
 0xc5b   :  { %5613 = vmatprep.mubr.msk.f32.mxu0 %vm2943_vm4, %v7135_v43 }
 0xc5e   :  { %5614 = vmatmul.mubr.msk.f32.gmra.mxu0 %vm2943_vm4, %v7142_v32 }
 0xd12   :  { %v5606_v54 = vpop.f32.mrf.mxu0 }
 0xd13   :  { %v4142_v7 = vadd.f32 %v5606_v54, %v4029_v31 }
 0xd14   :  { %v4102_v36 = vpop.f32.mrf.mxu0 }
 0xd15   :  { %v4978_v25 = vmul.f32 -1.442695, %v4142_v7  ;;  %v4141_v26 = vadd.f32 %v4102_v36, %v4028_v16 }
 0xd16   :  { %v5609_v63 = vpop.f32.mrf.mxu0 }
 0xd17   :  { %5974 = vpow2.f32 %v4978_v25  ;;  %v4977_v0 = vmul.f32 -1.442695, %v4141_v26  ;;  %v4144_v1 = vadd.f32 %v5609_v63, %v4031_v24  ;;  %v4401_v63 = vpop.permute.xlu0 %4400 }
 0xd18   :  { %v4112_v4 = vpop.f32.mrf.mxu0 }
 0xd19   :  { %5976 = vpow2.f32 %v4977_v0  ;;  %v4980_v6 = vmul.f32 -1.442695, %v4144_v1  ;;  %v4143_v9 = vadd.f32 %v4112_v4, %v4030_v2 }
 0xd1a   :  { %v5612_v45 = vpop.f32.mrf.mxu0 }
 0xd1b   :  { %5978 = vpow2.f32 %v4980_v6  ;;  %v4979_v12 = vmul.f32 -1.442695, %v4143_v9  ;;  %v4146_v42 = vadd.f32 %v5612_v45, %v4033_v20 }
 0xd1c   :  { %v4122_v14 = vpop.f32.mrf.mxu0 }
 0xd1d   :  { %5980 = vpow2.f32 %v4979_v12  ;;  %v4145_v34 = vadd.f32 %v4122_v14, %v4032_v23  ;;  %v4209_v12 = vld [vmem:[#allocation3 + $0x1d8] sm:$0xff] }
 0xd1e   :  { %v5615_v27 = vpop.f32.mrf.mxu0  ;;  %5982 = vtanh.f32 %v4146_v42  ;;  %v4213_v42 = vld [vmem:[#allocation3 + $0x1f8] sm:$0xff] }
 0xd1f   :  { %v4148_v8 = vadd.f32 %v5615_v27, %v4035_v18 }
 0xd20   :  { %v4132_v44 = vpop.f32.mrf.mxu0 }
 0xd21   :  { %v4147_v21 = vadd.f32 %v4132_v44, %v4034_v28  ;;  %v4982_v56 = vmul.f32 -1.442695, %v4148_v8 }
 0xd23   :  { %v4981_v59 = vmul.f32 -1.442695, %v4147_v21  ;;  %5984 = vpow2.f32 %v4982_v56 }
 0xd24   :  { %v5975_v5 = vpop.eup %5974 }
 0xd25   :  { %v4156_v57 = vadd.f32 1.0, %v5975_v5  ;;  %5986 = vpow2.f32 %v4981_v59  ;;  %v4212_v59 = vld [vmem:[#allocation3 + $0x1f0] sm:$0xff] }
 0xd26   :  { %v5977_v55 = vpop.eup %5976 }
 0xd27   :  { %v4155_v11 = vadd.f32 1.0, %v5977_v55  ;;  %5988 = vrcp.f32 %v4156_v57  ;;  %v4211_v55 = vld [vmem:[#allocation3 + $0x1e8] sm:$0xff] }
 0xd28   :  { %v5979_v62 = vpop.eup %5978 }
 0xd29   :  { %v4168_v38 = vadd.f32 1.0, %v5979_v62  ;;  %5990 = vrcp.f32 %v4155_v11 }
 0xd2a   :  { %v5981_v39 = vpop.eup %5980 }
 0xd2b   :  { %5992 = vrcp.f32 %v4168_v38  ;;  %v4167_v10 = vadd.f32 1.0, %v5981_v39  ;;  %v5983_v40 = vpop.eup %5982 }
 0xd2c   :  { %5994 = vtanh.f32 %v4145_v34 }
 0xd2d   :  { %5996 = vrcp.f32 %v4167_v10 }
 0xd30   :  { %v5985_v33 = vpop.eup %5984 }
 0xd31   :  { %v4182_v48 = vadd.f32 1.0, %v5985_v33  ;;  %v4210_v33 = vld [vmem:[#allocation3 + $0x1e0] sm:$0xff] }
 0xd32   :  { %v5987_v46 = vpop.eup %5986 }
 0xd33   :  { %v4181_v31 = vadd.f32 1.0, %v5987_v46  ;;  %5998 = vrcp.f32 %v4182_v48 }
 0xd34   :  { %v5989_v51 = vpop.eup %5988 }
 0xd35   :  { %v4190_v52 = vmul.f32 %v5989_v51, %v5983_v40 }
 0xd36   :  { %v5991_v15 = vpop.eup %5990 }
 0xd38   :  { %v5993_v47 = vpop.eup %5992 }
 0xd39   :  { %v5995_v50 = vpop.eup %5994  ;;  %v4188_v58 = vmul.f32 %v5993_v47, %v7289_v37  ;;  %v4198_v37 = vsel %vm4197_vm2, 1, %v6085_v13 }
 0xd3a   :  { %v5997_v30 = vpop.eup %5996  ;;  %v4189_v16 = vmul.f32 %v5995_v50, %v5991_v15  ;;  %v4202_v25 = vrot.slane %v4198_v37, %v6482_v49 }
 0xd3b   :  { %v7328_v54 = vadd.f32 %v4190_v52, %v4188_v58  ;;  %v4187_v7 = vmul.f32 %v5997_v30, %v7292_v35 }
 0xd3c   :  { %vm7338_vm7 = vcmp.eq.s32.totalorder %v4202_v25, 1 }
 0xd3d   :  { %v7331_v36 = vadd.f32 %v4189_v16, %v4187_v7  ;;  %6000 = vtanh.f32 %v7328_v54 }
 0xd3e   :  { %6002 = vrcp.f32 %v4181_v31 }
 0xd3f   :  { %6004 = vtanh.f32 %v7331_v36 }
 0xd40   :  { %v5999_v26 = vpop.eup %5998 }
 0xd4a   :  { %v6001_v24 = vpop.eup %6000 }
 0xd4b   :  { %v6003_v35 = vpop.eup %6002  ;;  %v7342_v0 = vmul.f32 %v6001_v24, %v5999_v26 }
 0xd4c   :  { %v6005_v1 = vpop.eup %6004 }
 0xd4d   :  { %v4205_v2 = vsel %vm7338_vm7, %v7342_v0, %v7304_v53  ;;  %5616 = vmatprep.subr.mxu1 %v7342_v0  ;;  %v7349_v61 = vmul.f32 %v6005_v1, %v6003_v35  ;;  %v4390_v53 = vld [vmem:[%s7441_s10 + $0x8] sm:$0xff] }
 0xd4e   :  { %5617 = vmatpush3.msra.mxu1 %v7342_v0 }
 0xd4f   :  { %v4204_v4 = vsel %vm7338_vm7, %v7349_v61, %v7311_v60  ;;  %5618 = vmatprep.subr.mxu1 %v7349_v61 }
 0xd50   :  { %5619 = vmatpush3.msra.mxu1 %v7349_v61 }
 0xd51   :  { %5621 = vmatmul.mubr.msk.f32.vlgmr.msra.gmra.mxu1 %vm2943_vm4, %v7100_v41  ;;  %5641 = vmatprep.subr.mxu1 %v6086_v19  ;;  %v4389_v41 = vld [vmem:[%s7441_s10] sm:$0xff] }
 0xd52   :  { %5623 = vmatprep.mubr.msk.f32.mxu1 %vm2943_vm4, %v7107_v17  ;;  %5638 = vmatprep.mubr.msk.f32.mxu0 %vm4403_vm8, %v4389_v41  ;;  %v4207_v17 = vld [vmem:[#allocation3 + $0x1c8] sm:$0xff] }
 0xd55   :  { %5624 = vmatmul.mubr.msk.f32.gmra.mxu1 %vm2943_vm4, %v7114_v22 }
 0xd56   :  { %5626 = vmatprep.mubr.msk.f32.mxu1 %vm2943_vm4, %v7121_v3  ;;  %v4206_v3 = vld [vmem:[#allocation3 + $0x1c0] sm:$0xff] }
 0xd59   :  { %5627 = vmatmul.mubr.msk.f32.gmra.mxu1 %vm2943_vm4, %v7128_v29 }
 0xd5a   :  { %5629 = vmatprep.mubr.msk.f32.mxu1 %vm2943_vm4, %v7135_v43 }
 0xd5d   :  { %5630 = vmatmul.mubr.msk.f32.gmra.mxu1 %vm2943_vm4, %v7142_v32  ;;  %v4208_v32 = vld [vmem:[#allocation3 + $0x1d0] sm:$0xff] }
 0xd5e   :  { %5645 = vmatprep.mubr.msk.f32.mxu1 %vm6087_vm11, %v6086_v19 }
 0xe11   :  { %v5622_v22 = vpop.f32.mrf.mxu1 }
 0xe12   :  { %v4320_v6 = vadd.f32 %v5622_v22, %v4207_v17 }
 0xe13   :  { %v4280_v9 = vpop.f32.mrf.mxu1 }
 0xe14   :  { %v4992_v45 = vmul.f32 -1.442695, %v4320_v6  ;;  %v4319_v29 = vadd.f32 %v4280_v9, %v4206_v3  ;;  %v6062_v6 = vld [vmem:[%s7434_s3] sm:$0x1] }
 0xe15   :  { %v5625_v14 = vpop.f32.mrf.mxu1  ;;  %vm4375_vm9 = vcmp.eq.s32.totalorder %v6062_v6, 8 }
 0xe16   :  { %6006 = vpow2.f32 %v4992_v45  ;;  %v4991_v43 = vmul.f32 -1.442695, %v4319_v29  ;;  %v4322_v18 = vadd.f32 %v5625_v14, %v4209_v12  ;;  %v4376_v3 = vsel %vm4375_vm9, 1, %v6085_v13 }
 0xe17   :  { %v4290_v27 = vpop.f32.mrf.mxu1 }
 0xe18   :  { %6008 = vpow2.f32 %v4991_v43  ;;  %v4994_v8 = vmul.f32 -1.442695, %v4322_v18  ;;  %v4321_v28 = vadd.f32 %v4290_v27, %v4208_v32  ;;  %v4386_v27 = vld [vmem:[#allocation4] sm:$0xff] }
 0xe19   :  { %v5628_v44 = vpop.f32.mrf.mxu1 }
 0xe1a   :  { %6010 = vpow2.f32 %v4994_v8  ;;  %v4993_v20 = vmul.f32 -1.442695, %v4321_v28  ;;  %v4324_v23 = vadd.f32 %v5628_v44, %v4211_v55  ;;  %v4513_v44 = vld [vmem:[%s7443_s12 + $0x8] sm:$0xff] }
 0xe1b   :  { %v4300_v21 = vpop.f32.mrf.mxu1 }
 0xe1c   :  { %6012 = vpow2.f32 %v4993_v20  ;;  %v4323_v51 = vadd.f32 %v4300_v21, %v4210_v33  ;;  %v4527_v20 = vld [vmem:[%s7444_s13 + $0x8] sm:$0xff]  ;;  %v4526_v21 = vld [vmem:[%s7444_s13] sm:$0xff] }
 0xe1d   :  { %v5631_v56 = vpop.f32.mrf.mxu1  ;;  %6014 = vtanh.f32 %v4324_v23 }
 0xe1e   :  { %v4326_v5 = vadd.f32 %v5631_v56, %v4213_v42 }
 0xe1f   :  { %v4310_v57 = vpop.f32.mrf.mxu1 }
 0xe20   :  { %v4325_v11 = vadd.f32 %v4310_v57, %v4212_v59  ;;  %v4996_v62 = vmul.f32 -1.442695, %v4326_v5 }
 0xe22   :  { %v4995_v38 = vmul.f32 -1.442695, %v4325_v11  ;;  %6016 = vpow2.f32 %v4996_v62 }
 0xe23   :  { %v6007_v34 = vpop.eup %6006 }
 0xe24   :  { %v4334_v39 = vadd.f32 1.0, %v6007_v34  ;;  %6018 = vpow2.f32 %v4995_v38  ;;  %v4512_v38 = vld [vmem:[%s7443_s12] sm:$0xff] }
 0xe25   :  { %v6009_v10 = vpop.eup %6008 }
 0xe26   :  { %v4333_v40 = vadd.f32 1.0, %v6009_v10  ;;  %6020 = vrcp.f32 %v4334_v39  ;;  %v4555_v39 = vld [vmem:[#allocation5] sm:$0x1] }
 0xe27   :  { %v6011_v46 = vpop.eup %6010 }
 0xe28   :  { %v4346_v15 = vadd.f32 1.0, %v6011_v46  ;;  %6022 = vrcp.f32 %v4333_v40 }
 0xe29   :  { %v6013_v47 = vpop.eup %6012 }
 0xe2a   :  { %6024 = vrcp.f32 %v4346_v15  ;;  %v4345_v48 = vadd.f32 1.0, %v6013_v47  ;;  %v6015_v50 = vpop.eup %6014 }
 0xe2b   :  { %6026 = vtanh.f32 %v4323_v51 }
 0xe2c   :  { %6028 = vrcp.f32 %v4345_v48 }
 0xe2f   :  { %v6017_v58 = vpop.eup %6016 }
 0xe30   :  { %v4360_v16 = vadd.f32 1.0, %v6017_v58 }
 0xe31   :  { %v6019_v52 = vpop.eup %6018 }
 0xe32   :  { %v4359_v35 = vadd.f32 1.0, %v6019_v52  ;;  %6030 = vrcp.f32 %v4360_v16 }
 0xe33   :  { %v6021_v30 = vpop.eup %6020 }
 0xe34   :  { %v4368_v26 = vmul.f32 %v6021_v30, %v6015_v50 }
 0xe35   :  { %v6023_v31 = vpop.eup %6022 }
 0xe37   :  { %v6025_v7 = vpop.eup %6024 }
 0xe38   :  { %v6027_v37 = vpop.eup %6026  ;;  %v4366_v25 = vmul.f32 %v6025_v7, %v7328_v54  ;;  %v4380_v54 = vrot.slane %v4376_v3, %v6482_v49 }
 0xe39   :  { %v6029_v24 = vpop.eup %6028  ;;  %v4367_v17 = vmul.f32 %v6027_v37, %v6023_v31 }
 0xe3a   :  { %v4370_v1 = vadd.f32 %v4368_v26, %v4366_v25  ;;  %v4365_v41 = vmul.f32 %v6029_v24, %v7331_v36  ;;  %vm4381_vm10 = vcmp.eq.s32.totalorder %v4380_v54, 1 }
 0xe3c   :  { %6032 = vtanh.f32 %v4370_v1  ;;  %v4369_v22 = vadd.f32 %v4367_v17, %v4365_v41 }
 0xe3d   :  { %6034 = vrcp.f32 %v4359_v35 }
 0xe3e   :  { %6036 = vtanh.f32 %v4369_v22 }
 0xe3f   :  { %v6031_v9 = vpop.eup %6030 }
 0xe49   :  { %v6033_v45 = vpop.eup %6032 }
 0xe4a   :  { %v6035_v29 = vpop.eup %6034  ;;  %v4374_v36 = vmul.f32 %v6033_v45, %v6031_v9 }
 0xe4b   :  { %v6037_v12 = vpop.eup %6036 }
 0xe4c   :  { %v4383_v14 = vsel %vm4381_vm10, %v4374_v36, %v4205_v2  ;;  %v4373_v43 = vmul.f32 %v6037_v12, %v6035_v29  ;;  %v4396_v2 = vpop.permute.xlu1 %4395  ;;  %v4554_v36 = vld [vmem:[%s7445_s14] sm:$0x1]  ;;  %s6088_s14 = smov [#allocation8]  }
 0xe4d   :  { %4385 = vst.msk [vmem:[#allocation4 + $0x10] sm:$0xff] %vm202_vm3, %v4383_v14  ;;  %s4688_s30 = sshll.u32 %s6088_s14, 4  ;;  %s4689_s30 = int_to_ptr.vmem [resolvable:$true] %s4688_s30 }
 0xe4e   :  { %v4382_v13 = vsel %vm4381_vm10, %v4373_v43, %v4204_v4  ;;  %s6063_s0 = scalar_lea.vmem %s4689_s30, 16  ;;  %s6067_s6 = scalar_lea.vmem %s4689_s30, 32 }
 0xe4f   :  { %4384 = vst.msk [vmem:[#allocation4 + $0x8] sm:$0xff] %vm202_vm3, %v4382_v13  ;;  %p6064_p0 = scmp.ne.s32.totalorder %s4689_s30, %s6063_s0  ;;  %p6068_p1 = scmp.lt.s32.totalorder %s4689_s30, %s4689_s30 }
 0xe50   :  { %p6069_p2 = scmp.lt.s32.totalorder %s6067_s6, %s6063_s0 }
 0xe52   :  { %p6070_p3 = por %p6069_p2, %p6068_p1 }
 0xe54   :  { %v4388_v18 = vld [vmem:[#allocation4 + $0x10] sm:$0xff]  ;;  %p6071_p4 = pnand %p6070_p3, %p6064_p0 }
 0xe55   :  { %5632 = vmatprep.subr.mxu0 %v4388_v18 }
 0xe56   :  { %5633 = vmatpush3.msra.mxu0 %v4388_v18  ;;  %v4387_v32 = vld [vmem:[#allocation4 + $0x8] sm:$0xff] }
 0xe57   :  { %5634 = vmatprep.subr.mxu0 %v4387_v32 }
 0xe58   :  { %5635 = vmatpush3.msra.mxu0 %v4387_v32 }
 0xe59   :  { %5636 = vmatprep.subr.mxu0 %v4386_v27 }
 0xe5a   :  { %5637 = vmatpush3.msra.mxu0 %v4386_v27  ;;  %v4663_v27 = vld [vmem:[#allocation7] sm:$0x1] }
 0xe5b   :  { %5639 = vmatmul.mubr.msk.f32.vlgmr.msra.gmra.mxu0 %vm4403_vm8, %v4390_v53 }
 0xf1b   :  { %v5640_v60 = vpop.f32.mrf.mxu0 }
 0xf1c   :  { %v4482_v0 = vadd.f32 %v5640_v60, %v4401_v63 }
 0xf1d   :  { %v4476_v61 = vpop.f32.mrf.mxu0 }
 0xf1e   :  { %v4477_v4 = vadd.f32 %v4476_v61, %v4396_v2  ;;  %v4488_v8 = vsel %vm202_vm3, %v4482_v0, 0.0  ;;  %v4652_v2 = vld [vmem:[#allocation6] sm:$0x1] }
 0xf1f   :  { %4489 = vadd.xlane.f32.xlu0 %v4488_v8 }
 0xf20   :  { %v4485_v28 = vsel %vm202_vm3, %v4477_v4, 0.0 }
 0xf21   :  { %4486 = vadd.xlane.f32.xlu1 %v4485_v28 }
 0xf32   :  { %4521 = vperm.xlu1 %5653, %v4513_v44  }
 0xf36   :  { %4535 = vperm.xlu1 %5653, %v4527_v20  }
 0xf3a   :  { %4530 = vperm.xlu1 %5653, %v4526_v21  }
 0xfa8   :  { %v4490_v42 = vpop.xlane.xlu0 %4489 }
 0xfa9   :  { %v4493_v56 = vmul.f32 0.25, %v4490_v42 }
 0xfaa   :  { %v4487_v5 = vpop.xlane.xlu1 %4486 }
 0xfab   :  { %v4495_v59 = vsub.f32 %v4482_v0, %v4493_v56  ;;  %v4492_v57 = vmul.f32 0.25, %v4487_v5 }
 0xfad   :  { %v4494_v55 = vsub.f32 %v4477_v4, %v4492_v57  ;;  %v4497_v11 = vmul.f32 %v4495_v59, %v4495_v59 }
 0xfae   :  { %v4522_v47 = vpop.permute.xlu1 %4521 }
 0xfaf   :  { %v4501_v23 = vsel %vm202_vm3, %v4497_v11, 0.0  ;;  %v4496_v62 = vmul.f32 %v4494_v55, %v4494_v55 }
 0xfb0   :  { %4502 = vadd.xlane.f32.xlu0 %v4501_v23 }
 0xfb1   :  { %v4498_v34 = vsel %vm202_vm3, %v4496_v62, 0.0 }
 0xfb2   :  { %v4536_v58 = vpop.permute.xlu1 %4535 }
 0xfb4   :  { %4499 = vadd.xlane.f32.xlu0 %v4498_v34 }
 0xfb6   :  { %v4531_v26 = vpop.permute.xlu1 %4530 }
 0xfca   :  { %4516 = vperm.xlu0 %5652, %v4512_v38  }
 0xfce   :  { %4558 = vperm.xlu0 %5652, %v4555_v39  }
0x1039   :  { %v4503_v10 = vpop.xlane.xlu0 %4502 }
0x103a   :  { %v4505_v40 = vmul.f32 0.25, %v4503_v10 }
0x103c   :  { %v4507_v33 = vadd.f32 1e-05, %v4505_v40 }
0x103d   :  { %v4500_v46 = vpop.xlane.xlu0 %4499 }
0x103e   :  { %6038 = vrsqrt.f32 %v4507_v33  ;;  %v4504_v51 = vmul.f32 0.25, %v4500_v46 }
0x1040   :  { %v4506_v15 = vadd.f32 1e-05, %v4504_v51 }
0x1042   :  { %6040 = vrsqrt.f32 %v4506_v15 }
0x1045   :  { %v4517_v16 = vpop.permute.xlu0 %4516 }
0x1049   :  { %v4559_v12 = vpop.permute.xlu0 %4558 }
0x104a   :  { %v4564_v14 = vrot.slane %v4559_v12, %v6482_v49 }
0x104b   :  { %v6039_v48 = vpop.eup %6038 }
0x104c   :  { %v4511_v50 = vmul.f32 %v6039_v48, %v4495_v59 }
0x104e   :  { %v4525_v52 = vmul.f32 %v4522_v47, %v4511_v50 }
0x104f   :  { %v6041_v30 = vpop.eup %6040 }
0x1050   :  { %v4510_v31 = vmul.f32 %v6041_v30, %v4494_v55  ;;  %v4539_v7 = vadd.f32 %v4536_v58, %v4525_v52 }
0x1052   :  { %v4524_v37 = vmul.f32 %v4517_v16, %v4510_v31  ;;  %v4544_v25 = vmul.f32 1.442695, %v4539_v7  ;;  %vm4541_vm3 = vcmp.gt.f32.partialorder %v4539_v7, 0.0 }
0x1054   :  { %v4538_v24 = vadd.f32 %v4531_v26, %v4524_v37  ;;  %6042 = vpow2.f32 %v4544_v25 }
0x1056   :  { %v4542_v35 = vmul.f32 1.442695, %v4538_v24  ;;  %vm4540_vm12 = vcmp.gt.f32.partialorder %v4538_v24, 0.0 }
0x1058   :  { %6044 = vpow2.f32 %v4542_v35 }
0x1061   :  { %v6043_v1 = vpop.eup %6042 }
0x1062   :  { %v5000_v41 = vadd.f32 -1.0, %v6043_v1 }
0x1064   :  { %v4549_v17 = vmul.f32 1.6732632, %v5000_v41 }
0x1065   :  { %v6045_v22 = vpop.eup %6044 }
0x1066   :  { %v4999_v6 = vadd.f32 -1.0, %v6045_v22  ;;  %v4551_v3 = vsel %vm4541_vm3, %v4539_v7, %v4549_v17 }
0x1067   :  { %v4553_v54 = vmul.f32 1.050701, %v4551_v3 }
0x1068   :  { %v4548_v9 = vmul.f32 1.6732632, %v4999_v6 }
0x1069   :  { %5642 = vmatpush3.msra.mxu1 %v4553_v54 }
0x106a   :  { %v4550_v45 = vsel %vm4540_vm12, %v4538_v24, %v4548_v9  ;;  %5643 = vmatprep.subr.mxu1 %v6086_v19 }
0x106b   :  { %v4552_v29 = vmul.f32 1.050701, %v4550_v45 }
0x106d   :  { %5644 = vmatpush3.msra.mxu1 %v4552_v29 }
0x106e   :  { %5646 = vmatmul.mubr.msk.f32.vlgmr.msra.gmra.mxu1 %vm2943_vm4, %v4554_v36 }
0x112e   :  { %v4634_v43 = vpop.f32.mrf.mxu1 }
0x112f   :  { %v4635_v13 = vadd.f32 %v4634_v43, %v4564_v14 }
0x1130   :  { %v5647_v18 = vpop.f32.mrf.mxu1 }
0x1131   :  { %v4639_v32 = vsel %vm4638_vm13, %v4635_v13, 0.0 }
0x1132   :  { %4640 = vadd.xlane.f32.xlu1 %v4639_v32 }
0x1143   :  { %4666 = vperm.xlu1 %5653, %v4663_v27  }
0x11bb   :  { %v4641_v19 = vpop.xlane.xlu1 %4640 }
0x11bc   :  { %v4642_v53 = vmul.f32 0.25, %v4641_v19 }
0x11be   :  { %v4643_v63 = vsub.f32 %v4635_v13, %v4642_v53 }
0x11bf   :  { %v4667_v20 = vpop.permute.xlu1 %4666 }
0x11c0   :  { %v4644_v60 = vmul.f32 %v4643_v63, %v4643_v63  ;;  %v4672_v56 = vrot.slane %v4667_v20, %v6482_v49 }
0x11c2   :  { %v4645_v0 = vsel %vm4638_vm13, %v4644_v60, 0.0 }
0x11c3   :  { %4646 = vadd.xlane.f32.xlu0 %v4645_v0 }
0x11d9   :  { %4655 = vperm.xlu0 %5652, %v4652_v2  }
0x124c   :  { %v4647_v61 = vpop.xlane.xlu0 %4646 }
0x124d   :  { %v4648_v4 = vmul.f32 0.25, %v4647_v61 }
0x124f   :  { %v4649_v8 = vadd.f32 1e-05, %v4648_v4 }
0x1251   :  { %6046 = vrsqrt.f32 %v4649_v8 }
0x1254   :  { %v4656_v28 = vpop.permute.xlu0 %4655 }
0x1255   :  { %v4661_v42 = vrot.slane %v4656_v28, %v6482_v49 }
0x125e   :  { %v6047_v44 = vpop.eup %6046 }
0x125f   :  { %v4651_v21 = vmul.f32 %v6047_v44, %v4643_v63 }
0x1261   :  { %v4662_v5 = vmul.f32 %v4661_v42, %v4651_v21 }
0x1263   :  { %v4673_v59 = vadd.f32 %v4672_v56, %v4662_v5 }
0x1265   :  { %v4675_v57 = vmul.f32 1.442695, %v4673_v59  ;;  %vm4674_vm4 = vcmp.gt.f32.partialorder %v4673_v59, 0.0 }
0x1267   :  { %6048 = vpow2.f32 %v4675_v57 }
0x1274   :  { %v6049_v55 = vpop.eup %6048 }
0x1275   :  { %v5002_v11 = vadd.f32 -1.0, %v6049_v55 }
0x1277   :  { %v4678_v23 = vmul.f32 1.6732632, %v5002_v11 }
0x1279   :  { %v4679_v62 = vsel %vm4674_vm4, %v4673_v59, %v4678_v23 }
0x127a   :  { %v4680_v34 = vmul.f32 1.050701, %v4679_v62 }
0x127c   :  { %4681 = vst.msk [vmem:[#allocation8] sm:$0x1] %vm4638_vm13, %v4680_v34 }
0x127d   :  { %6074 = shalt.err (!%p6071_p4)
}
0x127e   :  { %4691 = dma.vmem_to_hbm [thread:$0]  %s4689_s30, 16, %s7447_s18, [#allocation9]  }
0x127f   :  { %6083 = dma.done.wait [#allocation9], 16  }
0x1280   :  { %6084 = vsyncadd [#allocation9], 4294967280 }
0x1281   :  { %4695 = vsyncpa [#allocation9], 1 }

</bundles_post_ra>
